<compile_context>
chip_gen: v7x
topology: tpu7x:2x2x1
jax: 0.10.0
libtpu: 0.0.40
codegen_flags: <defaults>
</compile_context>

<pallas_src>
import jax
import jax.numpy as jnp
from jax.experimental import pallas as pl
from jax.experimental.pallas import tpu as pltpu

EPS = 1e-5          # nn.InstanceNorm2d default (affine=False, biased variance)
MXU_BF16 = False    # optional bf16 MXU-input mode for large C on v6e/v7x


def _pick_b_blk(N, C, HW, itemsize):
    # Pack batch elements per grid step to amortize per-step fixed cost and get
    # efficiently sized DMAs, while (a) capping per-block bytes so the
    # double-buffered in+out blocks stay far below VMEM even on v7x (64 MiB/TC)
    # and (b) leaving >= 2 grid steps when possible so megacore / 2-TC splits
    # of the "parallel" batch axis actually have work per core.
    per_elem = max(1, C * HW * itemsize)
    cap = max(1, min(8, (512 * 1024) // per_elem))
    divs = [b for b in range(1, N + 1) if N % b == 0 and b <= cap]
    two_step = [b for b in divs if N // b >= 2]
    return max(two_step) if two_step else max(divs)


def _dx_masks(H, W):
    # masks[0, p]: tap with dx = -1 is inside the image for output pixel p
    # masks[1, p]: tap with dx = +1 is inside the image
    # (dy taps need no mask: the zero halo covers vertical out-of-image reads.)
    HW = H * W
    w_idx = jnp.arange(HW, dtype=jnp.int32) % W
    left = (w_idx >= 1)
    right = (w_idx <= W - 2)
    return jnp.stack([left, right]).astype(jnp.float32)   # (2, HW)


def _make_kernel(C, H, W, B_blk, margin, use_mxu, mxu_bf16):
    HW = H * W

    def instance_norm(y):
        mean = jnp.mean(y, axis=1, keepdims=True)
        centered = y - mean                                 # reused for var + normalize
        var = jnp.mean(centered * centered, axis=1, keepdims=True)
        return centered * jax.lax.rsqrt(var + EPS)

    def conv_vpu(src_ref, w_ref, bias, mask_l, mask_r):
        # src_ref: (C, L) halo'd f32; w_ref: (9, C, C); bias: (C, 1) f32
        def group(dx_want):
            s = None
            for t in range(9):
                dy, dx = t // 3 - 1, t % 3 - 1
                if dx != dx_want:
                    continue
                start = margin + dy * W + dx
                tap = src_ref[:, start:start + HW]          # (C, HW)
                wt = w_ref[t]                               # (C, C)
                for ci in range(C):                         # VPU outer-product FMAs
                    term = wt[:, ci:ci + 1] * tap[ci:ci + 1, :]
                    s = term if s is None else s + term
            return s
        acc = bias + group(0)                               # dx=0 taps: no mask needed
        acc = acc + mask_l * group(-1)                      # mask once per dx group
        acc = acc + mask_r * group(+1)
        return acc

    def conv_mxu(src_ref, w_ref, bias, mask_l, mask_r, tap_ref):
        # w_ref: (C, 9C) tap-concatenated weights; tap_ref: (9C, HW) VMEM scratch.
        for t in range(9):
            dy, dx = t // 3 - 1, t % 3 - 1
            start = margin + dy * W + dx
            tap = src_ref[:, start:start + HW]
            if dx == -1:
                tap = tap * mask_l
            elif dx == 1:
                tap = tap * mask_r
            tap_ref[t * C:(t + 1) * C, :] = tap.astype(tap_ref.dtype)
        w = w_ref[...]
        if mxu_bf16:
            w = w.astype(jnp.bfloat16)
        # One big dot (K = 9C fills the MXU contraction dim), bias folded in.
        return jnp.dot(w, tap_ref[...], preferred_element_type=jnp.float32) + bias

    def kernel(x_ref, w1_ref, b1_ref, w2_ref, b2_ref, m_ref, o_ref,
               xb_ref, hb_ref, *tap_scratch):
        # Zero ONLY the halo strips (interior is fully overwritten each element).
        # Doing it every step keeps steps independent (safe for megacore / 2-TC).
        zeros_halo = jnp.zeros((C, margin), jnp.float32)
        xb_ref[:, 0:margin] = zeros_halo
        xb_ref[:, margin + HW:margin + HW + margin] = zeros_halo
        hb_ref[:, 0:margin] = zeros_halo
        hb_ref[:, margin + HW:margin + HW + margin] = zeros_halo

        mask_l = m_ref[0:1, :]                              # (1, HW)
        mask_r = m_ref[1:2, :]
        b1v = b1_ref[...]                                   # (C, 1)
        b2v = b2_ref[...]

        def conv(src_ref, w_ref, bias):
            if use_mxu:
                return conv_mxu(src_ref, w_ref, bias, mask_l, mask_r, tap_scratch[0])
            return conv_vpu(src_ref, w_ref, bias, mask_l, mask_r)

        # B_blk is small and static; unrolled python loop.
        for b in range(B_blk):
            xb_ref[:, margin:margin + HW] = x_ref[b].astype(jnp.float32)

            # conv1 -> InstanceNorm -> ReLU (entirely in VMEM / registers)
            h = jnp.maximum(instance_norm(conv(xb_ref, w1_ref, b1v)), 0.0)
            hb_ref[:, margin:margin + HW] = h

            # conv2 -> InstanceNorm -> residual add (residual re-read from the
            # VMEM halo buffer so x is not kept live across both stages).
            y2 = instance_norm(conv(hb_ref, w2_ref, b2v))
            o_ref[b] = (xb_ref[:, margin:margin + HW] + y2).astype(o_ref.dtype)

    return kernel


@jax.jit
def residual_block(x, w1, b1, w2, b2):
    # x: (N, C, H, W) NCHW; w*: (C, C, 3, 3); b*: (C,) — same as the PyTorch module.
    N, C, H, W = x.shape
    HW = H * W
    # Halo must cover the largest tap shift (W + 1); keep it lane-aligned.
    margin = max(128, ((W + 1 + 127) // 128) * 128)
    assert margin >= W + 1
    L = HW + 2 * margin

    # Tiny channel counts: VPU broadcast FMAs beat near-empty MXU dots.
    use_mxu = C >= 32
    mxu_bf16 = MXU_BF16 and use_mxu
    B_blk = _pick_b_blk(N, C, HW, x.dtype.itemsize)
    kernel = _make_kernel(C, H, W, B_blk, margin, use_mxu, mxu_bf16)

    if use_mxu:
        def pack(w):   # (Co, Ci, 3, 3) -> (Co, 9*Ci), tap-major column blocks
            return jnp.transpose(w, (0, 2, 3, 1)).reshape(C, 9 * C).astype(jnp.float32)
        w_spec = pl.BlockSpec((C, 9 * C), lambda b: (0, 0))
    else:
        def pack(w):   # (Co, Ci, 3, 3) -> (9, Co, Ci), tap index t = ky*3 + kx
            return jnp.transpose(w, (2, 3, 0, 1)).reshape(9, C, C).astype(jnp.float32)
        w_spec = pl.BlockSpec((9, C, C), lambda b: (0, 0, 0))

    scratch = [pltpu.VMEM((C, L), jnp.float32),   # x with zero halo
               pltpu.VMEM((C, L), jnp.float32)]   # h with zero halo
    if use_mxu:
        scratch.append(pltpu.VMEM((9 * C, HW),
                                  jnp.bfloat16 if mxu_bf16 else jnp.float32))

    # Rough VMEM budget (double-buffered in/out blocks + scratch + params),
    # capped well below v7x's 64 MiB/TC physical VMEM.
    est = (4 * B_blk * C * HW * x.dtype.itemsize
           + 2 * C * L * 4
           + (9 * C * HW * (2 if mxu_bf16 else 4) if use_mxu else 0)
           + 2 * 9 * C * C * 4 + 2 * 8 * 128 * 4 + 8 * HW * 4)
    vmem_limit = int(min(max(32 * 1024 * 1024, 2 * est), 48 * 1024 * 1024))

    x_flat = x.reshape(N, C, HW)          # metadata-only reshape
    masks = _dx_masks(H, W)               # (2, HW)

    out = pl.pallas_call(
        kernel,
        out_shape=jax.ShapeDtypeStruct((N, C, HW), x.dtype),
        grid_spec=pltpu.PrefetchScalarGridSpec(
            num_scalar_prefetch=0,
            grid=(N // B_blk,),
            in_specs=[
                pl.BlockSpec((B_blk, C, HW), lambda b: (b, 0, 0)),   # x batch block
                w_spec,                                              # w1
                pl.BlockSpec((C, 1), lambda b: (0, 0)),              # b1
                w_spec,                                              # w2
                pl.BlockSpec((C, 1), lambda b: (0, 0)),              # b2
                pl.BlockSpec((2, HW), lambda b: (0, 0)),             # dx boundary masks
            ],
            out_specs=pl.BlockSpec((B_blk, C, HW), lambda b: (b, 0, 0)),
            scratch_shapes=scratch,
        ),
        compiler_params=pltpu.CompilerParams(
            dimension_semantics=("parallel",),
            vmem_limit_bytes=vmem_limit,
        ),
    )(x_flat, pack(w1), b1.reshape(C, 1).astype(jnp.float32),
      pack(w2), b2.reshape(C, 1).astype(jnp.float32), masks)
    return out.reshape(N, C, H, W)


def _reference(x, w1, b1, w2, b2):
    # Pure-JAX reference mirroring the PyTorch forward pass (exact f32 conv).
    def conv(z, w, b):
        y = jax.lax.conv_general_dilated(
            z.astype(jnp.float32), w.astype(jnp.float32),
            window_strides=(1, 1), padding=((1, 1), (1, 1)),
            dimension_numbers=("NCHW", "OIHW", "NCHW"),
            precision=jax.lax.Precision.HIGHEST)
        return y + b[None, :, None, None]

    def inorm(y):
        m = jnp.mean(y, axis=(2, 3), keepdims=True)
        v = jnp.mean((y - m) ** 2, axis=(2, 3), keepdims=True)
        return (y - m) * jax.lax.rsqrt(v + EPS)

    h = jax.nn.relu(inorm(conv(x, w1, b1)))
    return x + inorm(conv(h, w2, b2))


if __name__ == "__main__":
    key = jax.random.PRNGKey(0)
    kx, k1, k2, k3, k4 = jax.random.split(key, 5)
    N, C, H, W = 2, 4, 16, 16
    x = jax.random.normal(kx, (N, C, H, W), dtype=jnp.float32)

    # Conv2d-style init (uniform +/- 1/sqrt(fan_in)), like PyTorch defaults.
    fan_in = C * 3 * 3
    scale = 1.0 / float(fan_in) ** 0.5
    w1 = jax.random.uniform(k1, (C, C, 3, 3), jnp.float32, -scale, scale)
    b1 = jax.random.uniform(k2, (C,), jnp.float32, -scale, scale)
    w2 = jax.random.uniform(k3, (C, C, 3, 3), jnp.float32, -scale, scale)
    b2 = jax.random.uniform(k4, (C,), jnp.float32, -scale, scale)

    out = jax.block_until_ready(residual_block(x, w1, b1, w2, b2))
    ref = _reference(x, w1, b1, w2, b2)

    assert out.shape == (N, C, H, W)
    assert out.dtype == x.dtype
    max_err = float(jnp.max(jnp.abs(out - ref)))
    if max_err > 1e-4:
        raise AssertionError(f"mismatch vs reference: max abs err = {max_err}")
    print("KERNEL_OK")
</pallas_src>

<mosaic_0001>
module attributes {stable_mosaic.version = 11 : i64} {
  func.func @kernel(%arg0: i32, %arg1: memref<1x4x256xf32, #tpu.memory_space<vmem>>, %arg2: memref<9x4x4xf32, #tpu.memory_space<vmem>>, %arg3: memref<4x1xf32, #tpu.memory_space<vmem>>, %arg4: memref<9x4x4xf32, #tpu.memory_space<vmem>>, %arg5: memref<4x1xf32, #tpu.memory_space<vmem>>, %arg6: memref<2x256xf32, #tpu.memory_space<vmem>>, %arg7: memref<1x4x256xf32, #tpu.memory_space<vmem>>, %arg8: memref<4x512xf32, #tpu.memory_space<vmem>>, %arg9: memref<4x512xf32, #tpu.memory_space<vmem>>) attributes {dimension_semantics = [#tpu.dimension_semantics<parallel>], iteration_bounds = array<i64: 2>, scalar_prefetch = 0 : i64, scratch_operands = 2 : i64, tpu.core_type = #tpu.core_type<tc>, window_params = [{transform_indices = @transform_0, window_bounds = array<i64: 1, 4, 256>}, {pipeline_mode = #tpu.pipeline_mode<synchronous>, transform_indices = @transform_1, window_bounds = array<i64: 9, 4, 4>}, {pipeline_mode = #tpu.pipeline_mode<synchronous>, transform_indices = @transform_2, window_bounds = array<i64: 4, 1>}, {pipeline_mode = #tpu.pipeline_mode<synchronous>, transform_indices = @transform_3, window_bounds = array<i64: 9, 4, 4>}, {pipeline_mode = #tpu.pipeline_mode<synchronous>, transform_indices = @transform_4, window_bounds = array<i64: 4, 1>}, {pipeline_mode = #tpu.pipeline_mode<synchronous>, transform_indices = @transform_5, window_bounds = array<i64: 2, 256>}, {transform_indices = @transform_6, window_bounds = array<i64: 1, 4, 256>}]} {
    %cst = arith.constant 0.000000e+00 : f32
    %0 = vector.broadcast %cst : f32 to vector<4x128xf32>
    %c0 = arith.constant 0 : index
    %c0_0 = arith.constant 0 : index
    %1 = vector.load %arg8[%c0, %c0_0] : memref<4x512xf32, #tpu.memory_space<vmem>>, vector<4x128xf32>
    tpu.vector_store %arg8[%c0, %c0_0], %0 {strides = array<i32>} : memref<4x512xf32, #tpu.memory_space<vmem>>, vector<4x128xf32>,
    %c0_1 = arith.constant 0 : index
    %c384 = arith.constant 384 : index
    %2 = vector.load %arg8[%c0_1, %c384] : memref<4x512xf32, #tpu.memory_space<vmem>>, vector<4x128xf32>
    tpu.vector_store %arg8[%c0_1, %c384], %0 {strides = array<i32>} : memref<4x512xf32, #tpu.memory_space<vmem>>, vector<4x128xf32>,
    %c0_2 = arith.constant 0 : index
    %c0_3 = arith.constant 0 : index
    %3 = vector.load %arg9[%c0_2, %c0_3] : memref<4x512xf32, #tpu.memory_space<vmem>>, vector<4x128xf32>
    tpu.vector_store %arg9[%c0_2, %c0_3], %0 {strides = array<i32>} : memref<4x512xf32, #tpu.memory_space<vmem>>, vector<4x128xf32>,
    %c0_4 = arith.constant 0 : index
    %c384_5 = arith.constant 384 : index
    %4 = vector.load %arg9[%c0_4, %c384_5] : memref<4x512xf32, #tpu.memory_space<vmem>>, vector<4x128xf32>
    tpu.vector_store %arg9[%c0_4, %c384_5], %0 {strides = array<i32>} : memref<4x512xf32, #tpu.memory_space<vmem>>, vector<4x128xf32>,
    %c0_6 = arith.constant 0 : index
    %c0_7 = arith.constant 0 : index
    %5 = vector.load %arg6[%c0_6, %c0_7] : memref<2x256xf32, #tpu.memory_space<vmem>>, vector<1x256xf32>
    %c1 = arith.constant 1 : index
    %c0_8 = arith.constant 0 : index
    %6 = vector.load %arg6[%c1, %c0_8] : memref<2x256xf32, #tpu.memory_space<vmem>>, vector<1x256xf32>
    %c0_9 = arith.constant 0 : index
    %c0_10 = arith.constant 0 : index
    %7 = vector.load %arg3[%c0_9, %c0_10] : memref<4x1xf32, #tpu.memory_space<vmem>>, vector<4x1xf32>
    %c0_11 = arith.constant 0 : index
    %c0_12 = arith.constant 0 : index
    %8 = vector.load %arg5[%c0_11, %c0_12] : memref<4x1xf32, #tpu.memory_space<vmem>>, vector<4x1xf32>
    %c0_13 = arith.constant 0 : index
    %c0_14 = arith.constant 0 : index
    %c0_15 = arith.constant 0 : index
    %9 = vector.load %arg1[%c0_13, %c0_14, %c0_15] : memref<1x4x256xf32, #tpu.memory_space<vmem>>, vector<1x4x256xf32>
    %10 = vector.shape_cast %9 : vector<1x4x256xf32> to vector<4x256xf32>
    %c0_16 = arith.constant 0 : index
    %c128 = arith.constant 128 : index
    %11 = vector.load %arg8[%c0_16, %c128] : memref<4x512xf32, #tpu.memory_space<vmem>>, vector<4x256xf32>
    tpu.vector_store %arg8[%c0_16, %c128], %10 {strides = array<i32>} : memref<4x512xf32, #tpu.memory_space<vmem>>, vector<4x256xf32>,
    %c0_17 = arith.constant 0 : index
    %c112 = arith.constant 112 : index
    %12 = vector.load %arg8[%c0_17, %c112] : memref<4x512xf32, #tpu.memory_space<vmem>>, vector<4x256xf32>
    %c1_18 = arith.constant 1 : index
    %c0_19 = arith.constant 0 : index
    %c0_20 = arith.constant 0 : index
    %13 = vector.load %arg2[%c1_18, %c0_19, %c0_20] : memref<9x4x4xf32, #tpu.memory_space<vmem>>, vector<1x4x4xf32>
    %14 = vector.shape_cast %13 : vector<1x4x4xf32> to vector<4x4xf32>
    %15 = vector.extract_strided_slice %14 {offsets = [0, 0], sizes = [4, 1], strides = [1, 1]} : vector<4x4xf32> to vector<4x1xf32>
    %16 = vector.extract_strided_slice %12 {offsets = [0, 0], sizes = [1, 256], strides = [1, 1]} : vector<4x256xf32> to vector<1x256xf32>
    %17 = vector.broadcast %15 : vector<4x1xf32> to vector<4x256xf32>
    %18 = vector.broadcast %16 : vector<1x256xf32> to vector<4x256xf32>
    %19 = arith.mulf %17, %18 : vector<4x256xf32>
    %20 = vector.extract_strided_slice %14 {offsets = [0, 1], sizes = [4, 1], strides = [1, 1]} : vector<4x4xf32> to vector<4x1xf32>
    %21 = vector.extract_strided_slice %12 {offsets = [1, 0], sizes = [1, 256], strides = [1, 1]} : vector<4x256xf32> to vector<1x256xf32>
    %22 = vector.broadcast %20 : vector<4x1xf32> to vector<4x256xf32>
    %23 = vector.broadcast %21 : vector<1x256xf32> to vector<4x256xf32>
    %24 = arith.mulf %22, %23 : vector<4x256xf32>
    %25 = arith.addf %19, %24 : vector<4x256xf32>
    %26 = vector.extract_strided_slice %14 {offsets = [0, 2], sizes = [4, 1], strides = [1, 1]} : vector<4x4xf32> to vector<4x1xf32>
    %27 = vector.extract_strided_slice %12 {offsets = [2, 0], sizes = [1, 256], strides = [1, 1]} : vector<4x256xf32> to vector<1x256xf32>
    %28 = vector.broadcast %26 : vector<4x1xf32> to vector<4x256xf32>
    %29 = vector.broadcast %27 : vector<1x256xf32> to vector<4x256xf32>
    %30 = arith.mulf %28, %29 : vector<4x256xf32>
    %31 = arith.addf %25, %30 : vector<4x256xf32>
    %32 = vector.extract_strided_slice %14 {offsets = [0, 3], sizes = [4, 1], strides = [1, 1]} : vector<4x4xf32> to vector<4x1xf32>
    %33 = vector.extract_strided_slice %12 {offsets = [3, 0], sizes = [1, 256], strides = [1, 1]} : vector<4x256xf32> to vector<1x256xf32>
    %34 = vector.broadcast %32 : vector<4x1xf32> to vector<4x256xf32>
    %35 = vector.broadcast %33 : vector<1x256xf32> to vector<4x256xf32>
    %36 = arith.mulf %34, %35 : vector<4x256xf32>
    %37 = arith.addf %31, %36 : vector<4x256xf32>
    %c0_21 = arith.constant 0 : index
    %c128_22 = arith.constant 128 : index
    %38 = vector.load %arg8[%c0_21, %c128_22] : memref<4x512xf32, #tpu.memory_space<vmem>>, vector<4x256xf32>
    %c4 = arith.constant 4 : index
    %c0_23 = arith.constant 0 : index
    %c0_24 = arith.constant 0 : index
    %39 = vector.load %arg2[%c4, %c0_23, %c0_24] : memref<9x4x4xf32, #tpu.memory_space<vmem>>, vector<1x4x4xf32>
    %40 = vector.shape_cast %39 : vector<1x4x4xf32> to vector<4x4xf32>
    %41 = vector.extract_strided_slice %40 {offsets = [0, 0], sizes = [4, 1], strides = [1, 1]} : vector<4x4xf32> to vector<4x1xf32>
    %42 = vector.extract_strided_slice %38 {offsets = [0, 0], sizes = [1, 256], strides = [1, 1]} : vector<4x256xf32> to vector<1x256xf32>
    %43 = vector.broadcast %41 : vector<4x1xf32> to vector<4x256xf32>
    %44 = vector.broadcast %42 : vector<1x256xf32> to vector<4x256xf32>
    %45 = arith.mulf %43, %44 : vector<4x256xf32>
    %46 = arith.addf %37, %45 : vector<4x256xf32>
    %47 = vector.extract_strided_slice %40 {offsets = [0, 1], sizes = [4, 1], strides = [1, 1]} : vector<4x4xf32> to vector<4x1xf32>
    %48 = vector.extract_strided_slice %38 {offsets = [1, 0], sizes = [1, 256], strides = [1, 1]} : vector<4x256xf32> to vector<1x256xf32>
    %49 = vector.broadcast %47 : vector<4x1xf32> to vector<4x256xf32>
    %50 = vector.broadcast %48 : vector<1x256xf32> to vector<4x256xf32>
    %51 = arith.mulf %49, %50 : vector<4x256xf32>
    %52 = arith.addf %46, %51 : vector<4x256xf32>
    %53 = vector.extract_strided_slice %40 {offsets = [0, 2], sizes = [4, 1], strides = [1, 1]} : vector<4x4xf32> to vector<4x1xf32>
    %54 = vector.extract_strided_slice %38 {offsets = [2, 0], sizes = [1, 256], strides = [1, 1]} : vector<4x256xf32> to vector<1x256xf32>
    %55 = vector.broadcast %53 : vector<4x1xf32> to vector<4x256xf32>
    %56 = vector.broadcast %54 : vector<1x256xf32> to vector<4x256xf32>
    %57 = arith.mulf %55, %56 : vector<4x256xf32>
    %58 = arith.addf %52, %57 : vector<4x256xf32>
    %59 = vector.extract_strided_slice %40 {offsets = [0, 3], sizes = [4, 1], strides = [1, 1]} : vector<4x4xf32> to vector<4x1xf32>
    %60 = vector.extract_strided_slice %38 {offsets = [3, 0], sizes = [1, 256], strides = [1, 1]} : vector<4x256xf32> to vector<1x256xf32>
    %61 = vector.broadcast %59 : vector<4x1xf32> to vector<4x256xf32>
    %62 = vector.broadcast %60 : vector<1x256xf32> to vector<4x256xf32>
    %63 = arith.mulf %61, %62 : vector<4x256xf32>
    %64 = arith.addf %58, %63 : vector<4x256xf32>
    %c0_25 = arith.constant 0 : index
    %c144 = arith.constant 144 : index
    %65 = vector.load %arg8[%c0_25, %c144] : memref<4x512xf32, #tpu.memory_space<vmem>>, vector<4x256xf32>
    %c7 = arith.constant 7 : index
    %c0_26 = arith.constant 0 : index
    %c0_27 = arith.constant 0 : index
    %66 = vector.load %arg2[%c7, %c0_26, %c0_27] : memref<9x4x4xf32, #tpu.memory_space<vmem>>, vector<1x4x4xf32>
    %67 = vector.shape_cast %66 : vector<1x4x4xf32> to vector<4x4xf32>
    %68 = vector.extract_strided_slice %67 {offsets = [0, 0], sizes = [4, 1], strides = [1, 1]} : vector<4x4xf32> to vector<4x1xf32>
    %69 = vector.extract_strided_slice %65 {offsets = [0, 0], sizes = [1, 256], strides = [1, 1]} : vector<4x256xf32> to vector<1x256xf32>
    %70 = vector.broadcast %68 : vector<4x1xf32> to vector<4x256xf32>
    %71 = vector.broadcast %69 : vector<1x256xf32> to vector<4x256xf32>
    %72 = arith.mulf %70, %71 : vector<4x256xf32>
    %73 = arith.addf %64, %72 : vector<4x256xf32>
    %74 = vector.extract_strided_slice %67 {offsets = [0, 1], sizes = [4, 1], strides = [1, 1]} : vector<4x4xf32> to vector<4x1xf32>
    %75 = vector.extract_strided_slice %65 {offsets = [1, 0], sizes = [1, 256], strides = [1, 1]} : vector<4x256xf32> to vector<1x256xf32>
    %76 = vector.broadcast %74 : vector<4x1xf32> to vector<4x256xf32>
    %77 = vector.broadcast %75 : vector<1x256xf32> to vector<4x256xf32>
    %78 = arith.mulf %76, %77 : vector<4x256xf32>
    %79 = arith.addf %73, %78 : vector<4x256xf32>
    %80 = vector.extract_strided_slice %67 {offsets = [0, 2], sizes = [4, 1], strides = [1, 1]} : vector<4x4xf32> to vector<4x1xf32>
    %81 = vector.extract_strided_slice %65 {offsets = [2, 0], sizes = [1, 256], strides = [1, 1]} : vector<4x256xf32> to vector<1x256xf32>
    %82 = vector.broadcast %80 : vector<4x1xf32> to vector<4x256xf32>
    %83 = vector.broadcast %81 : vector<1x256xf32> to vector<4x256xf32>
    %84 = arith.mulf %82, %83 : vector<4x256xf32>
    %85 = arith.addf %79, %84 : vector<4x256xf32>
    %86 = vector.extract_strided_slice %67 {offsets = [0, 3], sizes = [4, 1], strides = [1, 1]} : vector<4x4xf32> to vector<4x1xf32>
    %87 = vector.extract_strided_slice %65 {offsets = [3, 0], sizes = [1, 256], strides = [1, 1]} : vector<4x256xf32> to vector<1x256xf32>
    %88 = vector.broadcast %86 : vector<4x1xf32> to vector<4x256xf32>
    %89 = vector.broadcast %87 : vector<1x256xf32> to vector<4x256xf32>
    %90 = arith.mulf %88, %89 : vector<4x256xf32>
    %91 = arith.addf %85, %90 : vector<4x256xf32>
    %92 = vector.broadcast %7 : vector<4x1xf32> to vector<4x256xf32>
    %93 = arith.addf %92, %91 : vector<4x256xf32>
    %c0_28 = arith.constant 0 : index
    %c111 = arith.constant 111 : index
    %94 = vector.load %arg8[%c0_28, %c111] : memref<4x512xf32, #tpu.memory_space<vmem>>, vector<4x256xf32>
    %c0_29 = arith.constant 0 : index
    %c0_30 = arith.constant 0 : index
    %c0_31 = arith.constant 0 : index
    %95 = vector.load %arg2[%c0_29, %c0_30, %c0_31] : memref<9x4x4xf32, #tpu.memory_space<vmem>>, vector<1x4x4xf32>
    %96 = vector.shape_cast %95 : vector<1x4x4xf32> to vector<4x4xf32>
    %97 = vector.extract_strided_slice %96 {offsets = [0, 0], sizes = [4, 1], strides = [1, 1]} : vector<4x4xf32> to vector<4x1xf32>
    %98 = vector.extract_strided_slice %94 {offsets = [0, 0], sizes = [1, 256], strides = [1, 1]} : vector<4x256xf32> to vector<1x256xf32>
    %99 = vector.broadcast %97 : vector<4x1xf32> to vector<4x256xf32>
    %100 = vector.broadcast %98 : vector<1x256xf32> to vector<4x256xf32>
    %101 = arith.mulf %99, %100 : vector<4x256xf32>
    %102 = vector.extract_strided_slice %96 {offsets = [0, 1], sizes = [4, 1], strides = [1, 1]} : vector<4x4xf32> to vector<4x1xf32>
    %103 = vector.extract_strided_slice %94 {offsets = [1, 0], sizes = [1, 256], strides = [1, 1]} : vector<4x256xf32> to vector<1x256xf32>
    %104 = vector.broadcast %102 : vector<4x1xf32> to vector<4x256xf32>
    %105 = vector.broadcast %103 : vector<1x256xf32> to vector<4x256xf32>
    %106 = arith.mulf %104, %105 : vector<4x256xf32>
    %107 = arith.addf %101, %106 : vector<4x256xf32>
    %108 = vector.extract_strided_slice %96 {offsets = [0, 2], sizes = [4, 1], strides = [1, 1]} : vector<4x4xf32> to vector<4x1xf32>
    %109 = vector.extract_strided_slice %94 {offsets = [2, 0], sizes = [1, 256], strides = [1, 1]} : vector<4x256xf32> to vector<1x256xf32>
    %110 = vector.broadcast %108 : vector<4x1xf32> to vector<4x256xf32>
    %111 = vector.broadcast %109 : vector<1x256xf32> to vector<4x256xf32>
    %112 = arith.mulf %110, %111 : vector<4x256xf32>
    %113 = arith.addf %107, %112 : vector<4x256xf32>
    %114 = vector.extract_strided_slice %96 {offsets = [0, 3], sizes = [4, 1], strides = [1, 1]} : vector<4x4xf32> to vector<4x1xf32>
    %115 = vector.extract_strided_slice %94 {offsets = [3, 0], sizes = [1, 256], strides = [1, 1]} : vector<4x256xf32> to vector<1x256xf32>
    %116 = vector.broadcast %114 : vector<4x1xf32> to vector<4x256xf32>
    %117 = vector.broadcast %115 : vector<1x256xf32> to vector<4x256xf32>
    %118 = arith.mulf %116, %117 : vector<4x256xf32>
    %119 = arith.addf %113, %118 : vector<4x256xf32>
    %c0_32 = arith.constant 0 : index
    %c127 = arith.constant 127 : index
    %120 = vector.load %arg8[%c0_32, %c127] : memref<4x512xf32, #tpu.memory_space<vmem>>, vector<4x256xf32>
    %c3 = arith.constant 3 : index
    %c0_33 = arith.constant 0 : index
    %c0_34 = arith.constant 0 : index
    %121 = vector.load %arg2[%c3, %c0_33, %c0_34] : memref<9x4x4xf32, #tpu.memory_space<vmem>>, vector<1x4x4xf32>
    %122 = vector.shape_cast %121 : vector<1x4x4xf32> to vector<4x4xf32>
    %123 = vector.extract_strided_slice %122 {offsets = [0, 0], sizes = [4, 1], strides = [1, 1]} : vector<4x4xf32> to vector<4x1xf32>
    %124 = vector.extract_strided_slice %120 {offsets = [0, 0], sizes = [1, 256], strides = [1, 1]} : vector<4x256xf32> to vector<1x256xf32>
    %125 = vector.broadcast %123 : vector<4x1xf32> to vector<4x256xf32>
    %126 = vector.broadcast %124 : vector<1x256xf32> to vector<4x256xf32>
    %127 = arith.mulf %125, %126 : vector<4x256xf32>
    %128 = arith.addf %119, %127 : vector<4x256xf32>
    %129 = vector.extract_strided_slice %122 {offsets = [0, 1], sizes = [4, 1], strides = [1, 1]} : vector<4x4xf32> to vector<4x1xf32>
    %130 = vector.extract_strided_slice %120 {offsets = [1, 0], sizes = [1, 256], strides = [1, 1]} : vector<4x256xf32> to vector<1x256xf32>
    %131 = vector.broadcast %129 : vector<4x1xf32> to vector<4x256xf32>
    %132 = vector.broadcast %130 : vector<1x256xf32> to vector<4x256xf32>
    %133 = arith.mulf %131, %132 : vector<4x256xf32>
    %134 = arith.addf %128, %133 : vector<4x256xf32>
    %135 = vector.extract_strided_slice %122 {offsets = [0, 2], sizes = [4, 1], strides = [1, 1]} : vector<4x4xf32> to vector<4x1xf32>
    %136 = vector.extract_strided_slice %120 {offsets = [2, 0], sizes = [1, 256], strides = [1, 1]} : vector<4x256xf32> to vector<1x256xf32>
    %137 = vector.broadcast %135 : vector<4x1xf32> to vector<4x256xf32>
    %138 = vector.broadcast %136 : vector<1x256xf32> to vector<4x256xf32>
    %139 = arith.mulf %137, %138 : vector<4x256xf32>
    %140 = arith.addf %134, %139 : vector<4x256xf32>
    %141 = vector.extract_strided_slice %122 {offsets = [0, 3], sizes = [4, 1], strides = [1, 1]} : vector<4x4xf32> to vector<4x1xf32>
    %142 = vector.extract_strided_slice %120 {offsets = [3, 0], sizes = [1, 256], strides = [1, 1]} : vector<4x256xf32> to vector<1x256xf32>
    %143 = vector.broadcast %141 : vector<4x1xf32> to vector<4x256xf32>
    %144 = vector.broadcast %142 : vector<1x256xf32> to vector<4x256xf32>
    %145 = arith.mulf %143, %144 : vector<4x256xf32>
    %146 = arith.addf %140, %145 : vector<4x256xf32>
    %c0_35 = arith.constant 0 : index
    %c143 = arith.constant 143 : index
    %147 = vector.load %arg8[%c0_35, %c143] : memref<4x512xf32, #tpu.memory_space<vmem>>, vector<4x256xf32>
    %c6 = arith.constant 6 : index
    %c0_36 = arith.constant 0 : index
    %c0_37 = arith.constant 0 : index
    %148 = vector.load %arg2[%c6, %c0_36, %c0_37] : memref<9x4x4xf32, #tpu.memory_space<vmem>>, vector<1x4x4xf32>
    %149 = vector.shape_cast %148 : vector<1x4x4xf32> to vector<4x4xf32>
    %150 = vector.extract_strided_slice %149 {offsets = [0, 0], sizes = [4, 1], strides = [1, 1]} : vector<4x4xf32> to vector<4x1xf32>
    %151 = vector.extract_strided_slice %147 {offsets = [0, 0], sizes = [1, 256], strides = [1, 1]} : vector<4x256xf32> to vector<1x256xf32>
    %152 = vector.broadcast %150 : vector<4x1xf32> to vector<4x256xf32>
    %153 = vector.broadcast %151 : vector<1x256xf32> to vector<4x256xf32>
    %154 = arith.mulf %152, %153 : vector<4x256xf32>
    %155 = arith.addf %146, %154 : vector<4x256xf32>
    %156 = vector.extract_strided_slice %149 {offsets = [0, 1], sizes = [4, 1], strides = [1, 1]} : vector<4x4xf32> to vector<4x1xf32>
    %157 = vector.extract_strided_slice %147 {offsets = [1, 0], sizes = [1, 256], strides = [1, 1]} : vector<4x256xf32> to vector<1x256xf32>
    %158 = vector.broadcast %156 : vector<4x1xf32> to vector<4x256xf32>
    %159 = vector.broadcast %157 : vector<1x256xf32> to vector<4x256xf32>
    %160 = arith.mulf %158, %159 : vector<4x256xf32>
    %161 = arith.addf %155, %160 : vector<4x256xf32>
    %162 = vector.extract_strided_slice %149 {offsets = [0, 2], sizes = [4, 1], strides = [1, 1]} : vector<4x4xf32> to vector<4x1xf32>
    %163 = vector.extract_strided_slice %147 {offsets = [2, 0], sizes = [1, 256], strides = [1, 1]} : vector<4x256xf32> to vector<1x256xf32>
    %164 = vector.broadcast %162 : vector<4x1xf32> to vector<4x256xf32>
    %165 = vector.broadcast %163 : vector<1x256xf32> to vector<4x256xf32>
    %166 = arith.mulf %164, %165 : vector<4x256xf32>
    %167 = arith.addf %161, %166 : vector<4x256xf32>
    %168 = vector.extract_strided_slice %149 {offsets = [0, 3], sizes = [4, 1], strides = [1, 1]} : vector<4x4xf32> to vector<4x1xf32>
    %169 = vector.extract_strided_slice %147 {offsets = [3, 0], sizes = [1, 256], strides = [1, 1]} : vector<4x256xf32> to vector<1x256xf32>
    %170 = vector.broadcast %168 : vector<4x1xf32> to vector<4x256xf32>
    %171 = vector.broadcast %169 : vector<1x256xf32> to vector<4x256xf32>
    %172 = arith.mulf %170, %171 : vector<4x256xf32>
    %173 = arith.addf %167, %172 : vector<4x256xf32>
    %174 = vector.broadcast %5 : vector<1x256xf32> to vector<4x256xf32>
    %175 = arith.mulf %174, %173 : vector<4x256xf32>
    %176 = arith.addf %93, %175 : vector<4x256xf32>
    %c0_38 = arith.constant 0 : index
    %c113 = arith.constant 113 : index
    %177 = vector.load %arg8[%c0_38, %c113] : memref<4x512xf32, #tpu.memory_space<vmem>>, vector<4x256xf32>
    %c2 = arith.constant 2 : index
    %c0_39 = arith.constant 0 : index
    %c0_40 = arith.constant 0 : index
    %178 = vector.load %arg2[%c2, %c0_39, %c0_40] : memref<9x4x4xf32, #tpu.memory_space<vmem>>, vector<1x4x4xf32>
    %179 = vector.shape_cast %178 : vector<1x4x4xf32> to vector<4x4xf32>
    %180 = vector.extract_strided_slice %179 {offsets = [0, 0], sizes = [4, 1], strides = [1, 1]} : vector<4x4xf32> to vector<4x1xf32>
    %181 = vector.extract_strided_slice %177 {offsets = [0, 0], sizes = [1, 256], strides = [1, 1]} : vector<4x256xf32> to vector<1x256xf32>
    %182 = vector.broadcast %180 : vector<4x1xf32> to vector<4x256xf32>
    %183 = vector.broadcast %181 : vector<1x256xf32> to vector<4x256xf32>
    %184 = arith.mulf %182, %183 : vector<4x256xf32>
    %185 = vector.extract_strided_slice %179 {offsets = [0, 1], sizes = [4, 1], strides = [1, 1]} : vector<4x4xf32> to vector<4x1xf32>
    %186 = vector.extract_strided_slice %177 {offsets = [1, 0], sizes = [1, 256], strides = [1, 1]} : vector<4x256xf32> to vector<1x256xf32>
    %187 = vector.broadcast %185 : vector<4x1xf32> to vector<4x256xf32>
    %188 = vector.broadcast %186 : vector<1x256xf32> to vector<4x256xf32>
    %189 = arith.mulf %187, %188 : vector<4x256xf32>
    %190 = arith.addf %184, %189 : vector<4x256xf32>
    %191 = vector.extract_strided_slice %179 {offsets = [0, 2], sizes = [4, 1], strides = [1, 1]} : vector<4x4xf32> to vector<4x1xf32>
    %192 = vector.extract_strided_slice %177 {offsets = [2, 0], sizes = [1, 256], strides = [1, 1]} : vector<4x256xf32> to vector<1x256xf32>
    %193 = vector.broadcast %191 : vector<4x1xf32> to vector<4x256xf32>
    %194 = vector.broadcast %192 : vector<1x256xf32> to vector<4x256xf32>
    %195 = arith.mulf %193, %194 : vector<4x256xf32>
    %196 = arith.addf %190, %195 : vector<4x256xf32>
    %197 = vector.extract_strided_slice %179 {offsets = [0, 3], sizes = [4, 1], strides = [1, 1]} : vector<4x4xf32> to vector<4x1xf32>
    %198 = vector.extract_strided_slice %177 {offsets = [3, 0], sizes = [1, 256], strides = [1, 1]} : vector<4x256xf32> to vector<1x256xf32>
    %199 = vector.broadcast %197 : vector<4x1xf32> to vector<4x256xf32>
    %200 = vector.broadcast %198 : vector<1x256xf32> to vector<4x256xf32>
    %201 = arith.mulf %199, %200 : vector<4x256xf32>
    %202 = arith.addf %196, %201 : vector<4x256xf32>
    %c0_41 = arith.constant 0 : index
    %c129 = arith.constant 129 : index
    %203 = vector.load %arg8[%c0_41, %c129] : memref<4x512xf32, #tpu.memory_space<vmem>>, vector<4x256xf32>
    %c5 = arith.constant 5 : index
    %c0_42 = arith.constant 0 : index
    %c0_43 = arith.constant 0 : index
    %204 = vector.load %arg2[%c5, %c0_42, %c0_43] : memref<9x4x4xf32, #tpu.memory_space<vmem>>, vector<1x4x4xf32>
    %205 = vector.shape_cast %204 : vector<1x4x4xf32> to vector<4x4xf32>
    %206 = vector.extract_strided_slice %205 {offsets = [0, 0], sizes = [4, 1], strides = [1, 1]} : vector<4x4xf32> to vector<4x1xf32>
    %207 = vector.extract_strided_slice %203 {offsets = [0, 0], sizes = [1, 256], strides = [1, 1]} : vector<4x256xf32> to vector<1x256xf32>
    %208 = vector.broadcast %206 : vector<4x1xf32> to vector<4x256xf32>
    %209 = vector.broadcast %207 : vector<1x256xf32> to vector<4x256xf32>
    %210 = arith.mulf %208, %209 : vector<4x256xf32>
    %211 = arith.addf %202, %210 : vector<4x256xf32>
    %212 = vector.extract_strided_slice %205 {offsets = [0, 1], sizes = [4, 1], strides = [1, 1]} : vector<4x4xf32> to vector<4x1xf32>
    %213 = vector.extract_strided_slice %203 {offsets = [1, 0], sizes = [1, 256], strides = [1, 1]} : vector<4x256xf32> to vector<1x256xf32>
    %214 = vector.broadcast %212 : vector<4x1xf32> to vector<4x256xf32>
    %215 = vector.broadcast %213 : vector<1x256xf32> to vector<4x256xf32>
    %216 = arith.mulf %214, %215 : vector<4x256xf32>
    %217 = arith.addf %211, %216 : vector<4x256xf32>
    %218 = vector.extract_strided_slice %205 {offsets = [0, 2], sizes = [4, 1], strides = [1, 1]} : vector<4x4xf32> to vector<4x1xf32>
    %219 = vector.extract_strided_slice %203 {offsets = [2, 0], sizes = [1, 256], strides = [1, 1]} : vector<4x256xf32> to vector<1x256xf32>
    %220 = vector.broadcast %218 : vector<4x1xf32> to vector<4x256xf32>
    %221 = vector.broadcast %219 : vector<1x256xf32> to vector<4x256xf32>
    %222 = arith.mulf %220, %221 : vector<4x256xf32>
    %223 = arith.addf %217, %222 : vector<4x256xf32>
    %224 = vector.extract_strided_slice %205 {offsets = [0, 3], sizes = [4, 1], strides = [1, 1]} : vector<4x4xf32> to vector<4x1xf32>
    %225 = vector.extract_strided_slice %203 {offsets = [3, 0], sizes = [1, 256], strides = [1, 1]} : vector<4x256xf32> to vector<1x256xf32>
    %226 = vector.broadcast %224 : vector<4x1xf32> to vector<4x256xf32>
    %227 = vector.broadcast %225 : vector<1x256xf32> to vector<4x256xf32>
    %228 = arith.mulf %226, %227 : vector<4x256xf32>
    %229 = arith.addf %223, %228 : vector<4x256xf32>
    %c0_44 = arith.constant 0 : index
    %c145 = arith.constant 145 : index
    %230 = vector.load %arg8[%c0_44, %c145] : memref<4x512xf32, #tpu.memory_space<vmem>>, vector<4x256xf32>
    %c8 = arith.constant 8 : index
    %c0_45 = arith.constant 0 : index
    %c0_46 = arith.constant 0 : index
    %231 = vector.load %arg2[%c8, %c0_45, %c0_46] : memref<9x4x4xf32, #tpu.memory_space<vmem>>, vector<1x4x4xf32>
    %232 = vector.shape_cast %231 : vector<1x4x4xf32> to vector<4x4xf32>
    %233 = vector.extract_strided_slice %232 {offsets = [0, 0], sizes = [4, 1], strides = [1, 1]} : vector<4x4xf32> to vector<4x1xf32>
    %234 = vector.extract_strided_slice %230 {offsets = [0, 0], sizes = [1, 256], strides = [1, 1]} : vector<4x256xf32> to vector<1x256xf32>
    %235 = vector.broadcast %233 : vector<4x1xf32> to vector<4x256xf32>
    %236 = vector.broadcast %234 : vector<1x256xf32> to vector<4x256xf32>
    %237 = arith.mulf %235, %236 : vector<4x256xf32>
    %238 = arith.addf %229, %237 : vector<4x256xf32>
    %239 = vector.extract_strided_slice %232 {offsets = [0, 1], sizes = [4, 1], strides = [1, 1]} : vector<4x4xf32> to vector<4x1xf32>
    %240 = vector.extract_strided_slice %230 {offsets = [1, 0], sizes = [1, 256], strides = [1, 1]} : vector<4x256xf32> to vector<1x256xf32>
    %241 = vector.broadcast %239 : vector<4x1xf32> to vector<4x256xf32>
    %242 = vector.broadcast %240 : vector<1x256xf32> to vector<4x256xf32>
    %243 = arith.mulf %241, %242 : vector<4x256xf32>
    %244 = arith.addf %238, %243 : vector<4x256xf32>
    %245 = vector.extract_strided_slice %232 {offsets = [0, 2], sizes = [4, 1], strides = [1, 1]} : vector<4x4xf32> to vector<4x1xf32>
    %246 = vector.extract_strided_slice %230 {offsets = [2, 0], sizes = [1, 256], strides = [1, 1]} : vector<4x256xf32> to vector<1x256xf32>
    %247 = vector.broadcast %245 : vector<4x1xf32> to vector<4x256xf32>
    %248 = vector.broadcast %246 : vector<1x256xf32> to vector<4x256xf32>
    %249 = arith.mulf %247, %248 : vector<4x256xf32>
    %250 = arith.addf %244, %249 : vector<4x256xf32>
    %251 = vector.extract_strided_slice %232 {offsets = [0, 3], sizes = [4, 1], strides = [1, 1]} : vector<4x4xf32> to vector<4x1xf32>
    %252 = vector.extract_strided_slice %230 {offsets = [3, 0], sizes = [1, 256], strides = [1, 1]} : vector<4x256xf32> to vector<1x256xf32>
    %253 = vector.broadcast %251 : vector<4x1xf32> to vector<4x256xf32>
    %254 = vector.broadcast %252 : vector<1x256xf32> to vector<4x256xf32>
    %255 = arith.mulf %253, %254 : vector<4x256xf32>
    %256 = arith.addf %250, %255 : vector<4x256xf32>
    %257 = vector.broadcast %6 : vector<1x256xf32> to vector<4x256xf32>
    %258 = arith.mulf %257, %256 : vector<4x256xf32>
    %259 = arith.addf %176, %258 : vector<4x256xf32>
    %cst_47 = arith.constant dense<0.000000e+00> : vector<4xf32>
    %260 = vector.multi_reduction <add>, %259, %cst_47 [1] : vector<4x256xf32> to vector<4xf32>
    %261 = vector.shape_cast %260 : vector<4xf32> to vector<4x1xf32>
    %cst_48 = arith.constant 2.560000e+02 : f32
    %262 = vector.broadcast %cst_48 : f32 to vector<4x1xf32>
    %263 = arith.divf %261, %262 : vector<4x1xf32>
    %264 = vector.broadcast %263 : vector<4x1xf32> to vector<4x256xf32>
    %265 = arith.subf %259, %264 : vector<4x256xf32>
    %266 = arith.mulf %265, %265 : vector<4x256xf32>
    %cst_49 = arith.constant dense<0.000000e+00> : vector<4xf32>
    %267 = vector.multi_reduction <add>, %266, %cst_49 [1] : vector<4x256xf32> to vector<4xf32>
    %268 = vector.shape_cast %267 : vector<4xf32> to vector<4x1xf32>
    %cst_50 = arith.constant 2.560000e+02 : f32
    %269 = vector.broadcast %cst_50 : f32 to vector<4x1xf32>
    %270 = arith.divf %268, %269 : vector<4x1xf32>
    %cst_51 = arith.constant 9.99999974E-6 : f32
    %271 = vector.broadcast %cst_51 : f32 to vector<4x1xf32>
    %272 = arith.addf %270, %271 : vector<4x1xf32>
    %273 = math.rsqrt %272 : vector<4x1xf32>
    %274 = vector.broadcast %273 : vector<4x1xf32> to vector<4x256xf32>
    %275 = arith.mulf %265, %274 : vector<4x256xf32>
    %cst_52 = arith.constant 0.000000e+00 : f32
    %276 = vector.broadcast %cst_52 : f32 to vector<4x256xf32>
    %277 = arith.maximumf %275, %276 : vector<4x256xf32>
    %c0_53 = arith.constant 0 : index
    %c128_54 = arith.constant 128 : index
    %278 = vector.load %arg9[%c0_53, %c128_54] : memref<4x512xf32, #tpu.memory_space<vmem>>, vector<4x256xf32>
    tpu.vector_store %arg9[%c0_53, %c128_54], %277 {strides = array<i32>} : memref<4x512xf32, #tpu.memory_space<vmem>>, vector<4x256xf32>,
    %c0_55 = arith.constant 0 : index
    %c112_56 = arith.constant 112 : index
    %279 = vector.load %arg9[%c0_55, %c112_56] : memref<4x512xf32, #tpu.memory_space<vmem>>, vector<4x256xf32>
    %c1_57 = arith.constant 1 : index
    %c0_58 = arith.constant 0 : index
    %c0_59 = arith.constant 0 : index
    %280 = vector.load %arg4[%c1_57, %c0_58, %c0_59] : memref<9x4x4xf32, #tpu.memory_space<vmem>>, vector<1x4x4xf32>
    %281 = vector.shape_cast %280 : vector<1x4x4xf32> to vector<4x4xf32>
    %282 = vector.extract_strided_slice %281 {offsets = [0, 0], sizes = [4, 1], strides = [1, 1]} : vector<4x4xf32> to vector<4x1xf32>
    %283 = vector.extract_strided_slice %279 {offsets = [0, 0], sizes = [1, 256], strides = [1, 1]} : vector<4x256xf32> to vector<1x256xf32>
    %284 = vector.broadcast %282 : vector<4x1xf32> to vector<4x256xf32>
    %285 = vector.broadcast %283 : vector<1x256xf32> to vector<4x256xf32>
    %286 = arith.mulf %284, %285 : vector<4x256xf32>
    %287 = vector.extract_strided_slice %281 {offsets = [0, 1], sizes = [4, 1], strides = [1, 1]} : vector<4x4xf32> to vector<4x1xf32>
    %288 = vector.extract_strided_slice %279 {offsets = [1, 0], sizes = [1, 256], strides = [1, 1]} : vector<4x256xf32> to vector<1x256xf32>
    %289 = vector.broadcast %287 : vector<4x1xf32> to vector<4x256xf32>
    %290 = vector.broadcast %288 : vector<1x256xf32> to vector<4x256xf32>
    %291 = arith.mulf %289, %290 : vector<4x256xf32>
    %292 = arith.addf %286, %291 : vector<4x256xf32>
    %293 = vector.extract_strided_slice %281 {offsets = [0, 2], sizes = [4, 1], strides = [1, 1]} : vector<4x4xf32> to vector<4x1xf32>
    %294 = vector.extract_strided_slice %279 {offsets = [2, 0], sizes = [1, 256], strides = [1, 1]} : vector<4x256xf32> to vector<1x256xf32>
    %295 = vector.broadcast %293 : vector<4x1xf32> to vector<4x256xf32>
    %296 = vector.broadcast %294 : vector<1x256xf32> to vector<4x256xf32>
    %297 = arith.mulf %295, %296 : vector<4x256xf32>
    %298 = arith.addf %292, %297 : vector<4x256xf32>
    %299 = vector.extract_strided_slice %281 {offsets = [0, 3], sizes = [4, 1], strides = [1, 1]} : vector<4x4xf32> to vector<4x1xf32>
    %300 = vector.extract_strided_slice %279 {offsets = [3, 0], sizes = [1, 256], strides = [1, 1]} : vector<4x256xf32> to vector<1x256xf32>
    %301 = vector.broadcast %299 : vector<4x1xf32> to vector<4x256xf32>
    %302 = vector.broadcast %300 : vector<1x256xf32> to vector<4x256xf32>
    %303 = arith.mulf %301, %302 : vector<4x256xf32>
    %304 = arith.addf %298, %303 : vector<4x256xf32>
    %c0_60 = arith.constant 0 : index
    %c128_61 = arith.constant 128 : index
    %305 = vector.load %arg9[%c0_60, %c128_61] : memref<4x512xf32, #tpu.memory_space<vmem>>, vector<4x256xf32>
    %c4_62 = arith.constant 4 : index
    %c0_63 = arith.constant 0 : index
    %c0_64 = arith.constant 0 : index
    %306 = vector.load %arg4[%c4_62, %c0_63, %c0_64] : memref<9x4x4xf32, #tpu.memory_space<vmem>>, vector<1x4x4xf32>
    %307 = vector.shape_cast %306 : vector<1x4x4xf32> to vector<4x4xf32>
    %308 = vector.extract_strided_slice %307 {offsets = [0, 0], sizes = [4, 1], strides = [1, 1]} : vector<4x4xf32> to vector<4x1xf32>
    %309 = vector.extract_strided_slice %305 {offsets = [0, 0], sizes = [1, 256], strides = [1, 1]} : vector<4x256xf32> to vector<1x256xf32>
    %310 = vector.broadcast %308 : vector<4x1xf32> to vector<4x256xf32>
    %311 = vector.broadcast %309 : vector<1x256xf32> to vector<4x256xf32>
    %312 = arith.mulf %310, %311 : vector<4x256xf32>
    %313 = arith.addf %304, %312 : vector<4x256xf32>
    %314 = vector.extract_strided_slice %307 {offsets = [0, 1], sizes = [4, 1], strides = [1, 1]} : vector<4x4xf32> to vector<4x1xf32>
    %315 = vector.extract_strided_slice %305 {offsets = [1, 0], sizes = [1, 256], strides = [1, 1]} : vector<4x256xf32> to vector<1x256xf32>
    %316 = vector.broadcast %314 : vector<4x1xf32> to vector<4x256xf32>
    %317 = vector.broadcast %315 : vector<1x256xf32> to vector<4x256xf32>
    %318 = arith.mulf %316, %317 : vector<4x256xf32>
    %319 = arith.addf %313, %318 : vector<4x256xf32>
    %320 = vector.extract_strided_slice %307 {offsets = [0, 2], sizes = [4, 1], strides = [1, 1]} : vector<4x4xf32> to vector<4x1xf32>
    %321 = vector.extract_strided_slice %305 {offsets = [2, 0], sizes = [1, 256], strides = [1, 1]} : vector<4x256xf32> to vector<1x256xf32>
    %322 = vector.broadcast %320 : vector<4x1xf32> to vector<4x256xf32>
    %323 = vector.broadcast %321 : vector<1x256xf32> to vector<4x256xf32>
    %324 = arith.mulf %322, %323 : vector<4x256xf32>
    %325 = arith.addf %319, %324 : vector<4x256xf32>
    %326 = vector.extract_strided_slice %307 {offsets = [0, 3], sizes = [4, 1], strides = [1, 1]} : vector<4x4xf32> to vector<4x1xf32>
    %327 = vector.extract_strided_slice %305 {offsets = [3, 0], sizes = [1, 256], strides = [1, 1]} : vector<4x256xf32> to vector<1x256xf32>
    %328 = vector.broadcast %326 : vector<4x1xf32> to vector<4x256xf32>
    %329 = vector.broadcast %327 : vector<1x256xf32> to vector<4x256xf32>
    %330 = arith.mulf %328, %329 : vector<4x256xf32>
    %331 = arith.addf %325, %330 : vector<4x256xf32>
    %c0_65 = arith.constant 0 : index
    %c144_66 = arith.constant 144 : index
    %332 = vector.load %arg9[%c0_65, %c144_66] : memref<4x512xf32, #tpu.memory_space<vmem>>, vector<4x256xf32>
    %c7_67 = arith.constant 7 : index
    %c0_68 = arith.constant 0 : index
    %c0_69 = arith.constant 0 : index
    %333 = vector.load %arg4[%c7_67, %c0_68, %c0_69] : memref<9x4x4xf32, #tpu.memory_space<vmem>>, vector<1x4x4xf32>
    %334 = vector.shape_cast %333 : vector<1x4x4xf32> to vector<4x4xf32>
    %335 = vector.extract_strided_slice %334 {offsets = [0, 0], sizes = [4, 1], strides = [1, 1]} : vector<4x4xf32> to vector<4x1xf32>
    %336 = vector.extract_strided_slice %332 {offsets = [0, 0], sizes = [1, 256], strides = [1, 1]} : vector<4x256xf32> to vector<1x256xf32>
    %337 = vector.broadcast %335 : vector<4x1xf32> to vector<4x256xf32>
    %338 = vector.broadcast %336 : vector<1x256xf32> to vector<4x256xf32>
    %339 = arith.mulf %337, %338 : vector<4x256xf32>
    %340 = arith.addf %331, %339 : vector<4x256xf32>
    %341 = vector.extract_strided_slice %334 {offsets = [0, 1], sizes = [4, 1], strides = [1, 1]} : vector<4x4xf32> to vector<4x1xf32>
    %342 = vector.extract_strided_slice %332 {offsets = [1, 0], sizes = [1, 256], strides = [1, 1]} : vector<4x256xf32> to vector<1x256xf32>
    %343 = vector.broadcast %341 : vector<4x1xf32> to vector<4x256xf32>
    %344 = vector.broadcast %342 : vector<1x256xf32> to vector<4x256xf32>
    %345 = arith.mulf %343, %344 : vector<4x256xf32>
    %346 = arith.addf %340, %345 : vector<4x256xf32>
    %347 = vector.extract_strided_slice %334 {offsets = [0, 2], sizes = [4, 1], strides = [1, 1]} : vector<4x4xf32> to vector<4x1xf32>
    %348 = vector.extract_strided_slice %332 {offsets = [2, 0], sizes = [1, 256], strides = [1, 1]} : vector<4x256xf32> to vector<1x256xf32>
    %349 = vector.broadcast %347 : vector<4x1xf32> to vector<4x256xf32>
    %350 = vector.broadcast %348 : vector<1x256xf32> to vector<4x256xf32>
    %351 = arith.mulf %349, %350 : vector<4x256xf32>
    %352 = arith.addf %346, %351 : vector<4x256xf32>
    %353 = vector.extract_strided_slice %334 {offsets = [0, 3], sizes = [4, 1], strides = [1, 1]} : vector<4x4xf32> to vector<4x1xf32>
    %354 = vector.extract_strided_slice %332 {offsets = [3, 0], sizes = [1, 256], strides = [1, 1]} : vector<4x256xf32> to vector<1x256xf32>
    %355 = vector.broadcast %353 : vector<4x1xf32> to vector<4x256xf32>
    %356 = vector.broadcast %354 : vector<1x256xf32> to vector<4x256xf32>
    %357 = arith.mulf %355, %356 : vector<4x256xf32>
    %358 = arith.addf %352, %357 : vector<4x256xf32>
    %359 = vector.broadcast %8 : vector<4x1xf32> to vector<4x256xf32>
    %360 = arith.addf %359, %358 : vector<4x256xf32>
    %c0_70 = arith.constant 0 : index
    %c111_71 = arith.constant 111 : index
    %361 = vector.load %arg9[%c0_70, %c111_71] : memref<4x512xf32, #tpu.memory_space<vmem>>, vector<4x256xf32>
    %c0_72 = arith.constant 0 : index
    %c0_73 = arith.constant 0 : index
    %c0_74 = arith.constant 0 : index
    %362 = vector.load %arg4[%c0_72, %c0_73, %c0_74] : memref<9x4x4xf32, #tpu.memory_space<vmem>>, vector<1x4x4xf32>
    %363 = vector.shape_cast %362 : vector<1x4x4xf32> to vector<4x4xf32>
    %364 = vector.extract_strided_slice %363 {offsets = [0, 0], sizes = [4, 1], strides = [1, 1]} : vector<4x4xf32> to vector<4x1xf32>
    %365 = vector.extract_strided_slice %361 {offsets = [0, 0], sizes = [1, 256], strides = [1, 1]} : vector<4x256xf32> to vector<1x256xf32>
    %366 = vector.broadcast %364 : vector<4x1xf32> to vector<4x256xf32>
    %367 = vector.broadcast %365 : vector<1x256xf32> to vector<4x256xf32>
    %368 = arith.mulf %366, %367 : vector<4x256xf32>
    %369 = vector.extract_strided_slice %363 {offsets = [0, 1], sizes = [4, 1], strides = [1, 1]} : vector<4x4xf32> to vector<4x1xf32>
    %370 = vector.extract_strided_slice %361 {offsets = [1, 0], sizes = [1, 256], strides = [1, 1]} : vector<4x256xf32> to vector<1x256xf32>
    %371 = vector.broadcast %369 : vector<4x1xf32> to vector<4x256xf32>
    %372 = vector.broadcast %370 : vector<1x256xf32> to vector<4x256xf32>
    %373 = arith.mulf %371, %372 : vector<4x256xf32>
    %374 = arith.addf %368, %373 : vector<4x256xf32>
    %375 = vector.extract_strided_slice %363 {offsets = [0, 2], sizes = [4, 1], strides = [1, 1]} : vector<4x4xf32> to vector<4x1xf32>
    %376 = vector.extract_strided_slice %361 {offsets = [2, 0], sizes = [1, 256], strides = [1, 1]} : vector<4x256xf32> to vector<1x256xf32>
    %377 = vector.broadcast %375 : vector<4x1xf32> to vector<4x256xf32>
    %378 = vector.broadcast %376 : vector<1x256xf32> to vector<4x256xf32>
    %379 = arith.mulf %377, %378 : vector<4x256xf32>
    %380 = arith.addf %374, %379 : vector<4x256xf32>
    %381 = vector.extract_strided_slice %363 {offsets = [0, 3], sizes = [4, 1], strides = [1, 1]} : vector<4x4xf32> to vector<4x1xf32>
    %382 = vector.extract_strided_slice %361 {offsets = [3, 0], sizes = [1, 256], strides = [1, 1]} : vector<4x256xf32> to vector<1x256xf32>
    %383 = vector.broadcast %381 : vector<4x1xf32> to vector<4x256xf32>
    %384 = vector.broadcast %382 : vector<1x256xf32> to vector<4x256xf32>
    %385 = arith.mulf %383, %384 : vector<4x256xf32>
    %386 = arith.addf %380, %385 : vector<4x256xf32>
    %c0_75 = arith.constant 0 : index
    %c127_76 = arith.constant 127 : index
    %387 = vector.load %arg9[%c0_75, %c127_76] : memref<4x512xf32, #tpu.memory_space<vmem>>, vector<4x256xf32>
    %c3_77 = arith.constant 3 : index
    %c0_78 = arith.constant 0 : index
    %c0_79 = arith.constant 0 : index
    %388 = vector.load %arg4[%c3_77, %c0_78, %c0_79] : memref<9x4x4xf32, #tpu.memory_space<vmem>>, vector<1x4x4xf32>
    %389 = vector.shape_cast %388 : vector<1x4x4xf32> to vector<4x4xf32>
    %390 = vector.extract_strided_slice %389 {offsets = [0, 0], sizes = [4, 1], strides = [1, 1]} : vector<4x4xf32> to vector<4x1xf32>
    %391 = vector.extract_strided_slice %387 {offsets = [0, 0], sizes = [1, 256], strides = [1, 1]} : vector<4x256xf32> to vector<1x256xf32>
    %392 = vector.broadcast %390 : vector<4x1xf32> to vector<4x256xf32>
    %393 = vector.broadcast %391 : vector<1x256xf32> to vector<4x256xf32>
    %394 = arith.mulf %392, %393 : vector<4x256xf32>
    %395 = arith.addf %386, %394 : vector<4x256xf32>
    %396 = vector.extract_strided_slice %389 {offsets = [0, 1], sizes = [4, 1], strides = [1, 1]} : vector<4x4xf32> to vector<4x1xf32>
    %397 = vector.extract_strided_slice %387 {offsets = [1, 0], sizes = [1, 256], strides = [1, 1]} : vector<4x256xf32> to vector<1x256xf32>
    %398 = vector.broadcast %396 : vector<4x1xf32> to vector<4x256xf32>
    %399 = vector.broadcast %397 : vector<1x256xf32> to vector<4x256xf32>
    %400 = arith.mulf %398, %399 : vector<4x256xf32>
    %401 = arith.addf %395, %400 : vector<4x256xf32>
    %402 = vector.extract_strided_slice %389 {offsets = [0, 2], sizes = [4, 1], strides = [1, 1]} : vector<4x4xf32> to vector<4x1xf32>
    %403 = vector.extract_strided_slice %387 {offsets = [2, 0], sizes = [1, 256], strides = [1, 1]} : vector<4x256xf32> to vector<1x256xf32>
    %404 = vector.broadcast %402 : vector<4x1xf32> to vector<4x256xf32>
    %405 = vector.broadcast %403 : vector<1x256xf32> to vector<4x256xf32>
    %406 = arith.mulf %404, %405 : vector<4x256xf32>
    %407 = arith.addf %401, %406 : vector<4x256xf32>
    %408 = vector.extract_strided_slice %389 {offsets = [0, 3], sizes = [4, 1], strides = [1, 1]} : vector<4x4xf32> to vector<4x1xf32>
    %409 = vector.extract_strided_slice %387 {offsets = [3, 0], sizes = [1, 256], strides = [1, 1]} : vector<4x256xf32> to vector<1x256xf32>
    %410 = vector.broadcast %408 : vector<4x1xf32> to vector<4x256xf32>
    %411 = vector.broadcast %409 : vector<1x256xf32> to vector<4x256xf32>
    %412 = arith.mulf %410, %411 : vector<4x256xf32>
    %413 = arith.addf %407, %412 : vector<4x256xf32>
    %c0_80 = arith.constant 0 : index
    %c143_81 = arith.constant 143 : index
    %414 = vector.load %arg9[%c0_80, %c143_81] : memref<4x512xf32, #tpu.memory_space<vmem>>, vector<4x256xf32>
    %c6_82 = arith.constant 6 : index
    %c0_83 = arith.constant 0 : index
    %c0_84 = arith.constant 0 : index
    %415 = vector.load %arg4[%c6_82, %c0_83, %c0_84] : memref<9x4x4xf32, #tpu.memory_space<vmem>>, vector<1x4x4xf32>
    %416 = vector.shape_cast %415 : vector<1x4x4xf32> to vector<4x4xf32>
    %417 = vector.extract_strided_slice %416 {offsets = [0, 0], sizes = [4, 1], strides = [1, 1]} : vector<4x4xf32> to vector<4x1xf32>
    %418 = vector.extract_strided_slice %414 {offsets = [0, 0], sizes = [1, 256], strides = [1, 1]} : vector<4x256xf32> to vector<1x256xf32>
    %419 = vector.broadcast %417 : vector<4x1xf32> to vector<4x256xf32>
    %420 = vector.broadcast %418 : vector<1x256xf32> to vector<4x256xf32>
    %421 = arith.mulf %419, %420 : vector<4x256xf32>
    %422 = arith.addf %413, %421 : vector<4x256xf32>
    %423 = vector.extract_strided_slice %416 {offsets = [0, 1], sizes = [4, 1], strides = [1, 1]} : vector<4x4xf32> to vector<4x1xf32>
    %424 = vector.extract_strided_slice %414 {offsets = [1, 0], sizes = [1, 256], strides = [1, 1]} : vector<4x256xf32> to vector<1x256xf32>
    %425 = vector.broadcast %423 : vector<4x1xf32> to vector<4x256xf32>
    %426 = vector.broadcast %424 : vector<1x256xf32> to vector<4x256xf32>
    %427 = arith.mulf %425, %426 : vector<4x256xf32>
    %428 = arith.addf %422, %427 : vector<4x256xf32>
    %429 = vector.extract_strided_slice %416 {offsets = [0, 2], sizes = [4, 1], strides = [1, 1]} : vector<4x4xf32> to vector<4x1xf32>
    %430 = vector.extract_strided_slice %414 {offsets = [2, 0], sizes = [1, 256], strides = [1, 1]} : vector<4x256xf32> to vector<1x256xf32>
    %431 = vector.broadcast %429 : vector<4x1xf32> to vector<4x256xf32>
    %432 = vector.broadcast %430 : vector<1x256xf32> to vector<4x256xf32>
    %433 = arith.mulf %431, %432 : vector<4x256xf32>
    %434 = arith.addf %428, %433 : vector<4x256xf32>
    %435 = vector.extract_strided_slice %416 {offsets = [0, 3], sizes = [4, 1], strides = [1, 1]} : vector<4x4xf32> to vector<4x1xf32>
    %436 = vector.extract_strided_slice %414 {offsets = [3, 0], sizes = [1, 256], strides = [1, 1]} : vector<4x256xf32> to vector<1x256xf32>
    %437 = vector.broadcast %435 : vector<4x1xf32> to vector<4x256xf32>
    %438 = vector.broadcast %436 : vector<1x256xf32> to vector<4x256xf32>
    %439 = arith.mulf %437, %438 : vector<4x256xf32>
    %440 = arith.addf %434, %439 : vector<4x256xf32>
    %441 = vector.broadcast %5 : vector<1x256xf32> to vector<4x256xf32>
    %442 = arith.mulf %441, %440 : vector<4x256xf32>
    %443 = arith.addf %360, %442 : vector<4x256xf32>
    %c0_85 = arith.constant 0 : index
    %c113_86 = arith.constant 113 : index
    %444 = vector.load %arg9[%c0_85, %c113_86] : memref<4x512xf32, #tpu.memory_space<vmem>>, vector<4x256xf32>
    %c2_87 = arith.constant 2 : index
    %c0_88 = arith.constant 0 : index
    %c0_89 = arith.constant 0 : index
    %445 = vector.load %arg4[%c2_87, %c0_88, %c0_89] : memref<9x4x4xf32, #tpu.memory_space<vmem>>, vector<1x4x4xf32>
    %446 = vector.shape_cast %445 : vector<1x4x4xf32> to vector<4x4xf32>
    %447 = vector.extract_strided_slice %446 {offsets = [0, 0], sizes = [4, 1], strides = [1, 1]} : vector<4x4xf32> to vector<4x1xf32>
    %448 = vector.extract_strided_slice %444 {offsets = [0, 0], sizes = [1, 256], strides = [1, 1]} : vector<4x256xf32> to vector<1x256xf32>
    %449 = vector.broadcast %447 : vector<4x1xf32> to vector<4x256xf32>
    %450 = vector.broadcast %448 : vector<1x256xf32> to vector<4x256xf32>
    %451 = arith.mulf %449, %450 : vector<4x256xf32>
    %452 = vector.extract_strided_slice %446 {offsets = [0, 1], sizes = [4, 1], strides = [1, 1]} : vector<4x4xf32> to vector<4x1xf32>
    %453 = vector.extract_strided_slice %444 {offsets = [1, 0], sizes = [1, 256], strides = [1, 1]} : vector<4x256xf32> to vector<1x256xf32>
    %454 = vector.broadcast %452 : vector<4x1xf32> to vector<4x256xf32>
    %455 = vector.broadcast %453 : vector<1x256xf32> to vector<4x256xf32>
    %456 = arith.mulf %454, %455 : vector<4x256xf32>
    %457 = arith.addf %451, %456 : vector<4x256xf32>
    %458 = vector.extract_strided_slice %446 {offsets = [0, 2], sizes = [4, 1], strides = [1, 1]} : vector<4x4xf32> to vector<4x1xf32>
    %459 = vector.extract_strided_slice %444 {offsets = [2, 0], sizes = [1, 256], strides = [1, 1]} : vector<4x256xf32> to vector<1x256xf32>
    %460 = vector.broadcast %458 : vector<4x1xf32> to vector<4x256xf32>
    %461 = vector.broadcast %459 : vector<1x256xf32> to vector<4x256xf32>
    %462 = arith.mulf %460, %461 : vector<4x256xf32>
    %463 = arith.addf %457, %462 : vector<4x256xf32>
    %464 = vector.extract_strided_slice %446 {offsets = [0, 3], sizes = [4, 1], strides = [1, 1]} : vector<4x4xf32> to vector<4x1xf32>
    %465 = vector.extract_strided_slice %444 {offsets = [3, 0], sizes = [1, 256], strides = [1, 1]} : vector<4x256xf32> to vector<1x256xf32>
    %466 = vector.broadcast %464 : vector<4x1xf32> to vector<4x256xf32>
    %467 = vector.broadcast %465 : vector<1x256xf32> to vector<4x256xf32>
    %468 = arith.mulf %466, %467 : vector<4x256xf32>
    %469 = arith.addf %463, %468 : vector<4x256xf32>
    %c0_90 = arith.constant 0 : index
    %c129_91 = arith.constant 129 : index
    %470 = vector.load %arg9[%c0_90, %c129_91] : memref<4x512xf32, #tpu.memory_space<vmem>>, vector<4x256xf32>
    %c5_92 = arith.constant 5 : index
    %c0_93 = arith.constant 0 : index
    %c0_94 = arith.constant 0 : index
    %471 = vector.load %arg4[%c5_92, %c0_93, %c0_94] : memref<9x4x4xf32, #tpu.memory_space<vmem>>, vector<1x4x4xf32>
    %472 = vector.shape_cast %471 : vector<1x4x4xf32> to vector<4x4xf32>
    %473 = vector.extract_strided_slice %472 {offsets = [0, 0], sizes = [4, 1], strides = [1, 1]} : vector<4x4xf32> to vector<4x1xf32>
    %474 = vector.extract_strided_slice %470 {offsets = [0, 0], sizes = [1, 256], strides = [1, 1]} : vector<4x256xf32> to vector<1x256xf32>
    %475 = vector.broadcast %473 : vector<4x1xf32> to vector<4x256xf32>
    %476 = vector.broadcast %474 : vector<1x256xf32> to vector<4x256xf32>
    %477 = arith.mulf %475, %476 : vector<4x256xf32>
    %478 = arith.addf %469, %477 : vector<4x256xf32>
    %479 = vector.extract_strided_slice %472 {offsets = [0, 1], sizes = [4, 1], strides = [1, 1]} : vector<4x4xf32> to vector<4x1xf32>
    %480 = vector.extract_strided_slice %470 {offsets = [1, 0], sizes = [1, 256], strides = [1, 1]} : vector<4x256xf32> to vector<1x256xf32>
    %481 = vector.broadcast %479 : vector<4x1xf32> to vector<4x256xf32>
    %482 = vector.broadcast %480 : vector<1x256xf32> to vector<4x256xf32>
    %483 = arith.mulf %481, %482 : vector<4x256xf32>
    %484 = arith.addf %478, %483 : vector<4x256xf32>
    %485 = vector.extract_strided_slice %472 {offsets = [0, 2], sizes = [4, 1], strides = [1, 1]} : vector<4x4xf32> to vector<4x1xf32>
    %486 = vector.extract_strided_slice %470 {offsets = [2, 0], sizes = [1, 256], strides = [1, 1]} : vector<4x256xf32> to vector<1x256xf32>
    %487 = vector.broadcast %485 : vector<4x1xf32> to vector<4x256xf32>
    %488 = vector.broadcast %486 : vector<1x256xf32> to vector<4x256xf32>
    %489 = arith.mulf %487, %488 : vector<4x256xf32>
    %490 = arith.addf %484, %489 : vector<4x256xf32>
    %491 = vector.extract_strided_slice %472 {offsets = [0, 3], sizes = [4, 1], strides = [1, 1]} : vector<4x4xf32> to vector<4x1xf32>
    %492 = vector.extract_strided_slice %470 {offsets = [3, 0], sizes = [1, 256], strides = [1, 1]} : vector<4x256xf32> to vector<1x256xf32>
    %493 = vector.broadcast %491 : vector<4x1xf32> to vector<4x256xf32>
    %494 = vector.broadcast %492 : vector<1x256xf32> to vector<4x256xf32>
    %495 = arith.mulf %493, %494 : vector<4x256xf32>
    %496 = arith.addf %490, %495 : vector<4x256xf32>
    %c0_95 = arith.constant 0 : index
    %c145_96 = arith.constant 145 : index
    %497 = vector.load %arg9[%c0_95, %c145_96] : memref<4x512xf32, #tpu.memory_space<vmem>>, vector<4x256xf32>
    %c8_97 = arith.constant 8 : index
    %c0_98 = arith.constant 0 : index
    %c0_99 = arith.constant 0 : index
    %498 = vector.load %arg4[%c8_97, %c0_98, %c0_99] : memref<9x4x4xf32, #tpu.memory_space<vmem>>, vector<1x4x4xf32>
    %499 = vector.shape_cast %498 : vector<1x4x4xf32> to vector<4x4xf32>
    %500 = vector.extract_strided_slice %499 {offsets = [0, 0], sizes = [4, 1], strides = [1, 1]} : vector<4x4xf32> to vector<4x1xf32>
    %501 = vector.extract_strided_slice %497 {offsets = [0, 0], sizes = [1, 256], strides = [1, 1]} : vector<4x256xf32> to vector<1x256xf32>
    %502 = vector.broadcast %500 : vector<4x1xf32> to vector<4x256xf32>
    %503 = vector.broadcast %501 : vector<1x256xf32> to vector<4x256xf32>
    %504 = arith.mulf %502, %503 : vector<4x256xf32>
    %505 = arith.addf %496, %504 : vector<4x256xf32>
    %506 = vector.extract_strided_slice %499 {offsets = [0, 1], sizes = [4, 1], strides = [1, 1]} : vector<4x4xf32> to vector<4x1xf32>
    %507 = vector.extract_strided_slice %497 {offsets = [1, 0], sizes = [1, 256], strides = [1, 1]} : vector<4x256xf32> to vector<1x256xf32>
    %508 = vector.broadcast %506 : vector<4x1xf32> to vector<4x256xf32>
    %509 = vector.broadcast %507 : vector<1x256xf32> to vector<4x256xf32>
    %510 = arith.mulf %508, %509 : vector<4x256xf32>
    %511 = arith.addf %505, %510 : vector<4x256xf32>
    %512 = vector.extract_strided_slice %499 {offsets = [0, 2], sizes = [4, 1], strides = [1, 1]} : vector<4x4xf32> to vector<4x1xf32>
    %513 = vector.extract_strided_slice %497 {offsets = [2, 0], sizes = [1, 256], strides = [1, 1]} : vector<4x256xf32> to vector<1x256xf32>
    %514 = vector.broadcast %512 : vector<4x1xf32> to vector<4x256xf32>
    %515 = vector.broadcast %513 : vector<1x256xf32> to vector<4x256xf32>
    %516 = arith.mulf %514, %515 : vector<4x256xf32>
    %517 = arith.addf %511, %516 : vector<4x256xf32>
    %518 = vector.extract_strided_slice %499 {offsets = [0, 3], sizes = [4, 1], strides = [1, 1]} : vector<4x4xf32> to vector<4x1xf32>
    %519 = vector.extract_strided_slice %497 {offsets = [3, 0], sizes = [1, 256], strides = [1, 1]} : vector<4x256xf32> to vector<1x256xf32>
    %520 = vector.broadcast %518 : vector<4x1xf32> to vector<4x256xf32>
    %521 = vector.broadcast %519 : vector<1x256xf32> to vector<4x256xf32>
    %522 = arith.mulf %520, %521 : vector<4x256xf32>
    %523 = arith.addf %517, %522 : vector<4x256xf32>
    %524 = vector.broadcast %6 : vector<1x256xf32> to vector<4x256xf32>
    %525 = arith.mulf %524, %523 : vector<4x256xf32>
    %526 = arith.addf %443, %525 : vector<4x256xf32>
    %cst_100 = arith.constant dense<0.000000e+00> : vector<4xf32>
    %527 = vector.multi_reduction <add>, %526, %cst_100 [1] : vector<4x256xf32> to vector<4xf32>
    %528 = vector.shape_cast %527 : vector<4xf32> to vector<4x1xf32>
    %cst_101 = arith.constant 2.560000e+02 : f32
    %529 = vector.broadcast %cst_101 : f32 to vector<4x1xf32>
    %530 = arith.divf %528, %529 : vector<4x1xf32>
    %531 = vector.broadcast %530 : vector<4x1xf32> to vector<4x256xf32>
    %532 = arith.subf %526, %531 : vector<4x256xf32>
    %533 = arith.mulf %532, %532 : vector<4x256xf32>
    %cst_102 = arith.constant dense<0.000000e+00> : vector<4xf32>
    %534 = vector.multi_reduction <add>, %533, %cst_102 [1] : vector<4x256xf32> to vector<4xf32>
    %535 = vector.shape_cast %534 : vector<4xf32> to vector<4x1xf32>
    %cst_103 = arith.constant 2.560000e+02 : f32
    %536 = vector.broadcast %cst_103 : f32 to vector<4x1xf32>
    %537 = arith.divf %535, %536 : vector<4x1xf32>
    %cst_104 = arith.constant 9.99999974E-6 : f32
    %538 = vector.broadcast %cst_104 : f32 to vector<4x1xf32>
    %539 = arith.addf %537, %538 : vector<4x1xf32>
    %540 = math.rsqrt %539 : vector<4x1xf32>
    %541 = vector.broadcast %540 : vector<4x1xf32> to vector<4x256xf32>
    %542 = arith.mulf %532, %541 : vector<4x256xf32>
    %c0_105 = arith.constant 0 : index
    %c128_106 = arith.constant 128 : index
    %543 = vector.load %arg8[%c0_105, %c128_106] : memref<4x512xf32, #tpu.memory_space<vmem>>, vector<4x256xf32>
    %544 = arith.addf %543, %542 : vector<4x256xf32>
    %c0_107 = arith.constant 0 : index
    %c0_108 = arith.constant 0 : index
    %c0_109 = arith.constant 0 : index
    %545 = vector.load %arg7[%c0_107, %c0_108, %c0_109] : memref<1x4x256xf32, #tpu.memory_space<vmem>>, vector<1x4x256xf32>
    %546 = vector.shape_cast %545 : vector<1x4x256xf32> to vector<4x256xf32>
    %547 = vector.shape_cast %544 : vector<4x256xf32> to vector<1x4x256xf32>
    tpu.vector_store %arg7[%c0_107, %c0_108, %c0_109], %547 {strides = array<i32>} : memref<1x4x256xf32, #tpu.memory_space<vmem>>, vector<1x4x256xf32>,
    return
  }
  func.func @transform_0(%arg0: i32) -> (i32, i32, i32) {
    %c0_i32 = arith.constant 0 : i32
    %c0_i32_0 = arith.constant 0 : i32
    %c0_i32_1 = arith.constant 0 : i32
    return %arg0, %c0_i32, %c0_i32_0 : i32, i32, i32
  }
  func.func @transform_1(%arg0: i32) -> (i32, i32, i32) {
    %c0_i32 = arith.constant 0 : i32
    %c0_i32_0 = arith.constant 0 : i32
    %c0_i32_1 = arith.constant 0 : i32
    %c0_i32_2 = arith.constant 0 : i32
    return %c0_i32, %c0_i32_0, %c0_i32_1 : i32, i32, i32
  }
  func.func @transform_2(%arg0: i32) -> (i32, i32) {
    %c0_i32 = arith.constant 0 : i32
    %c0_i32_0 = arith.constant 0 : i32
    %c0_i32_1 = arith.constant 0 : i32
    return %c0_i32, %c0_i32_0 : i32, i32
  }
  func.func @transform_3(%arg0: i32) -> (i32, i32, i32) {
    %c0_i32 = arith.constant 0 : i32
    %c0_i32_0 = arith.constant 0 : i32
    %c0_i32_1 = arith.constant 0 : i32
    %c0_i32_2 = arith.constant 0 : i32
    return %c0_i32, %c0_i32_0, %c0_i32_1 : i32, i32, i32
  }
  func.func @transform_4(%arg0: i32) -> (i32, i32) {
    %c0_i32 = arith.constant 0 : i32
    %c0_i32_0 = arith.constant 0 : i32
    %c0_i32_1 = arith.constant 0 : i32
    return %c0_i32, %c0_i32_0 : i32, i32
  }
  func.func @transform_5(%arg0: i32) -> (i32, i32) {
    %c0_i32 = arith.constant 0 : i32
    %c0_i32_0 = arith.constant 0 : i32
    %c0_i32_1 = arith.constant 0 : i32
    return %c0_i32, %c0_i32_0 : i32, i32
  }
  func.func @transform_6(%arg0: i32) -> (i32, i32, i32) {
    %c0_i32 = arith.constant 0 : i32
    %c0_i32_0 = arith.constant 0 : i32
    %c0_i32_1 = arith.constant 0 : i32
    return %arg0, %c0_i32, %c0_i32_0 : i32, i32, i32
  }
}

</mosaic_0001>

<bundles_post_ra>
// kernel: residual_block.1
= control target key start
LH: loop header
LB: loop body
LE: loop exit
PB: predicated region body
PF: predicated region fallthrough
CT: control target
= control target key end

     0   :  { %s2757_s21 = smov 0   ;;  %s4158_s0 = inlined_call_operand.vmem [shape: f32[2,4,256], index: 0, kind: input, shape index: {}]   ;;  %s4159_s1 = inlined_call_operand.vmem [shape: f32[9,4,4], index: 1, kind: input, shape index: {}]   ;;  %s4160_s2 = inlined_call_operand.vmem [shape: f32[4,1], index: 2, kind: input, shape index: {}]   ;;  %s4161_s3 = inlined_call_operand.vmem [shape: f32[9,4,4], index: 3, kind: input, shape index: {}]   ;;  %s4162_s4 = inlined_call_operand.vmem [shape: f32[4,1], index: 4, kind: input, shape index: {}]   ;;  %s4163_s5 = inlined_call_operand.vmem [shape: f32[2,256], index: 5, kind: input, shape index: {}]   ;;  %s4164_s6 = inlined_call_operand.vmem [shape: f32[2,4,256], index: 6, kind: output, shape index: {}]  }
   0x1 LB: > { %s2588_s22 = sadd.s32 4294967295, %s2710_s21   ;;  %p2592_p0 = scmp.ge.s32.totalorder %s2710_s21, 1  ;;  %s2710_s21 = sphi %s2757_s21, %s16_s21  }
   0x2   : > { %p212_p1 = scmp.lt.s32.totalorder %s2710_s21, 3 }
   0x4   : > { %p213_p2 = pnand %p2592_p0, %p212_p1 }
   0x6   : > { %216 = sbr.rel (%p213_p2) target bundleno = 2438 (0x986), region = 44 }
   0xd   : > { %v2601_v0 = vld [vmem:[%s4159_s1 + $0xc] sm:$0xf]  ;;  %v2604_v1 = vld [vmem:[%s4159_s1 + $0x14] sm:$0xf]  ;;  %v4165_v2 = vmov 1   ;;  %v4169_v3 = vmov 0   ;;  %v274_v14 = vlaneseq }
   0xe   : > { %2636 = vset.pattern.permute.xlu0 %v4165_v2  ;;  %2637 = vset.pattern.permute.xlu1 %v4169_v3  ;;  %p242_p3 = scmp.lt.s32.totalorder %s2588_s22, 1  ;;  %v2714_v4 = vmov 0.0   ;;  %v4167_v5 = vmov 3   ;;  %v4171_v6 = vmov 2   ;;  %v2602_v8 = vld [vmem:[%s4159_s1 + $0x18] sm:$0xf] }
   0xf   : > { %856 = vperm.xlu0 %2636, %v2601_v0   ;;  %1110 = vperm.xlu1 %2637, %v2604_v1   ;;  %252 = vst [vmem:[#allocation2] sm:$0xf] %v2714_v4  ;;  %253 = vst [vmem:[#allocation2 + $0xc] sm:$0xf] %v2714_v4  ;;  %v789_v9 = vld [vmem:[%s4159_s1] sm:$0xf] }
  0x10   : > { %254 = vst [vmem:[#allocation3] sm:$0xf] %v2714_v4  ;;  %255 = vst [vmem:[#allocation3 + $0xc] sm:$0xf] %v2714_v4  ;;  %s4369_s22 = smov (!%p242_p3, %s2588_s22), 1  ;;  %v2817_v16 = vshrl.u32 %v274_v14, 7 }
  0x11   : > { %s2616_s27 = sshll.u32 %s4369_s22, 3  ;;  %v2605_v10 = vld [vmem:[%s4159_s1 + $0x20] sm:$0xf]  ;;  %v2603_v11 = vld [vmem:[%s4159_s1 + $0x8] sm:$0xf]  ;;  %s2717_s15 = smov 112  }
  0x12   : > { %s246_s30 = scalar_lea.vmem %s4158_s0, %s2616_s27  ;;  %v2820_v17 = vsub.s32 0, %v2817_v16  ;;  %v2823_v18 = vsub.s32 4, %v2817_v16  ;;  %v2830_v21 = vsub.s32 1, %v2817_v16  ;;  %v2851_v30 = vsub.s32 5, %v2817_v16  ;;  %s2718_s16 = smov 96  }
  0x13   : > { %2640 = vset.pattern.permute.xlu0 %v4167_v5  ;;  %2638 = vset.pattern.permute.xlu1 %v4171_v6  ;;  %v2783_v7 = vld [vmem:[%s246_s30] sm:$0xff]  ;;  %v2866_v38 = vsub.s32 2, %v2817_v16  ;;  %v2897_v52 = vsub.s32 6, %v2817_v16  ;;  %vm450_vm0 = vcmask 916480   ;;  %vm619_vm1 = vcmask 785408   ;;  %s2719_s23 = smov 17   ;;  %s251_s13 = scalar_lea.vmem %s4164_s6, %s2616_s27 }
  0x14   : > { %904 = vperm.xlu0 %2640, %v2601_v0   ;;  %880 = vperm.xlu1 %2638, %v2601_v0   ;;  %262 = vst [vmem:[#allocation2 + $0x4] sm:$0xff] %v2783_v7  ;;  %4249 = vst [vmem:[#allocation4_spill] sm:$0xff] %v2820_v17  ;;  %v587_v40 = vrot.slane %v2783_v7, %v2823_v18  ;;  %v583_v44 = vrot.slane %v2783_v7, %v2820_v17  ;;  %s2720_s24 = smov 15   ;;  %vm1046_vm2 = vcmask 138240   ;;  %vm1324_vm3 = vcmask 121856   ;;  %s2721_s10 = smov 16  }
  0x15   : > { %4250 = vst [vmem:[#allocation5_spill] sm:$0xff] %v2823_v18  ;;  %4251 = vst [vmem:[#allocation6_spill] sm:$0xff] %v2830_v21  ;;  %v639_v62 = vrot.slane %v2783_v7, %v2851_v30  ;;  %v635_v63 = vrot.slane %v2783_v7, %v2830_v21  ;;  %vm1353_vm4 = vcmask 130048   ;;  %vm1358_vm5 = vcmask 1043456  }
  0x16   : > { %4253 = vst [vmem:[#allocation8_spill] sm:$0xff] %v2851_v30  ;;  %4255 = vst [vmem:[#allocation10_spill] sm:$0xff] %v2866_v38  ;;  %v2887_v47 = vrot.slane %v587_v40, %v2820_v17  ;;  %v2892_v50 = vrot.slane %v583_v44, %v2820_v17  ;;  %v2894_v51 = vld [vmem:[#allocation2 + $0xc] sm:$0xf]  ;;  %v686_v40 = vrot.slane %v2783_v7, %v2866_v38 }
  0x17   : > { %4260 = vst [vmem:[#allocation15_spill] sm:$0xff] %v2897_v52  ;;  %v591_v53 = vrot.slane %v2894_v51, %v2820_v17 }
  0x18   : > { %1182 = vperm.xlu0 %2640, %v2604_v1   ;;  %2639 = vset.pattern.permute.xlu1 %v4165_v2  ;;  %4258 = vst [vmem:[#allocation13_spill] sm:$0xff] %v2887_v47  ;;  %4259 = vst [vmem:[#allocation14_spill] sm:$0xff] %v2892_v50 }
  0x19   : > { %1134 = vperm.xlu1 %2639, %v2604_v1   ;;  %v2913_v60 = vrot.slane %v591_v53, %v2820_v17  ;;  %v694_v53 = vrot.slane %v2894_v51, %v2866_v38 }
  0x1b   : > { %v2827_v20 = vld [vmem:[#allocation2] sm:$0xff]  ;;  %v2838_v25 = vld [vmem:[#allocation2 + $0x8] sm:$0xf]  ;;  %4262 = vst [vmem:[#allocation17_spill] sm:$0xff] %v2913_v60 }
  0x1c   : > { %1003 = vperm.xlu0 %2640, %v2602_v8   ;;  %v281_v22 = vrot.slane %v2827_v20, %v2823_v18  ;;  %v277_v23 = vrot.slane %v2827_v20, %v2820_v17  ;;  %v311_v26 = vrot.slane %v2827_v20, %v2830_v21  ;;  %v285_v29 = vrot.slane %v2838_v25, %v2820_v17 }
  0x1d   : > { %2641 = vset.pattern.permute.xlu1 %v4171_v6  ;;  %v319_v33 = vrot.slane %v2838_v25, %v2830_v21  ;;  %v315_v37 = vrot.slane %v2827_v20, %v2851_v30  ;;  %v348_v45 = vrot.slane %v2827_v20, %v2866_v38  ;;  %v356_v57 = vrot.slane %v2838_v25, %v2866_v38 }
  0x1e   : > { %1158 = vperm.xlu1 %2641, %v2604_v1   ;;  %v2843_v27 = vrot.slane %v281_v22, %v2820_v17  ;;  %v2846_v28 = vrot.slane %v277_v23, %v2820_v17  ;;  %v2854_v32 = vrot.slane %v311_v26, %v2830_v21  ;;  %v2861_v36 = vrot.slane %v285_v29, %v2820_v17 }
  0x1f   : > { %v2871_v39 = vrot.slane %v319_v33, %v2830_v21  ;;  %v2878_v43 = vrot.slane %v315_v37, %v2830_v21  ;;  %v2906_v56 = vrot.slane %v348_v45, %v2866_v38  ;;  %v352_v58 = vrot.slane %v2827_v20, %v2897_v52 }
  0x20   : > { %819 = vperm.xlu0 %2640, %v789_v9   ;;  %4252 = vst [vmem:[#allocation7_spill] sm:$0xff] %v2843_v27  ;;  %4254 = vst [vmem:[#allocation9_spill] sm:$0xff] %v2861_v36  ;;  %v2927_v4 = vrot.slane %v356_v57, %v2866_v38  ;;  %v643_v23 = vrot.slane %v2894_v51, %v2830_v21  ;;  %v690_v37 = vrot.slane %v2783_v7, %v2897_v52 }
  0x21   : > { %4256 = vst [vmem:[#allocation11_spill] sm:$0xff] %v2871_v39  ;;  %4257 = vst [vmem:[#allocation12_spill] sm:$0xff] %v2878_v43  ;;  %v2984_v45 = vrot.slane %v686_v40, %v2866_v38  ;;  %v2997_v57 = vrot.slane %v694_v53, %v2866_v38 }
  0x22   : > { %2642 = vset.pattern.permute.xlu1 %v4169_v3  ;;  %4261 = vst [vmem:[#allocation16_spill] sm:$0xff] %v2906_v56  ;;  %v2981_v44 = vrot.slane %v690_v37, %v2866_v38 }
  0x23   : > { %931 = vperm.xlu1 %2642, %v2602_v8   ;;  %4271 = vst [vmem:[#allocation26_spill] sm:$0xff] %v2984_v45  ;;  %4272 = vst [vmem:[#allocation27_spill] sm:$0xff] %v2997_v57 }
  0x24   : > { %2651 = vset.pattern.permute.xlu0 %v4169_v3  ;;  %4270 = vst [vmem:[#allocation25_spill] sm:$0xff] %v2981_v44 }
  0x25   : > { %832 = vperm.xlu0 %2651, %v2601_v0   ;;  %v2923_v0 = vsub.s32 3, %v2817_v16 }
  0x27   : > { %2643 = vset.pattern.permute.xlu1 %v4165_v2  ;;  %4263 = vst [vmem:[#allocation18_spill] sm:$0xff] %v2923_v0  ;;  %v393_v33 = vrot.slane %v2838_v25, %v2923_v0 }
  0x28   : > { %955 = vperm.xlu1 %2643, %v2602_v8  }
  0x29   : > { %1209 = vperm.xlu0 %2651, %v2605_v10   ;;  %v2973_v25 = vrot.slane %v393_v33, %v2923_v0 }
  0x2c   : > { %2644 = vset.pattern.permute.xlu1 %v4171_v6 }
  0x2d   : > { %792 = vperm.xlu0 %2651, %v789_v9   ;;  %979 = vperm.xlu1 %2644, %v2602_v8   ;;  %v2930_v8 = vrot.slane %v352_v58, %v2866_v38 }
  0x2f   : > { %4264 = vst [vmem:[#allocation19_spill] sm:$0xff] %v2930_v8 }
  0x31   : > { %1070 = vperm.xlu0 %2651, %v2603_v11   ;;  %2645 = vset.pattern.permute.xlu1 %v4165_v2 }
  0x32   : > { %1233 = vperm.xlu1 %2645, %v2605_v10  }
  0x36   : > { %2646 = vset.pattern.permute.xlu1 %v4171_v6 }
  0x37   : > { %1257 = vperm.xlu1 %2646, %v2605_v10  }
  0x3b   : > { %2647 = vset.pattern.permute.xlu1 %v4167_v5 }
  0x3c   : > { %1281 = vperm.xlu1 %2647, %v2605_v10   ;;  %v2938_v10 = vrot.slane %v635_v63, %v2830_v21 }
  0x3e   : > { %4266 = vst [vmem:[#allocation21_spill] sm:$0xff] %v2938_v10 }
  0x40   : > { %2648 = vset.pattern.permute.xlu1 %v4165_v2 }
  0x41   : > { %799 = vperm.xlu1 %2648, %v789_v9  }
  0x45   : > { %2649 = vset.pattern.permute.xlu1 %v4171_v6 }
  0x46   : > { %809 = vperm.xlu1 %2649, %v789_v9   ;;  %v2935_v9 = vrot.slane %v639_v62, %v2830_v21  ;;  %v737_v62 = vrot.slane %v2783_v7, %v2923_v0 }
  0x48   : > { %4265 = vst [vmem:[#allocation20_spill] sm:$0xff] %v2935_v9 }
  0x4a   : > { %2650 = vset.pattern.permute.xlu1 %v4165_v2 }
  0x4b   : > { %1077 = vperm.xlu1 %2650, %v2603_v11  }
  0x4f   : > { %2652 = vset.pattern.permute.xlu1 %v4171_v6 }
  0x50   : > { %1087 = vperm.xlu1 %2652, %v2603_v11  }
  0x54   : > { %2653 = vset.pattern.permute.xlu1 %v4167_v5 }
  0x55   : > { %1097 = vperm.xlu1 %2653, %v2603_v11   ;;  %v2941_v11 = vsub.s32 7, %v2817_v16 }
  0x57   : > { %4267 = vst [vmem:[#allocation22_spill] sm:$0xff] %v2941_v11 }
  0x59   : > { %2654 = vset.pattern.permute.xlu1 %v4165_v2 }
  0x8e   : > { %v857_v12 = vpop.permute.xlu0 %856  ;;  %v1111_v46 = vpop.permute.xlu1 %1110 }
  0x8f   : > { %v859_v41 = vmul.f32 %v857_v12, %v2854_v32  ;;  %v861_v48 = vmul.f32 %v857_v12, %v2871_v39  ;;  %v860_v49 = vmul.f32 %v857_v12, %v2878_v43  ;;  %v1114_v54 = vmul.f32 %v1111_v46, %v2887_v47 }
  0x90   : > { %v1113_v55 = vmul.f32 %v1111_v46, %v2892_v50  ;;  %v1115_v1 = vmul.f32 %v1111_v46, %v2913_v60  ;;  %v385_v12 = vrot.slane %v2827_v20, %v2923_v0 }
  0x93   : > { %v2813_v13 = vpop.permute.xlu0 %904  ;;  %v881_v59 = vpop.permute.xlu1 %880 }
  0x94   : > { %v883_v61 = vmul.f32 %v881_v59, %v2906_v56  ;;  %v885_v14 = vmul.f32 %v881_v59, %v2927_v4  ;;  %v884_v22 = vmul.f32 %v881_v59, %v2930_v8  ;;  %v741_v59 = vrot.slane %v2783_v7, %v2941_v11 }
  0x96   : > { %v3010_v63 = vrot.slane %v741_v59, %v2923_v0 }
  0x97   : > { %v2815_v15 = vpop.permute.xlu0 %1182 }
  0x98   : > { %v1135_v26 = vpop.permute.xlu1 %1134  ;;  %4273 = vst [vmem:[#allocation28_spill] sm:$0xff] %v3010_v63  ;;  %v1186_v7 = vmul.f32 %v2815_v15, %v3010_v63 }
  0x99   : > { %v1138_v29 = vmul.f32 %v1135_v26, %v2935_v9  ;;  %v1137_v16 = vmul.f32 %v1135_v26, %v2938_v10 }
  0x9b   : > { %v2825_v19 = vpop.permute.xlu0 %1003 }
  0x9d   : > { %v1159_v46 = vpop.permute.xlu1 %1158 }
  0x9f   : > { %v2836_v24 = vpop.permute.xlu0 %819 }
  0xa2   : > { %v932_v58 = vpop.permute.xlu1 %931 }
  0xa4   : > { %v833_v31 = vpop.permute.xlu0 %832 }
  0xa5   : > { %v836_v34 = vmul.f32 %v833_v31, %v2843_v27  ;;  %v835_v35 = vmul.f32 %v833_v31, %v2846_v28  ;;  %v837_v42 = vmul.f32 %v833_v31, %v2861_v36  ;;  %v389_v31 = vrot.slane %v2827_v20, %v2941_v11 }
  0xa7   : > { %843 = vrot.lane.b32.xlu1 %v836_v34, %s2717_s15  ;;  %841 = vrot.lane.b32.xlu0 %v835_v35, %s2717_s15  ;;  %v2958_v34 = vrot.slane %v385_v12, %v2923_v0  ;;  %v2961_v35 = vrot.slane %v643_v23, %v2830_v21  ;;  %v2970_v20 = vrot.slane %v389_v31, %v2923_v0 }
  0xa8   : > { %v935_v12 = vmul.f32 %v932_v58, %v2887_v47  ;;  %v1210_v37 = vpop.permute.xlu0 %1209 }
  0xa9   : > { %4268 = vst [vmem:[#allocation23_spill] sm:$0xff] %v2958_v34  ;;  %4269 = vst [vmem:[#allocation24_spill] sm:$0xff] %v2961_v35  ;;  %v1213_v40 = vmul.f32 %v1210_v37, %v2887_v47 }
  0xab   : > { %865 = vrot.lane.b32.xlu1 %v859_v41, %s2717_s15  ;;  %845 = vrot.lane.b32.xlu0 %v837_v42, %s2717_s15  ;;  %v907_v41 = vmul.f32 %v2813_v13, %v2958_v34  ;;  %v1139_v42 = vmul.f32 %v1135_v26, %v2961_v35 }
  0xaf   : > { %869 = vrot.lane.b32.xlu1 %v861_v48, %s2717_s15  ;;  %867 = vrot.lane.b32.xlu0 %v860_v49, %s2717_s15  ;;  %v909_v48 = vmul.f32 %v2813_v13, %v2973_v25  ;;  %v908_v49 = vmul.f32 %v2813_v13, %v2970_v20  ;;  %v934_v13 = vmul.f32 %v932_v58, %v2892_v50 }
  0xb3   : > { %1121 = vrot.lane.b32.xlu1 %v1114_v54, %s2717_s15  ;;  %1119 = vrot.lane.b32.xlu0 %v1113_v55, %s2717_s15  ;;  %v1162_v54 = vmul.f32 %v1159_v46, %v2981_v44  ;;  %v1161_v55 = vmul.f32 %v1159_v46, %v2984_v45 }
  0xb7   : > { %889 = vrot.lane.b32.xlu1 %v883_v61, %s2717_s15  ;;  %1123 = vrot.lane.b32.xlu0 %v1115_v1, %s2717_s15  ;;  %v1163_v61 = vmul.f32 %v1159_v46, %v2997_v57  ;;  %v936_v1 = vmul.f32 %v932_v58, %v2913_v60  ;;  %v1214_v46 = vmul.f32 %v1210_v37, %v2913_v60 }
  0xbb   : > { %893 = vrot.lane.b32.xlu1 %v885_v14, %s2717_s15  ;;  %891 = vrot.lane.b32.xlu0 %v884_v22, %s2717_s15  ;;  %v3015_v14 = vrot.slane %v737_v62, %v2923_v0  ;;  %v745_v22 = vrot.slane %v2894_v51, %v2923_v0  ;;  %v1007_v62 = vmul.f32 %v2825_v19, %v3010_v63 }
  0xbd   : > { %4274 = vst [vmem:[#allocation29_spill] sm:$0xff] %v3015_v14  ;;  %v1185_v23 = vmul.f32 %v2815_v15, %v3015_v14  ;;  %v3026_v26 = vrot.slane %v745_v22, %v2923_v0 }
  0xbf   : > { %1145 = vrot.lane.b32.xlu1 %v1138_v29, %s2717_s15  ;;  %1143 = vrot.lane.b32.xlu0 %v1137_v16, %s2717_s15  ;;  %4275 = vst [vmem:[#allocation30_spill] sm:$0xff] %v3026_v26  ;;  %v956_v29 = vpop.permute.xlu1 %955  ;;  %v1187_v16 = vmul.f32 %v2815_v15, %v3026_v26 }
  0xc0   : > { %v958_v51 = vmul.f32 %v956_v29, %v2938_v10  ;;  %v960_v31 = vmul.f32 %v956_v29, %v2961_v35  ;;  %v959_v33 = vmul.f32 %v956_v29, %v2935_v9 }
  0xc3   : > { %913 = vrot.lane.b32.xlu1 %v907_v41, %s2717_s15  ;;  %1147 = vrot.lane.b32.xlu0 %v1139_v42, %s2717_s15  ;;  %v1212_v41 = vmul.f32 %v1210_v37, %v2892_v50  ;;  %v980_v42 = vpop.permute.xlu1 %979  ;;  %v2600_v37 = vld [vmem:[%s4159_s1 + $0x1c] sm:$0xf] }
  0xc4   : > { %v982_v15 = vmul.f32 %v980_v42, %v2984_v45 }
  0xc7   : > { %917 = vrot.lane.b32.xlu1 %v909_v48, %s2717_s15  ;;  %915 = vrot.lane.b32.xlu0 %v908_v49, %s2717_s15  ;;  %v984_v48 = vmul.f32 %v980_v42, %v2997_v57  ;;  %v983_v49 = vmul.f32 %v980_v42, %v2981_v44  ;;  %v1234_v53 = vpop.permute.xlu1 %1233 }
  0xc8   : > { %v1238_v59 = vmul.f32 %v1234_v53, %v2961_v35 }
  0xcb   : > { %1169 = vrot.lane.b32.xlu1 %v1162_v54, %s2717_s15  ;;  %1167 = vrot.lane.b32.xlu0 %v1161_v55, %s2717_s15  ;;  %v1237_v54 = vmul.f32 %v1234_v53, %v2935_v9  ;;  %v1236_v55 = vmul.f32 %v1234_v53, %v2938_v10  ;;  %v1258_v58 = vpop.permute.xlu1 %1257 }
  0xcc   : > { %v1260_v22 = vmul.f32 %v1258_v58, %v2984_v45  ;;  %v1262_v29 = vmul.f32 %v1258_v58, %v2997_v57 }
  0xcf   : > { %940 = vrot.lane.b32.xlu1 %v934_v13, %s2718_s16  ;;  %1171 = vrot.lane.b32.xlu0 %v1163_v61, %s2717_s15  ;;  %v1006_v13 = vmul.f32 %v2825_v19, %v3015_v14  ;;  %v1008_v61 = vmul.f32 %v2825_v19, %v3026_v26 }
  0xd3   : > { %944 = vrot.lane.b32.xlu1 %v936_v1, %s2718_s16  ;;  %942 = vrot.lane.b32.xlu0 %v935_v12, %s2718_s16  ;;  %v1282_v1 = vpop.permute.xlu1 %1281  ;;  %v1261_v12 = vmul.f32 %v1258_v58, %v2981_v44 }
  0xd4   : > { %v1286_v19 = vmul.f32 %v1282_v1, %v3026_v26 }
  0xd7   : > { %1193 = vrot.lane.b32.xlu1 %v1186_v7, %s2717_s15  ;;  %1191 = vrot.lane.b32.xlu0 %v1185_v23, %s2717_s15  ;;  %v1284_v7 = vmul.f32 %v1282_v1, %v3015_v14  ;;  %v3071_v23 = vpop.permute.xlu1 %799 }
  0xd8   : > { %v804_v0 = vmul.f32 %v3071_v23, %v2871_v39  ;;  %v802_v57 = vmul.f32 %v3071_v23, %v2854_v32  ;;  %v803_v14 = vmul.f32 %v3071_v23, %v2878_v43  ;;  %v822_v23 = vmul.f32 %v2836_v24, %v2958_v34 }
  0xdb   : > { %964 = vrot.lane.b32.xlu1 %v958_v51, %s2718_s16  ;;  %1195 = vrot.lane.b32.xlu0 %v1187_v16, %s2717_s15  ;;  %v1285_v51 = vmul.f32 %v1282_v1, %v3010_v63  ;;  %v3078_v16 = vpop.permute.xlu1 %809 }
  0xdc   : > { %v814_v26 = vmul.f32 %v3078_v16, %v2927_v4  ;;  %v812_v45 = vmul.f32 %v3078_v16, %v2906_v56  ;;  %v813_v47 = vmul.f32 %v3078_v16, %v2930_v8 }
  0xdf   : > { %968 = vrot.lane.b32.xlu1 %v960_v31, %s2718_s16  ;;  %966 = vrot.lane.b32.xlu0 %v959_v33, %s2718_s16  ;;  %v2599_v31 = vld [vmem:[%s4159_s1 + $0x10] sm:$0xf]  ;;  %v3085_v33 = vpop.permute.xlu1 %1077 }
  0xe0   : > { %v1081_v16 = vmul.f32 %v3085_v33, %v2878_v43 }
  0xe3   : > { %1220 = vrot.lane.b32.xlu1 %v1213_v40, %s2718_s16  ;;  %1218 = vrot.lane.b32.xlu0 %v1212_v41, %s2718_s16  ;;  %v793_v40 = vpop.permute.xlu0 %792  ;;  %v3092_v41 = vpop.permute.xlu1 %1087 }
  0xe4   : > { %v797_v17 = vmul.f32 %v793_v40, %v2861_v36  ;;  %v795_v44 = vmul.f32 %v793_v40, %v2846_v28  ;;  %v796_v10 = vmul.f32 %v793_v40, %v2843_v27 }
  0xe6   : > { %v807_v35 = vadd.f32 %v804_v0, %v797_v17  ;;  %v824_v17 = vmul.f32 %v2836_v24, %v2973_v25  ;;  %v805_v0 = vadd.f32 %v802_v57, %v795_v44 }
  0xe7   : > { %988 = vrot.lane.b32.xlu1 %v982_v15, %s2718_s16  ;;  %1222 = vrot.lane.b32.xlu0 %v1214_v46, %s2718_s16  ;;  %v3096_v42 = vpop.permute.xlu0 %1070  ;;  %v3098_v15 = vpop.permute.xlu1 %1097 }
  0xe8   : > { %v817_v9 = vadd.f32 %v814_v26, %v807_v35  ;;  %v1080_v35 = vmul.f32 %v3085_v33, %v2854_v32  ;;  %v823_v26 = vmul.f32 %v2836_v24, %v2970_v20  ;;  %v815_v40 = vadd.f32 %v812_v45, %v805_v0 }
  0xe9   : > { %v1073_v57 = vmul.f32 %v3096_v42, %v2846_v28  ;;  %v1082_v24 = vmul.f32 %v3085_v33, %v2871_v39  ;;  %v1091_v45 = vmul.f32 %v3092_v41, %v2930_v8  ;;  %v1092_v33 = vmul.f32 %v3092_v41, %v2927_v4 }
  0xea   : > { %v827_v44 = vadd.f32 %v824_v17, %v817_v9  ;;  %v825_v39 = vadd.f32 %v822_v23, %v815_v40 }
  0xeb   : > { %992 = vrot.lane.b32.xlu1 %v984_v48, %s2718_s16  ;;  %990 = vrot.lane.b32.xlu0 %v983_v49, %s2718_s16  ;;  %v1083_v43 = vadd.f32 %v1080_v35, %v1073_v57 }
  0xef   : > { %1244 = vrot.lane.b32.xlu1 %v1237_v54, %s2718_s16  ;;  %1242 = vrot.lane.b32.xlu0 %v1236_v55, %s2718_s16 }
  0xf3   : > { %1012 = vrot.lane.b32.xlu1 %v1006_v13, %s2718_s16  ;;  %1246 = vrot.lane.b32.xlu0 %v1238_v59, %s2718_s16 }
  0xf7   : > { %1016 = vrot.lane.b32.xlu1 %v1008_v61, %s2718_s16  ;;  %1014 = vrot.lane.b32.xlu0 %v1007_v62, %s2718_s16 }
  0xfb   : > { %1268 = vrot.lane.b32.xlu1 %v1261_v12, %s2718_s16  ;;  %1266 = vrot.lane.b32.xlu0 %v1260_v22, %s2718_s16 }
  0xff   : > { %1290 = vrot.lane.b32.xlu1 %v1284_v7, %s2718_s16  ;;  %1270 = vrot.lane.b32.xlu0 %v1262_v29, %s2718_s16 }
 0x103   : > { %1294 = vrot.lane.b32.xlu1 %v1286_v19, %s2718_s16  ;;  %1292 = vrot.lane.b32.xlu0 %v1285_v51, %s2718_s16 }
 0x107   : > { %420 = vperm.xlu0 %2651, %v2599_v31   ;;  %459 = vperm.xlu1 %2654, %v2599_v31  }
 0x10b   : > { %2655 = vset.pattern.permute.xlu1 %v4171_v6  ;;  %2656 = vset.pattern.permute.xlu0 %v4167_v5 }
 0x10c   : > { %496 = vperm.xlu1 %2655, %v2599_v31   ;;  %533 = vperm.xlu0 %2656, %v2599_v31  }
 0x110   : > { %2657 = vset.pattern.permute.xlu1 %v4169_v3  ;;  %2659 = vset.pattern.permute.xlu0 %v4171_v6 }
 0x111   : > { %575 = vperm.xlu1 %2657, %v2600_v37   ;;  %680 = vperm.xlu0 %2659, %v2600_v37  }
 0x115   : > { %2658 = vset.pattern.permute.xlu1 %v4165_v2  ;;  %2662 = vset.pattern.permute.xlu0 %v4165_v2 }
 0x116   : > { %629 = vperm.xlu1 %2658, %v2600_v37  }
 0x119   : > { %v3102_v46 = vpop.permute.xlu1 %843  ;;  %v3104_v48 = vpop.permute.xlu0 %841 }
 0x11a   : > { %2660 = vset.pattern.permute.xlu1 %v4167_v5 }
 0x11b   : > { %731 = vperm.xlu1 %2660, %v2600_v37  }
 0x11d   : > { %v3107_v49 = vpop.permute.xlu1 %865  ;;  %v3109_v53 = vpop.permute.xlu0 %845 }
 0x11e   : > { %v854_v9 = vadd.f32 %v3109_v53, %v827_v44 }
 0x11f   : > { %2661 = vset.pattern.permute.xlu1 %v4169_v3 }
 0x121   : > { %v3112_v54 = vpop.permute.xlu1 %869  ;;  %v3114_v55 = vpop.permute.xlu0 %867 }
 0x122   : > { %v878_v8 = vadd.f32 %v3112_v54, %v854_v9  ;;  %v871_v35 = vsel %vm450_vm0, %v3107_v49, %v3114_v55 }
 0x125   : > { %v3116_v58 = vpop.permute.xlu1 %1121  ;;  %v3118_v13 = vpop.permute.xlu0 %1119 }
 0x129   : > { %v3120_v59 = vpop.permute.xlu1 %889  ;;  %v3122_v61 = vpop.permute.xlu0 %1123 }
 0x12d   : > { %v3124_v62 = vpop.permute.xlu1 %893  ;;  %v3126_v1 = vpop.permute.xlu0 %891 }
 0x131   : > { %v3128_v12 = vpop.permute.xlu1 %1145  ;;  %v3130_v22 = vpop.permute.xlu0 %1143 }
 0x135   : > { %v3132_v7 = vpop.permute.xlu1 %913  ;;  %v3134_v29 = vpop.permute.xlu0 %1147 }
 0x139   : > { %v3136_v19 = vpop.permute.xlu1 %917  ;;  %v3138_v51 = vpop.permute.xlu0 %915 }
 0x13d   : > { %v3140_v31 = vpop.permute.xlu1 %1169  ;;  %v3142_v37 = vpop.permute.xlu0 %1167 }
 0x141   : > { %v3144_v2 = vpop.permute.xlu1 %940  ;;  %v3146_v5 = vpop.permute.xlu0 %1171 }
 0x145   : > { %v3148_v3 = vpop.permute.xlu1 %944  ;;  %v3150_v6 = vpop.permute.xlu0 %942 }
 0x149   : > { %v3152_v11 = vpop.permute.xlu1 %1193  ;;  %v3154_v52 = vpop.permute.xlu0 %1191 }
 0x14d   : > { %v3156_v30 = vpop.permute.xlu1 %964  ;;  %v3158_v18 = vpop.permute.xlu0 %1195 }
 0x14e   : > { %4276 = vst [vmem:[#allocation31_spill] sm:$0xff] %v3158_v18 }
 0x151   : > { %v3162_v38 = vpop.permute.xlu1 %968  ;;  %v3164_v21 = vpop.permute.xlu0 %966 }
 0x155   : > { %v3171_v60 = vpop.permute.xlu1 %1220  ;;  %v3173_v63 = vpop.permute.xlu0 %1218 }
 0x156   : > { %4277 = vst [vmem:[#allocation32_spill] sm:$0xff] %v3171_v60  ;;  %v806_v60 = vadd.f32 %v803_v14, %v796_v10  ;;  %v1090_v10 = vmul.f32 %v3092_v41, %v2906_v56  ;;  %v1075_v14 = vmul.f32 %v3096_v42, %v2861_v36  ;;  %v902_v56 = vadd.f32 %v3124_v62, %v878_v8 }
 0x157   : > { %v1101_v41 = vmul.f32 %v3098_v15, %v2970_v20 }
 0x158   : > { %v1093_v57 = vadd.f32 %v1090_v10, %v1083_v43  ;;  %v1085_v36 = vadd.f32 %v1082_v24, %v1075_v14  ;;  %v947_v43 = vsel %vm619_vm1, %v3150_v6, %v3148_v3  ;;  %v971_v3 = vsel %vm619_vm1, %v3164_v21, %v3162_v38 }
 0x159   : > { %v3185_v50 = vpop.permute.xlu1 %988  ;;  %v3187_v18 = vpop.permute.xlu0 %1222 }
 0x15a   : > { %4278 = vst [vmem:[#allocation33_spill] sm:$0xff] %v3185_v50  ;;  %4279 = vst [vmem:[#allocation34_spill] sm:$0xff] %v3187_v18  ;;  %v1074_v18 = vmul.f32 %v3096_v42, %v2843_v27  ;;  %v816_v50 = vadd.f32 %v813_v47, %v806_v60  ;;  %v1100_v47 = vmul.f32 %v3098_v15, %v2958_v34 }
 0x15b   : > { %v847_v60 = vsel %vm450_vm0, %v3104_v48, %v3102_v46  ;;  %v1095_v49 = vadd.f32 %v1092_v33, %v1085_v36  ;;  %v1125_v36 = vsel %vm450_vm0, %v3118_v13, %v3116_v58 }
 0x15c   : > { %v1084_v42 = vadd.f32 %v1081_v16, %v1074_v18  ;;  %v826_v44 = vadd.f32 %v823_v26, %v816_v50  ;;  %v852_v34 = vadd.f32 %v847_v60, %v825_v39  ;;  %v1103_v23 = vadd.f32 %v1100_v47, %v1093_v57 }
 0x15d   : > { %v993_v17 = vpop.permute.xlu1 %992  ;;  %v3210_v0 = vpop.permute.xlu0 %990  ;;  %v895_v50 = vsel %vm450_vm0, %v3120_v59, %v3126_v1  ;;  %v848_v39 = vsel %vm450_vm0, %v3102_v46, %v3109_v53  ;;  %v926_v26 = vadd.f32 %v3136_v19, %v902_v56  ;;  %v1102_v16 = vmul.f32 %v3098_v15, %v2973_v25 }
 0x15e   : > { %v1094_v27 = vadd.f32 %v1091_v45, %v1084_v42  ;;  %v876_v8 = vadd.f32 %v871_v35, %v852_v34  ;;  %v1130_v40 = vadd.f32 %v3118_v13, %v1103_v23  ;;  %v919_v59 = vsel %vm450_vm0, %v3132_v7, %v3138_v51 }
 0x15f   : > { %v872_v34 = vsel %vm450_vm0, %v3114_v55, %v3112_v54  ;;  %v953_v15 = vadd.f32 %v947_v43, %v926_v26  ;;  %v853_v10 = vadd.f32 %v848_v39, %v826_v44  ;;  %v995_v38 = vsel %vm619_vm1, %v3210_v0, %v993_v17 }
 0x160   : > { %v900_v56 = vadd.f32 %v895_v50, %v876_v8  ;;  %v1104_v14 = vadd.f32 %v1101_v41, %v1094_v27  ;;  %v1154_v7 = vadd.f32 %v3130_v22, %v1130_v40  ;;  %v1149_v54 = vsel %vm450_vm0, %v3130_v22, %v3128_v12 }
 0x161   : > { %v3224_v48 = vpop.permute.xlu1 %1244  ;;  %v3226_v18 = vpop.permute.xlu0 %1242  ;;  %v977_v24 = vadd.f32 %v971_v3, %v953_v15  ;;  %v877_v45 = vadd.f32 %v872_v34, %v853_v10  ;;  %v1105_v9 = vadd.f32 %v1102_v16, %v1095_v49  ;;  %v1126_v27 = vsel %vm450_vm0, %v3116_v58, %v3122_v61  ;;  %v4281_v16 = vld [vmem:[#allocation32_spill] sm:$0xff]  ;;  %v4283_v10 = vld [vmem:[#allocation34_spill] sm:$0xff] }
 0x162   : > { %v924_v55 = vadd.f32 %v919_v59, %v900_v56  ;;  %v1131_v13 = vadd.f32 %v1125_v36, %v1104_v14  ;;  %v1178_v47 = vadd.f32 %v3142_v37, %v1154_v7  ;;  %v896_v60 = vsel %vm450_vm0, %v3126_v1, %v3124_v62 }
 0x163   : > { %v1001_v42 = vadd.f32 %v995_v38, %v977_v24  ;;  %v1173_v35 = vsel %vm450_vm0, %v3142_v37, %v3140_v31  ;;  %v1150_v58 = vsel %vm450_vm0, %v3128_v12, %v3134_v29  ;;  %v920_v61 = vsel %vm450_vm0, %v3138_v51, %v3136_v19  ;;  %v4280_v19 = vld [vmem:[#allocation33_spill] sm:$0xff] }
 0x164   : > { %v951_v17 = vadd.f32 %v3144_v2, %v924_v55  ;;  %v1155_v44 = vadd.f32 %v1149_v54, %v1131_v13  ;;  %v1202_v57 = vadd.f32 %v3154_v52, %v1178_v47  ;;  %v1132_v23 = vadd.f32 %v1126_v27, %v1105_v9 }
 0x165   : > { %v3255_v46 = vpop.permute.xlu1 %1012  ;;  %v1247_v53 = vpop.permute.xlu0 %1246  ;;  %v901_v50 = vadd.f32 %v896_v60, %v877_v45  ;;  %v1197_v37 = vsel %vm450_vm0, %v3154_v52, %v3152_v11  ;;  %v1174_v12 = vsel %vm450_vm0, %v3140_v31, %v3146_v5  ;;  %v946_v29 = vsel %vm619_vm1, %v3144_v2, %v3150_v6  ;;  %v4282_v31 = vld [vmem:[#allocation31_spill] sm:$0xff] }
 0x166   : > { %v975_v62 = vadd.f32 %v3156_v30, %v951_v17  ;;  %v1229_v43 = vadd.f32 %v3173_v63, %v1202_v57  ;;  %v1179_v39 = vadd.f32 %v1173_v35, %v1155_v44  ;;  %v1156_v26 = vadd.f32 %v1150_v58, %v1132_v23  ;;  %v4288_v23 = vld [vmem:[#allocation13_spill] sm:$0xff] }
 0x167   : > { %v925_v52 = vadd.f32 %v920_v61, %v901_v50  ;;  %v1224_v40 = vsel %vm619_vm1, %v3173_v63, %v4281_v16  ;;  %v1198_v2 = vsel %vm450_vm0, %v3152_v11, %v4282_v31  ;;  %v970_v6 = vsel %vm619_vm1, %v3156_v30, %v3164_v21 }
 0x168   : > { %v999_v51 = vadd.f32 %v4280_v19, %v975_v62  ;;  %v1253_v59 = vadd.f32 %v3226_v18, %v1229_v43  ;;  %v1203_v5 = vadd.f32 %v1197_v37, %v1179_v39  ;;  %v1180_v34 = vadd.f32 %v1174_v12, %v1156_v26  ;;  %v4287_v62 = vld [vmem:[#allocation14_spill] sm:$0xff]  ;;  %v4289_v37 = vld [vmem:[#allocation21_spill] sm:$0xff]  ;;  %v4290_v39 = vld [vmem:[#allocation20_spill] sm:$0xff] }
 0x169   : > { %v1017_v33 = vpop.permute.xlu1 %1016  ;;  %v1015_v22 = vpop.permute.xlu0 %1014  ;;  %v952_v36 = vadd.f32 %v946_v29, %v925_v52  ;;  %v1248_v56 = vsel %vm619_vm1, %v3226_v18, %v3224_v48  ;;  %v1225_v14 = vsel %vm619_vm1, %v4281_v16, %v4283_v10  ;;  %v994_v11 = vsel %vm619_vm1, %v4280_v19, %v3210_v0  ;;  %v4291_v19 = vld [vmem:[#allocation26_spill] sm:$0xff]  ;;  %v4293_v52 = vld [vmem:[#allocation29_spill] sm:$0xff] }
 0x16a   : > { %v1019_v41 = vsel %vm619_vm1, %v1015_v22, %v1017_v33  ;;  %v1023_v3 = vadd.f32 %v3255_v46, %v999_v51  ;;  %v1230_v15 = vadd.f32 %v1224_v40, %v1203_v5  ;;  %v1204_v30 = vadd.f32 %v1198_v2, %v1180_v34 }
 0x16b   : > { %v1025_v1 = vadd.f32 %v1019_v41, %v1001_v42  ;;  %v976_v38 = vadd.f32 %v970_v6, %v952_v36  ;;  %v1249_v24 = vsel %vm619_vm1, %v3224_v48, %v1247_v53  ;;  %v1018_v45 = vsel %vm619_vm1, %v3255_v46, %v1015_v22  ;;  %v2598_v22 = vld [vmem:[%s4159_s1 + $0x4] sm:$0xf]  ;;  %v4295_v6 = vld [vmem:[#allocation17_spill] sm:$0xff] }
 0x16c   : > { %v1254_v18 = vadd.f32 %v1248_v56, %v1230_v15  ;;  %v1231_v13 = vadd.f32 %v1225_v14, %v1204_v30  ;;  %v4284_v35 = vmov 2   ;;  %v4285_v57 = vmov 0   ;;  %v259_v14 = vld [vmem:[%s4160_s2] sm:$0xf] }
 0x16d   : > { %v1269_v8 = vpop.permute.xlu1 %1268  ;;  %1044 = vrot.lane.b32.xlu1 %v1025_v1, %s2719_s23  ;;  %v1267_v49 = vpop.permute.xlu0 %1266  ;;  %v1000_v9 = vadd.f32 %v994_v11, %v976_v38  ;;  %v4286_v58 = vmov 3  }
 0x16e   : > { %v1277_v63 = vadd.f32 %v1267_v49, %v1253_v59  ;;  %v1272_v54 = vsel %vm619_vm1, %v1267_v49, %v1269_v8  ;;  %v1255_v17 = vadd.f32 %v1249_v24, %v1231_v13  ;;  %v4292_v49 = vld [vmem:[#allocation25_spill] sm:$0xff]  ;;  %v4294_v59 = vld [vmem:[#allocation28_spill] sm:$0xff]  ;;  %v4299_v24 = vld [vmem:[#allocation30_spill] sm:$0xff] }
 0x16f   : > { %v1278_v0 = vadd.f32 %v1272_v54, %v1254_v18  ;;  %v1024_v33 = vadd.f32 %v1018_v45, %v1000_v9  ;;  %v256_v9 = vld [vmem:[%s4163_s5] ss:$2 sm:$0x3] }
 0x171   : > { %v1291_v7 = vpop.permute.xlu1 %1290  ;;  %v1271_v21 = vpop.permute.xlu0 %1270  ;;  %1040 = vrot.lane.b32.xlu1 %v1023_v3, %s2719_s23 }
 0x172   : > { %v1301_v55 = vadd.f32 %v1291_v7, %v1277_v63  ;;  %v1273_v47 = vsel %vm619_vm1, %v1269_v8, %v1271_v21  ;;  %v4296_v63 = vld [vmem:[#allocation24_spill] sm:$0xff] }
 0x173   : > { %v1279_v53 = vadd.f32 %v1273_v47, %v1255_v17  ;;  %v4302_v17 = vld [vmem:[#allocation6_spill] sm:$0xff] }
 0x174   : > { %1318 = vrot.lane.b32.xlu0 %v1301_v55, %s2720_s24  ;;  %v4298_v55 = vmov 1  }
 0x175   : > { %v1295_v27 = vpop.permute.xlu1 %1294  ;;  %v1293_v60 = vpop.permute.xlu0 %1292 }
 0x176   : > { %v1296_v42 = vsel %vm619_vm1, %v1291_v7, %v1293_v60  ;;  %v1297_v44 = vsel %vm619_vm1, %v1293_v60, %v1295_v27  ;;  %v4297_v7 = vld [vmem:[#allocation27_spill] sm:$0xff]  ;;  %v4300_v27 = vld [vmem:[#allocation4_spill] sm:$0xff] }
 0x177   : > { %v1302_v48 = vadd.f32 %v1296_v42, %v1278_v0  ;;  %v1303_v46 = vadd.f32 %v1297_v44, %v1279_v53  ;;  %v3383_v60 = vrot.slane %v256_v9, %v4300_v27  ;;  %v3386_v42 = vrot.slane %v256_v9, %v4302_v17 }
 0x178   : > { %1042 = vrot.lane.b32.xlu0 %v1024_v33, %s2719_s23  ;;  %v2597_v33 = vld [vmem:[%s4163_s5 + $0x1] ss:$2 sm:$0x3] }
 0x179   : > { %1320 = vrot.lane.b32.xlu1 %v1302_v48, %s2720_s24  ;;  %4301 = vst [vmem:[#allocation33_spill] sm:$0xff] %v3383_v60  ;;  %4303 = vst [vmem:[#allocation32_spill] sm:$0xff] %v3386_v42 }
 0x17c   : > { %1322 = vrot.lane.b32.xlu0 %v1303_v46, %s2720_s24 }
 0x17d   : > { %269 = vperm.xlu1 %2661, %v2598_v22  }
 0x180   : > { %305 = vperm.xlu0 %2662, %v2598_v22  }
 0x181   : > { %2663 = vset.pattern.permute.xlu1 %v4284_v35 }
 0x182   : > { %342 = vperm.xlu1 %2663, %v2598_v22  }
 0x184   : > { %2665 = vset.pattern.permute.xlu0 %v4285_v57 }
 0x186   : > { %v421_v41 = vpop.permute.xlu0 %420  ;;  %2664 = vset.pattern.permute.xlu1 %v4286_v58  ;;  %v460_v61 = vpop.permute.xlu1 %459 }
 0x187   : > { %v442_v1 = vmul.f32 %v4287_v62, %v421_v41  ;;  %379 = vperm.xlu1 %2664, %v2598_v22   ;;  %v443_v50 = vmul.f32 %v4288_v23, %v421_v41  ;;  %v480_v43 = vmul.f32 %v4289_v37, %v460_v61  ;;  %v481_v12 = vmul.f32 %v4290_v39, %v460_v61 }
 0x188   : > { %v3396_v61 = vrot.slane %v2597_v33, %v4300_v27 }
 0x189   : > { %446 = vrot.lane.b32.xlu0 %v442_v1, %s2717_s15 }
 0x18a   : > { %4304 = vst [vmem:[#allocation31_spill] sm:$0xff] %v3396_v61 }
 0x18b   : > { %448 = vrot.lane.b32.xlu1 %v443_v50, %s2717_s15  ;;  %v497_v29 = vpop.permute.xlu1 %496  ;;  %v534_v8 = vpop.permute.xlu0 %533 }
 0x18c   : > { %2666 = vset.pattern.permute.xlu1 %v4285_v57  ;;  %v517_v51 = vmul.f32 %v4291_v19, %v497_v29  ;;  %v518_v26 = vmul.f32 %v4292_v49, %v497_v29  ;;  %v554_v16 = vmul.f32 %v4293_v52, %v534_v8  ;;  %v555_v5 = vmul.f32 %v4294_v59, %v534_v8 }
 0x18d   : > { %484 = vrot.lane.b32.xlu0 %v480_v43, %s2717_s15 }
 0x18f   : > { %486 = vrot.lane.b32.xlu1 %v481_v12, %s2717_s15 }
 0x190   : > { %v576_v40 = vpop.permute.xlu1 %575  ;;  %v681_v10 = vpop.permute.xlu0 %680 }
 0x191   : > { %521 = vrot.lane.b32.xlu0 %v517_v51, %s2717_s15  ;;  %v607_v31 = vmul.f32 %v4287_v62, %v576_v40  ;;  %v608_v2 = vmul.f32 %v4288_v23, %v576_v40  ;;  %v609_v3 = vmul.f32 %v4295_v6, %v576_v40  ;;  %v710_v11 = vmul.f32 %v4291_v19, %v681_v10 }
 0x192   : > { %v712_v21 = vmul.f32 %v4297_v7, %v681_v10  ;;  %v711_v38 = vmul.f32 %v4292_v49, %v681_v10  ;;  %v3399_v62 = vrot.slane %v2597_v33, %v4302_v17  ;;  %v4309_v7 = vld [vmem:[#allocation12_spill] sm:$0xff] }
 0x193   : > { %523 = vrot.lane.b32.xlu1 %v518_v26, %s2717_s15 }
 0x194   : > { %4305 = vst [vmem:[#allocation34_spill] sm:$0xff] %v3399_v62 }
 0x195   : > { %558 = vrot.lane.b32.xlu0 %v554_v16, %s2717_s15  ;;  %v630_v34 = vpop.permute.xlu1 %629 }
 0x196   : > { %v659_v36 = vmul.f32 %v4289_v37, %v630_v34  ;;  %v660_v56 = vmul.f32 %v4290_v39, %v630_v34  ;;  %v661_v15 = vmul.f32 %v4296_v63, %v630_v34 }
 0x197   : > { %560 = vrot.lane.b32.xlu1 %v555_v5, %s2717_s15 }
 0x199   : > { %613 = vrot.lane.b32.xlu0 %v607_v31, %s2718_s16 }
 0x19a   : > { %v732_v30 = vpop.permute.xlu1 %731 }
 0x19b   : > { %615 = vrot.lane.b32.xlu1 %v608_v2, %s2718_s16  ;;  %v762_v54 = vmul.f32 %v4294_v59, %v732_v30  ;;  %v761_v18 = vmul.f32 %v4293_v52, %v732_v30  ;;  %v763_v45 = vmul.f32 %v4299_v24, %v732_v30 }
 0x19d   : > { %617 = vrot.lane.b32.xlu0 %v609_v3, %s2718_s16  ;;  %v4306_v3 = vld [vmem:[#allocation16_spill] sm:$0xff] }
 0x19f   : > { %665 = vrot.lane.b32.xlu1 %v659_v36, %s2718_s16 }
 0x1a1   : > { %667 = vrot.lane.b32.xlu0 %v660_v56, %s2718_s16 }
 0x1a3   : > { %669 = vrot.lane.b32.xlu1 %v661_v15, %s2718_s16  ;;  %v4307_v15 = vld [vmem:[#allocation23_spill] sm:$0xff] }
 0x1a5   : > { %783 = vperm.xlu0 %2665, %v259_v14   ;;  %v4308_v14 = vld [vmem:[#allocation7_spill] sm:$0xff] }
 0x1a7   : > { %716 = vrot.lane.b32.xlu1 %v710_v11, %s2718_s16 }
 0x1a9   : > { %720 = vrot.lane.b32.xlu0 %v712_v21, %s2718_s16 }
 0x1aa   : > { %2670 = vset.pattern.permute.xlu0 %v4298_v55 }
 0x1ab   : > { %718 = vrot.lane.b32.xlu1 %v711_v38, %s2718_s16  ;;  %v4310_v38 = vld [vmem:[#allocation9_spill] sm:$0xff] }
 0x1ad   : > { %769 = vrot.lane.b32.xlu0 %v762_v54, %s2718_s16 }
 0x1af   : > { %767 = vrot.lane.b32.xlu1 %v761_v18, %s2718_s16 }
 0x1b3   : > { %771 = vrot.lane.b32.xlu1 %v763_v45, %s2718_s16 }
 0x1df   : > { %v1045_v13 = vpop.permute.xlu1 %1044 }
 0x1e3   : > { %v1041_v47 = vpop.permute.xlu1 %1040 }
 0x1e6   : > { %v1319_v0 = vpop.permute.xlu0 %1318 }
 0x1ea   : > { %v1043_v44 = vpop.permute.xlu0 %1042 }
 0x1eb   : > { %v1047_v48 = vsel %vm1046_vm2, %v1041_v47, %v1043_v44  ;;  %v1048_v53 = vsel %vm1046_vm2, %v1043_v44, %v1045_v13  ;;  %v1321_v46 = vpop.permute.xlu1 %1320  ;;  %v4312_v13 = vld [vmem:[#allocation19_spill] sm:$0xff] }
 0x1ec   : > { %v1051_v22 = vmul.f32 %v1047_v48, %v3383_v60  ;;  %v1052_v41 = vmul.f32 %v1048_v53, %v3386_v42  ;;  %v1325_v1 = vsel %vm1324_vm3, %v1319_v0, %v1321_v46 }
 0x1ed   : > { %v1329_v37 = vmul.f32 %v1325_v1, %v3396_v61 }
 0x1ee   : > { %v1323_v23 = vpop.permute.xlu0 %1322  ;;  %1057 = vrot.lane.b32.xlu1 %v1052_v41, %s2717_s15  ;;  %1055 = vrot.lane.b32.xlu0 %v1051_v22, %s2717_s15 }
 0x1ef   : > { %v1326_v50 = vsel %vm1324_vm3, %v1321_v46, %v1323_v23 }
 0x1f0   : > { %v1330_v43 = vmul.f32 %v1326_v50, %v3399_v62 }
 0x1f2   : > { %1335 = vrot.lane.b32.xlu1 %v1330_v43, %s2717_s15  ;;  %1333 = vrot.lane.b32.xlu0 %v1329_v37, %s2717_s15 }
 0x1fc   : > { %v270_v39 = vpop.permute.xlu1 %269 }
 0x1fd   : > { %v301_v59 = vmul.f32 %v2846_v28, %v270_v39  ;;  %v302_v11 = vmul.f32 %v4308_v14, %v270_v39  ;;  %v303_v54 = vmul.f32 %v4310_v38, %v270_v39  ;;  %v4311_v28 = vld [vmem:[#allocation11_spill] sm:$0xff] }
 0x1ff   : > { %v306_v51 = vpop.permute.xlu0 %305 }
 0x200   : > { %v335_v5 = vmul.f32 %v2854_v32, %v306_v51  ;;  %v336_v21 = vmul.f32 %v4309_v7, %v306_v51  ;;  %v337_v18 = vmul.f32 %v4311_v28, %v306_v51 }
 0x201   : > { %v343_v12 = vpop.permute.xlu1 %342 }
 0x202   : > { %v338_v6 = vadd.f32 %v335_v5, %v301_v59  ;;  %v372_v34 = vmul.f32 %v4306_v3, %v343_v12  ;;  %v339_v45 = vadd.f32 %v336_v21, %v302_v11  ;;  %v373_v9 = vmul.f32 %v4312_v13, %v343_v12 }
 0x203   : > { %v447_v49 = vpop.permute.xlu0 %446  ;;  %v340_v0 = vadd.f32 %v337_v18, %v303_v54  ;;  %v374_v47 = vmul.f32 %v2927_v4, %v343_v12 }
 0x204   : > { %v375_v63 = vadd.f32 %v372_v34, %v338_v6  ;;  %v376_v44 = vadd.f32 %v373_v9, %v339_v45 }
 0x205   : > { %v377_v1 = vadd.f32 %v374_v47, %v340_v0 }
 0x206   : > { %v380_v29 = vpop.permute.xlu1 %379 }
 0x207   : > { %v485_v52 = vpop.permute.xlu0 %484  ;;  %v409_v10 = vmul.f32 %v4307_v15, %v380_v29  ;;  %v410_v48 = vmul.f32 %v2970_v20, %v380_v29  ;;  %v411_v22 = vmul.f32 %v2973_v25, %v380_v29 }
 0x209   : > { %v412_v32 = vadd.f32 %v409_v10, %v375_v63  ;;  %v413_v23 = vadd.f32 %v410_v48, %v376_v44  ;;  %v414_v43 = vadd.f32 %v411_v22, %v377_v1 }
 0x20a   : > { %v449_v19 = vpop.permute.xlu1 %448 }
 0x20b   : > { %v522_v40 = vpop.permute.xlu0 %521  ;;  %v455_v33 = vadd.f32 %v447_v49, %v412_v32  ;;  %v451_v37 = vsel %vm450_vm0, %v447_v49, %v449_v19  ;;  %v457_v6 = vadd.f32 %v449_v19, %v414_v43 }
 0x20c   : > { %v456_v4 = vadd.f32 %v451_v37, %v413_v23 }
 0x20d   : > { %v492_v41 = vadd.f32 %v485_v52, %v455_v33 }
 0x20e   : > { %v487_v8 = vpop.permute.xlu1 %486 }
 0x20f   : > { %v559_v2 = vpop.permute.xlu0 %558  ;;  %v529_v39 = vadd.f32 %v522_v40, %v492_v41  ;;  %v488_v51 = vsel %vm450_vm0, %v485_v52, %v487_v8  ;;  %v494_v34 = vadd.f32 %v487_v8, %v457_v6 }
 0x210   : > { %v493_v5 = vadd.f32 %v488_v51, %v456_v4 }
 0x211   : > { %v566_v3 = vadd.f32 %v559_v2, %v529_v39 }
 0x212   : > { %v524_v26 = vpop.permute.xlu1 %523 }
 0x213   : > { %v614_v56 = vpop.permute.xlu0 %613  ;;  %v525_v12 = vsel %vm450_vm0, %v522_v40, %v524_v26  ;;  %v531_v10 = vadd.f32 %v524_v26, %v494_v34 }
 0x214   : > { %v530_v29 = vadd.f32 %v525_v12, %v493_v5  ;;  %v625_v14 = vadd.f32 %v614_v56, %v566_v3 }
 0x216   : > { %v561_v16 = vpop.permute.xlu1 %560 }
 0x217   : > { %v618_v30 = vpop.permute.xlu0 %617  ;;  %v562_v25 = vsel %vm450_vm0, %v559_v2, %v561_v16  ;;  %v568_v21 = vadd.f32 %v561_v16, %v531_v10 }
 0x218   : > { %v567_v49 = vadd.f32 %v562_v25, %v530_v29 }
 0x21a   : > { %v616_v31 = vpop.permute.xlu1 %615 }
 0x21b   : > { %v668_v53 = vpop.permute.xlu0 %667  ;;  %v620_v63 = vsel %vm619_vm1, %v614_v56, %v616_v31  ;;  %v621_v11 = vsel %vm619_vm1, %v616_v31, %v618_v30 }
 0x21c   : > { %v626_v7 = vadd.f32 %v620_v63, %v567_v49  ;;  %v627_v8 = vadd.f32 %v621_v11, %v568_v21  ;;  %v2609_v63 = vld [vmem:[%s4161_s3 + $0xc] sm:$0xf]  ;;  %v2613_v11 = vld [vmem:[%s4161_s3 + $0x20] sm:$0xf] }
 0x21e   : > { %v666_v36 = vpop.permute.xlu1 %665 }
 0x21f   : > { %v671_v52 = vsel %vm619_vm1, %v666_v36, %v668_v53  ;;  %v676_v38 = vadd.f32 %v666_v36, %v625_v14  ;;  %v2612_v14 = vld [vmem:[%s4161_s3 + $0x14] sm:$0xf] }
 0x220   : > { %v677_v54 = vadd.f32 %v671_v52, %v626_v7  ;;  %v2610_v52 = vld [vmem:[%s4161_s3 + $0x18] sm:$0xf]  ;;  %v1937_v7 = vld [vmem:[%s4161_s3] sm:$0xf] }
 0x222   : > { %v670_v24 = vpop.permute.xlu1 %669 }
 0x223   : > { %v672_v2 = vsel %vm619_vm1, %v668_v53, %v670_v24 }
 0x224   : > { %v784_v50 = vpop.permute.xlu0 %783  ;;  %v678_v45 = vadd.f32 %v672_v2, %v627_v8 }
 0x226   : > { %v717_v46 = vpop.permute.xlu1 %716 }
 0x227   : > { %v727_v28 = vadd.f32 %v717_v46, %v676_v38 }
 0x228   : > { %v721_v20 = vpop.permute.xlu0 %720 }
 0x22a   : > { %v719_v59 = vpop.permute.xlu1 %718 }
 0x22b   : > { %v722_v19 = vsel %vm619_vm1, %v717_v46, %v719_v59  ;;  %v723_v26 = vsel %vm619_vm1, %v719_v59, %v721_v20 }
 0x22c   : > { %v770_v40 = vpop.permute.xlu0 %769  ;;  %v728_v56 = vadd.f32 %v722_v19, %v677_v54  ;;  %v729_v16 = vadd.f32 %v723_v26, %v678_v45  ;;  %v1719_v26 = vld [vmem:[#allocation3 + $0xc] sm:$0xf] }
 0x22d   : > { %v1740_v45 = vrot.slane %v1719_v26, %v4300_v27 }
 0x22e   : > { %v768_v15 = vpop.permute.xlu1 %767 }
 0x22f   : > { %v773_v18 = vsel %vm619_vm1, %v768_v15, %v770_v40  ;;  %v778_v13 = vadd.f32 %v768_v15, %v727_v28 }
 0x230   : > { %v779_v31 = vadd.f32 %v773_v18, %v728_v56  ;;  %v2611_v18 = vld [vmem:[%s4161_s3 + $0x8] sm:$0xf] }
 0x231   : > { %v786_v47 = vadd.f32 %v784_v50, %v778_v13  ;;  %v3505_v13 = vrot.slane %v1740_v45, %v4300_v27 }
 0x232   : > { %v772_v32 = vpop.permute.xlu1 %771  ;;  %v787_v33 = vadd.f32 %v784_v50, %v779_v31 }
 0x233   : > { %v774_v30 = vsel %vm619_vm1, %v770_v40, %v772_v32  ;;  %4313 = vst [vmem:[#allocation14_spill] sm:$0xff] %v3505_v13 }
 0x234   : > { %v780_v0 = vadd.f32 %v774_v30, %v729_v16 }
 0x236   : > { %v788_v22 = vadd.f32 %v784_v50, %v780_v0 }
 0x260   : > { %v1056_v36 = vpop.permute.xlu0 %1055  ;;  %v1058_v9 = vpop.permute.xlu1 %1057 }
 0x261   : > { %v1059_v24 = vsel %vm450_vm0, %v1056_v36, %v1058_v9  ;;  %v1063_v44 = vadd.f32 %v1056_v36, %v786_v47  ;;  %v1065_v37 = vadd.f32 %v1058_v9, %v788_v22  ;;  %v4314_v22 = vld [vmem:[#allocation10_spill] sm:$0xff] }
 0x262   : > { %v1064_v48 = vadd.f32 %v1059_v24, %v787_v33 }
 0x264   : > { %v1334_v53 = vpop.permute.xlu0 %1333  ;;  %v1336_v46 = vpop.permute.xlu1 %1335 }
 0x265   : > { %v1341_v41 = vadd.f32 %v1334_v53, %v1063_v44  ;;  %v1337_v1 = vsel %vm450_vm0, %v1334_v53, %v1336_v46  ;;  %v1343_v43 = vadd.f32 %v1336_v46, %v1065_v37 }
 0x266   : > { %v1342_v23 = vadd.f32 %v1337_v1, %v1064_v48  ;;  %v1791_v48 = vrot.slane %v1719_v26, %v4302_v17 }
 0x267   : > { %1347 = vrot.lane.b32.xlu0 %v1341_v41, %s2721_s10 }
 0x268   : > { %1349 = vrot.lane.b32.xlu1 %v1342_v23, %s2721_s10  ;;  %v3530_v37 = vrot.slane %v1791_v48, %v4302_v17 }
 0x26a   : > { %4315 = vst [vmem:[#allocation13_spill] sm:$0xff] %v3530_v37 }
 0x26b   : > { %1351 = vrot.lane.b32.xlu0 %v1343_v43, %s2721_s10 }
 0x2d9   : > { %v1348_v39 = vpop.permute.xlu0 %1347 }
 0x2da   : > { %v1350_v51 = vpop.permute.xlu1 %1349 }
 0x2db   : > { %v1354_v59 = vsel %vm1353_vm4, %v1348_v39, %v1350_v51 }
 0x2dc   : > { %v1359_v12 = vsel %vm1358_vm5, %v1354_v59, 0.0 }
 0x2dd   : > { %v1352_v50 = vpop.permute.xlu0 %1351 }
 0x2de   : > { %v1355_v4 = vsel %vm1353_vm4, %v1350_v51, %v1352_v50  ;;  %v4317_v50 = vld [vmem:[#allocation18_spill] sm:$0xff] }
 0x2df   : > { %v1360_v5 = vsel %vm1358_vm5, %v1355_v4, 0.0  ;;  %v1893_v4 = vrot.slane %v1719_v26, %v4317_v50 }
 0x2e0   : > { %v1361_v20 = vadd.f32 %v1360_v5, %v1359_v12 }
 0x2e2   : > { %1362 = vadd.xlane.f32.xlu1 %v1361_v20  ;;  %v3547_v20 = vrot.slane %v1893_v4, %v4317_v50 }
 0x2e4   : > { %4318 = vst [vmem:[#allocation20_spill] sm:$0xff] %v3547_v20 }
 0x2f3   : > { %1980 = vperm.xlu1 %2666, %v2609_v63  }
 0x2f7   : > { %2667 = vset.pattern.permute.xlu1 %v4298_v55 }
 0x2f8   : > { %2004 = vperm.xlu1 %2667, %v2609_v63  }
 0x2fc   : > { %2668 = vset.pattern.permute.xlu1 %v4285_v57 }
 0x2fd   : > { %2246 = vperm.xlu1 %2668, %v2612_v14  }
 0x301   : > { %2669 = vset.pattern.permute.xlu1 %v4284_v35 }
 0x302   : > { %2028 = vperm.xlu1 %2669, %v2609_v63  }
 0x306   : > { %2671 = vset.pattern.permute.xlu1 %v4286_v58 }
 0x307   : > { %2052 = vperm.xlu1 %2671, %v2609_v63  }
 0x30b   : > { %2672 = vset.pattern.permute.xlu1 %v4284_v35 }
 0x30c   : > { %2294 = vperm.xlu1 %2672, %v2612_v14  }
 0x310   : > { %2673 = vset.pattern.permute.xlu1 %v4286_v58 }
 0x311   : > { %2318 = vperm.xlu1 %2673, %v2612_v14  }
 0x315   : > { %2674 = vset.pattern.permute.xlu1 %v4298_v55 }
 0x316   : > { %2103 = vperm.xlu1 %2674, %v2610_v52  }
 0x31a   : > { %2675 = vset.pattern.permute.xlu1 %v4284_v35 }
 0x31b   : > { %2127 = vperm.xlu1 %2675, %v2610_v52  }
 0x31f   : > { %2676 = vset.pattern.permute.xlu1 %v4286_v58 }
 0x320   : > { %2151 = vperm.xlu1 %2676, %v2610_v52  }
 0x324   : > { %2677 = vset.pattern.permute.xlu1 %v4284_v35 }
 0x325   : > { %2393 = vperm.xlu1 %2677, %v2613_v11  }
 0x329   : > { %2678 = vset.pattern.permute.xlu1 %v4285_v57 }
 0x32a   : > { %1940 = vperm.xlu1 %2678, %v1937_v7  }
 0x32e   : > { %2679 = vset.pattern.permute.xlu1 %v4298_v55 }
 0x32f   : > { %1947 = vperm.xlu1 %2679, %v1937_v7  }
 0x333   : > { %2682 = vset.pattern.permute.xlu1 %v4285_v57 }
 0x334   : > { %2206 = vperm.xlu1 %2682, %v2611_v18  }
 0x338   : > { %2683 = vset.pattern.permute.xlu1 %v4298_v55 }
 0x339   : > { %2213 = vperm.xlu1 %2683, %v2611_v18  }
 0x33d   : > { %2685 = vset.pattern.permute.xlu1 %v4284_v35 }
 0x33e   : > { %2223 = vperm.xlu1 %2685, %v2611_v18  }
 0x342   : > { %2686 = vset.pattern.permute.xlu1 %v4286_v58 }
 0x343   : > { %2233 = vperm.xlu1 %2686, %v2611_v18  }
 0x347   : > { %2687 = vset.pattern.permute.xlu1 %v4298_v55 }
 0x36f   : > { %v1363_v6 = vpop.xlane.xlu1 %1362 }
 0x370   : > { %v1365_v3 = vmul.f32 0.00390625, %v1363_v6 }
 0x372   : > { %v3442_v25 = vsub.f32 %v1341_v41, %v1365_v3  ;;  %v3444_v29 = vsub.f32 %v1342_v23, %v1365_v3  ;;  %v3452_v15 = vsub.f32 %v1343_v43, %v1365_v3  ;;  %v1842_v41 = vrot.slane %v1719_v26, %v4314_v22 }
 0x373   : > { %v3496_v32 = vpop.permute.xlu1 %1980 }
 0x374   : > { %v1369_v34 = vmul.f32 %v3442_v25, %v3442_v25  ;;  %v1370_v49 = vmul.f32 %v3444_v29, %v3444_v29  ;;  %v1371_v10 = vmul.f32 %v3452_v15, %v3452_v15  ;;  %v3534_v39 = vrot.slane %v1842_v41, %v4314_v22 }
 0x376   : > { %1375 = vrot.lane.b32.xlu0 %v1369_v34, %s2721_s10  ;;  %4316 = vst [vmem:[#allocation21_spill] sm:$0xff] %v3534_v39 }
 0x377   : > { %v3500_v56 = vpop.permute.xlu1 %2004 }
 0x37a   : > { %1377 = vrot.lane.b32.xlu0 %v1370_v49, %s2721_s10 }
 0x37c   : > { %v3507_v31 = vpop.permute.xlu1 %2246 }
 0x37d   : > { %v2251_v30 = vmul.f32 %v3507_v31, %v3505_v13 }
 0x37e   : > { %1379 = vrot.lane.b32.xlu0 %v1371_v10, %s2721_s10 }
 0x381   : > { %v3512_v16 = vpop.permute.xlu1 %2028 }
 0x386   : > { %v3514_v47 = vpop.permute.xlu1 %2052 }
 0x38b   : > { %v3518_v33 = vpop.permute.xlu1 %2294 }
 0x38c   : > { %v2299_v5 = vmul.f32 %v3518_v33, %v3534_v39 }
 0x390   : > { %v3527_v23 = vpop.permute.xlu1 %2318 }
 0x391   : > { %v2323_v34 = vmul.f32 %v3527_v23, %v3547_v20 }
 0x395   : > { %v3536_v51 = vpop.permute.xlu1 %2103 }
 0x39a   : > { %v3551_v3 = vpop.permute.xlu1 %2127 }
 0x3e8   : > { %v1376_v40 = vpop.permute.xlu0 %1375 }
 0x3ec   : > { %v1378_v21 = vpop.permute.xlu0 %1377 }
 0x3ed   : > { %v1381_v38 = vsel %vm1353_vm4, %v1376_v40, %v1378_v21 }
 0x3ee   : > { %v1385_v2 = vsel %vm1358_vm5, %v1381_v38, 0.0 }
 0x3f0   : > { %v1380_v19 = vpop.permute.xlu0 %1379 }
 0x3f1   : > { %v1382_v54 = vsel %vm1353_vm4, %v1378_v21, %v1380_v19  ;;  %v2132_v19 = vmul.f32 %v3551_v3, %v3534_v39 }
 0x3f2   : > { %v1386_v8 = vsel %vm1358_vm5, %v1382_v54, 0.0 }
 0x3f3   : > { %v1387_v28 = vadd.f32 %v1386_v8, %v1385_v2 }
 0x3f5   : > { %1388 = vadd.xlane.f32.xlu0 %v1387_v28 }
 0x40b   : > { %2270 = vperm.xlu0 %2670, %v2612_v14  }
 0x40f   : > { %2369 = vperm.xlu0 %2670, %v2613_v11  }
 0x413   : > { %2680 = vset.pattern.permute.xlu0 %v4284_v35 }
 0x414   : > { %1957 = vperm.xlu0 %2680, %v1937_v7  }
 0x418   : > { %2681 = vset.pattern.permute.xlu0 %v4286_v58 }
 0x419   : > { %2417 = vperm.xlu0 %2681, %v2613_v11  }
 0x41d   : > { %1967 = vperm.xlu0 %2681, %v1937_v7  }
 0x421   : > { %2684 = vset.pattern.permute.xlu0 %v4285_v57 }
 0x422   : > { %2079 = vperm.xlu0 %2684, %v2610_v52  }
 0x426   : > { %2345 = vperm.xlu0 %2684, %v2613_v11   ;;  %v3563_v11 = vpop.permute.xlu1 %2151 }
 0x427   : > { %v2156_v2 = vmul.f32 %v3563_v11, %v3547_v20 }
 0x42a   : > { %2259 = vrot.lane.b32.xlu0 %v2251_v30, %s2717_s15  ;;  %v3574_v21 = vpop.permute.xlu1 %2393 }
 0x42b   : > { %v2398_v54 = vmul.f32 %v3574_v21, %v3534_v39 }
 0x42e   : > { %v3589_v8 = vpop.permute.xlu1 %1940 }
 0x432   : > { %v3591_v28 = vpop.permute.xlu1 %1947 }
 0x436   : > { %v3593_v18 = vpop.permute.xlu1 %2206 }
 0x43a   : > { %v3595_v26 = vpop.permute.xlu1 %2213 }
 0x43e   : > { %v3597_v45 = vpop.permute.xlu1 %2223 }
 0x442   : > { %v3599_v30 = vpop.permute.xlu1 %2233 }
 0x482   : > { %v1389_v36 = vpop.xlane.xlu0 %1388 }
 0x483   : > { %v1390_v9 = vmul.f32 0.00390625, %v1389_v36 }
 0x485   : > { %v1391_v0 = vadd.f32 1e-05, %v1390_v9 }
 0x487   : > { %2700 = vrsqrt.f32 %v1391_v0 }
 0x48a   : > { %v3516_v24 = vpop.permute.xlu0 %2270 }
 0x48b   : > { %v2275_v59 = vmul.f32 %v3516_v24, %v3530_v37 }
 0x48e   : > { %v3520_v44 = vpop.permute.xlu0 %2369 }
 0x48f   : > { %v2374_v38 = vmul.f32 %v3520_v44, %v3530_v37 }
 0x491   : > { %v2701_v53 = vpop.eup %2700 }
 0x492   : > { %v1395_v46 = vmul.f32 %v2701_v53, %v3452_v15  ;;  %v1393_v63 = vmul.f32 %v2701_v53, %v3442_v25  ;;  %v1394_v15 = vmul.f32 %v2701_v53, %v3444_v29  ;;  %v2108_v29 = vmul.f32 %v3536_v51, %v3530_v37 }
 0x493   : > { %v3525_v1 = vpop.permute.xlu0 %1957 }
 0x494   : > { %v1398_v43 = vmax.f32 %v1395_v46, 0.0  ;;  %v1396_v14 = vmax.f32 %v1393_v63, 0.0  ;;  %v1397_v52 = vmax.f32 %v1394_v15, 0.0 }
 0x496   : > { %1405 = vrot.lane.b32.xlu0 %v1398_v43, %s2721_s10  ;;  %v1402_v40 = vcombine.low %v1396_v14, %v1397_v52 }
 0x498   : > { %v3541_v12 = vpop.permute.xlu0 %2417 }
 0x49a   : > { %2283 = vrot.lane.b32.xlu0 %v2275_v59, %s2717_s15 }
 0x49c   : > { %v3549_v6 = vpop.permute.xlu0 %1967 }
 0x49e   : > { %2307 = vrot.lane.b32.xlu0 %v2299_v5, %s2717_s15  ;;  %v4319_v5 = vld [vmem:[#allocation5_spill] sm:$0xff] }
 0x4a1   : > { %v3558_v49 = vpop.permute.xlu0 %2079 }
 0x4a2   : > { %v2084_v10 = vmul.f32 %v3558_v49, %v3505_v13  ;;  %2331 = vrot.lane.b32.xlu0 %v2323_v34, %s2717_s15 }
 0x4a4   : > { %2092 = vrot.lane.b32.xlu1 %v2084_v10, %s2718_s16 }
 0x4a5   : > { %v3566_v7 = vpop.permute.xlu0 %2345 }
 0x4a6   : > { %v2350_v25 = vmul.f32 %v3566_v7, %v3505_v13 }
 0x4a8   : > { %1403 = vrot.lane.b32.xlu1 %v1402_v40, %s2721_s10  ;;  %2358 = vrot.lane.b32.xlu0 %v2350_v25, %s2718_s16  ;;  %v4322_v40 = vld [vmem:[#allocation8_spill] sm:$0xff] }
 0x4a9   : > { %v3601_v36 = vpop.permute.xlu0 %2259 }
 0x4ac   : > { %2382 = vrot.lane.b32.xlu0 %v2374_v38, %s2718_s16  ;;  %2116 = vrot.lane.b32.xlu1 %v2108_v29, %s2718_s16 }
 0x4b0   : > { %2140 = vrot.lane.b32.xlu1 %v2132_v19, %s2718_s16  ;;  %2406 = vrot.lane.b32.xlu0 %v2398_v54, %s2718_s16 }
 0x4b4   : > { %2164 = vrot.lane.b32.xlu1 %v2156_v2, %s2718_s16 }
 0x508   : > { %v1406_v0 = vpop.permute.xlu0 %1405 }
 0x509   : > { %v1408_v53 = vrot.slane %v1406_v0, 4 }
 0x516   : > { %v3603_v9 = vpop.permute.xlu1 %2092 }
 0x51a   : > { %v1404_v48 = vpop.permute.xlu1 %1403 }
 0x51b   : > { %v1407_v46 = vrot.slane %v1404_v48, 4 }
 0x51d   : > { %v1409_v41 = vsel %vm1358_vm5, %v1407_v46, %v1408_v53 }
 0x51e   : > { %v3607_v43 = vsel %vm1353_vm4, %v1404_v48, %v1409_v41 }
 0x51f   : > { %1412 = vst [vmem:[#allocation3 + $0x4] sm:$0xff] %v3607_v43  ;;  %v1736_v0 = vrot.slane %v3607_v43, %v4319_v5  ;;  %v1732_v48 = vrot.slane %v3607_v43, %v4300_v27 }
 0x526   : > { %v1413_v59 = vld [vmem:[#allocation3] sm:$0xff]  ;;  %v3610_v4 = vld [vmem:[#allocation3 + $0x8] sm:$0xf] }
 0x527   : > { %v1431_v34 = vrot.slane %v1413_v59, %v4319_v5  ;;  %v1427_v63 = vrot.slane %v1413_v59, %v4300_v27  ;;  %v1461_v15 = vrot.slane %v1413_v59, %v4302_v17  ;;  %v1435_v10 = vrot.slane %v3610_v4, %v4300_v27 }
 0x528   : > { %v1469_v25 = vrot.slane %v3610_v4, %v4302_v17  ;;  %v1465_v29 = vrot.slane %v1413_v59, %v4322_v40  ;;  %v3655_v5 = vrot.slane %v1736_v0, %v4300_v27  ;;  %v1535_v62 = vrot.slane %v1413_v59, %v4317_v50 }
 0x529   : > { %v3618_v14 = vrot.slane %v1431_v34, %v4300_v27  ;;  %v3621_v52 = vrot.slane %v1427_v63, %v4300_v27  ;;  %v3631_v54 = vrot.slane %v1461_v15, %v4302_v17  ;;  %v3634_v2 = vrot.slane %v1435_v10, %v4300_v27 }
 0x52a   : > { %v3647_v41 = vrot.slane %v1469_v25, %v4302_v17  ;;  %v3650_v34 = vrot.slane %v1465_v29, %v4302_v17  ;;  %4325 = vst [vmem:[#allocation17_spill] sm:$0xff] %v3655_v5  ;;  %v3658_v63 = vrot.slane %v1732_v48, %v4300_v27  ;;  %v1498_v10 = vrot.slane %v1413_v59, %v4314_v22  ;;  %v4327_v25 = vld [vmem:[#allocation15_spill] sm:$0xff] }
 0x52b   : > { %4320 = vst [vmem:[#allocation26_spill] sm:$0xff] %v3618_v14  ;;  %4321 = vst [vmem:[#allocation25_spill] sm:$0xff] %v3621_v52  ;;  %v1984_v38 = vmul.f32 %v3496_v32, %v3618_v14  ;;  %v1983_v19 = vmul.f32 %v3496_v32, %v3621_v52  ;;  %v2007_v53 = vmul.f32 %v3500_v56, %v3631_v54 }
 0x52c   : > { %4323 = vst [vmem:[#allocation29_spill] sm:$0xff] %v3631_v54  ;;  %v1985_v46 = vmul.f32 %v3496_v32, %v3634_v2  ;;  %4324 = vst [vmem:[#allocation28_spill] sm:$0xff] %v3650_v34  ;;  %v2009_v15 = vmul.f32 %v3500_v56, %v3647_v41  ;;  %v2008_v32 = vmul.f32 %v3500_v56, %v3650_v34 }
 0x52d   : > { %1991 = vrot.lane.b32.xlu1 %v1984_v38, %s2717_s15  ;;  %1989 = vrot.lane.b32.xlu0 %v1983_v19, %s2717_s15  ;;  %4326 = vst [vmem:[#allocation24_spill] sm:$0xff] %v3658_v63  ;;  %v1502_v29 = vrot.slane %v1413_v59, %v4327_v25  ;;  %v2250_v38 = vmul.f32 %v3507_v31, %v3655_v5 }
 0x52e   : > { %v1783_v27 = vrot.slane %v3607_v43, %v4302_v17  ;;  %v2249_v19 = vmul.f32 %v3507_v31, %v3658_v63  ;;  %v3675_v0 = vrot.slane %v1498_v10, %v4314_v22  ;;  %v1506_v48 = vrot.slane %v3610_v4, %v4314_v22  ;;  %v4329_v10 = vld [vmem:[#allocation22_spill] sm:$0xff] }
 0x52f   : > { %v3678_v56 = vrot.slane %v1502_v29, %v4314_v22  ;;  %v1539_v29 = vrot.slane %v1413_v59, %v4329_v10  ;;  %v1838_v59 = vrot.slane %v3607_v43, %v4327_v25  ;;  %v2083_v25 = vmul.f32 %v3558_v49, %v3655_v5 }
 0x530   : > { %v2031_v31 = vmul.f32 %v3512_v16, %v3675_v0  ;;  %v1952_v61 = vmul.f32 %v3591_v28, %v3647_v41 }
 0x531   : > { %2013 = vrot.lane.b32.xlu1 %v2007_v53, %s2717_s15  ;;  %1993 = vrot.lane.b32.xlu0 %v1985_v46, %s2717_s15  ;;  %v3685_v53 = vrot.slane %v1783_v27, %v4302_v17  ;;  %v1787_v46 = vrot.slane %v3607_v43, %v4322_v40  ;;  %v1834_v40 = vrot.slane %v3607_v43, %v4314_v22 }
 0x533   : > { %4328 = vst [vmem:[#allocation27_spill] sm:$0xff] %v3685_v53 }
 0x535   : > { %2017 = vrot.lane.b32.xlu1 %v2009_v15, %s2717_s15  ;;  %2015 = vrot.lane.b32.xlu0 %v2008_v32, %s2717_s15  ;;  %v2032_v15 = vmul.f32 %v3512_v16, %v3678_v56  ;;  %v3694_v32 = vrot.slane %v1506_v48, %v4314_v22  ;;  %v3709_v48 = vrot.slane %v1539_v29, %v4317_v50 }
 0x537   : > { %v2033_v27 = vmul.f32 %v3512_v16, %v3694_v32  ;;  %v2056_v16 = vmul.f32 %v3514_v47, %v3709_v48  ;;  %v1962_v13 = vmul.f32 %v3525_v1, %v3694_v32 }
 0x539   : > { %2257 = vrot.lane.b32.xlu1 %v2250_v38, %s2717_s15  ;;  %2255 = vrot.lane.b32.xlu0 %v2249_v19, %s2717_s15  ;;  %v3700_v38 = vrot.slane %v1787_v46, %v4302_v17  ;;  %v2273_v19 = vmul.f32 %v3516_v24, %v3685_v53  ;;  %v3715_v17 = vrot.slane %v1834_v40, %v4314_v22 }
 0x53b   : > { %4330 = vst [vmem:[#allocation30_spill] sm:$0xff] %v3700_v38  ;;  %4331 = vst [vmem:[#allocation4_spill] sm:$0xff] %v3715_v17  ;;  %v2274_v46 = vmul.f32 %v3516_v24, %v3700_v38  ;;  %v2297_v24 = vmul.f32 %v3518_v33, %v3715_v17 }
 0x53d   : > { %2037 = vrot.lane.b32.xlu1 %v2031_v31, %s2717_s15  ;;  %2039 = vrot.lane.b32.xlu0 %v2032_v15, %s2717_s15  ;;  %v3722_v31 = vrot.slane %v1535_v62, %v4317_v50  ;;  %v1543_v15 = vrot.slane %v3610_v4, %v4317_v50  ;;  %v1885_v62 = vrot.slane %v3607_v43, %v4317_v50 }
 0x53f   : > { %v2055_v29 = vmul.f32 %v3514_v47, %v3722_v31  ;;  %v3735_v40 = vrot.slane %v1543_v15, %v4317_v50  ;;  %v2107_v15 = vmul.f32 %v3536_v51, %v3700_v38 }
 0x541   : > { %2041 = vrot.lane.b32.xlu1 %v2033_v27, %s2717_s15  ;;  %2279 = vrot.lane.b32.xlu0 %v2273_v19, %s2717_s15  ;;  %v2057_v4 = vmul.f32 %v3514_v47, %v3735_v40  ;;  %v3746_v27 = vrot.slane %v1838_v59, %v4314_v22  ;;  %v3749_v19 = vrot.slane %v1885_v62, %v4317_v50 }
 0x542   : > { %v1889_v47 = vrot.slane %v3607_v43, %v4329_v10  ;;  %v2082_v22 = vmul.f32 %v3558_v49, %v3658_v63  ;;  %v2348_v43 = vmul.f32 %v3566_v7, %v3658_v63  ;;  %v2106_v49 = vmul.f32 %v3536_v51, %v3685_v53 }
 0x543   : > { %4332 = vst [vmem:[#allocation6_spill] sm:$0xff] %v3746_v27  ;;  %4333 = vst [vmem:[#allocation16_spill] sm:$0xff] %v3749_v19  ;;  %v2372_v10 = vmul.f32 %v3520_v44, %v3685_v53  ;;  %v2130_v51 = vmul.f32 %v3551_v3, %v3715_v17 }
 0x544   : > { %v3766_v59 = vrot.slane %v1889_v47, %v4317_v50  ;;  %v2131_v50 = vmul.f32 %v3551_v3, %v3746_v27  ;;  %v2154_v3 = vmul.f32 %v3563_v11, %v3749_v19  ;;  %v3833_v47 = vpop.permute.xlu1 %2116 }
 0x545   : > { %2281 = vrot.lane.b32.xlu1 %v2274_v46, %s2717_s15  ;;  %2063 = vrot.lane.b32.xlu0 %v2056_v16, %s2717_s15  ;;  %v2298_v46 = vmul.f32 %v3518_v33, %v3746_v27  ;;  %v2321_v16 = vmul.f32 %v3527_v23, %v3749_v19 }
 0x546   : > { %4334 = vst [vmem:[#allocation23_spill] sm:$0xff] %v3766_v59  ;;  %v2322_v33 = vmul.f32 %v3527_v23, %v3766_v59  ;;  %v2349_v23 = vmul.f32 %v3566_v7, %v3655_v5  ;;  %v2373_v7 = vmul.f32 %v3520_v44, %v3700_v38  ;;  %v2421_v62 = vmul.f32 %v3541_v12, %v3766_v59  ;;  %v2607_v44 = vld [vmem:[%s4161_s3 + $0x10] sm:$0xf] }
 0x547   : > { %v1950_v38 = vmul.f32 %v3591_v28, %v3631_v54 }
 0x549   : > { %2061 = vrot.lane.b32.xlu1 %v2055_v29, %s2717_s15  ;;  %2303 = vrot.lane.b32.xlu0 %v2297_v24, %s2717_s15  ;;  %v2155_v29 = vmul.f32 %v3563_v11, %v3766_v59  ;;  %v2396_v24 = vmul.f32 %v3574_v21, %v3715_v17  ;;  %v2420_v11 = vmul.f32 %v3541_v12, %v3749_v19 }
 0x54a   : > { %v1943_v17 = vmul.f32 %v3589_v8, %v3621_v52 }
 0x54c   : > { %v1953_v5 = vadd.f32 %v1950_v38, %v1943_v17  ;;  %v2216_v38 = vmul.f32 %v3595_v26, %v3631_v54  ;;  %v1951_v17 = vmul.f32 %v3591_v28, %v3650_v34 }
 0x54d   : > { %2065 = vrot.lane.b32.xlu1 %v2057_v4, %s2717_s15  ;;  %2090 = vrot.lane.b32.xlu0 %v2083_v25, %s2718_s16  ;;  %v2397_v4 = vmul.f32 %v3574_v21, %v3746_v27  ;;  %v2422_v25 = vmul.f32 %v3541_v12, %v3547_v20  ;;  %v3824_v21 = vpop.permute.xlu0 %2283 }
 0x551   : > { %2305 = vrot.lane.b32.xlu1 %v2298_v46, %s2717_s15  ;;  %2327 = vrot.lane.b32.xlu0 %v2321_v16, %s2717_s15  ;;  %v2608_v46 = vld [vmem:[%s4161_s3 + $0x1c] sm:$0xf]  ;;  %v3827_v16 = vpop.permute.xlu0 %2307 }
 0x552   : > { %4335 = vst [vmem:[#allocation7_spill] sm:$0xff] %v3827_v16 }
 0x555   : > { %2088 = vrot.lane.b32.xlu1 %v2082_v22, %s2718_s16  ;;  %2114 = vrot.lane.b32.xlu0 %v2107_v15, %s2718_s16  ;;  %v3830_v12 = vpop.permute.xlu0 %2331  ;;  %v3838_v15 = vpop.permute.xlu1 %2140 }
 0x556   : > { %4336 = vst [vmem:[#allocation12_spill] sm:$0xff] %v3830_v12 }
 0x559   : > { %2329 = vrot.lane.b32.xlu1 %v2322_v33, %s2717_s15  ;;  %2354 = vrot.lane.b32.xlu0 %v2348_v43, %s2718_s16  ;;  %v3836_v22 = vpop.permute.xlu0 %2358  ;;  %v3843_v43 = vpop.permute.xlu1 %2164 }
 0x55a   : > { %4337 = vst [vmem:[#allocation9_spill] sm:$0xff] %v3836_v22 }
 0x55d   : > { %2112 = vrot.lane.b32.xlu1 %v2106_v49, %s2718_s16  ;;  %2138 = vrot.lane.b32.xlu0 %v2131_v50, %s2718_s16  ;;  %v3841_v33 = vpop.permute.xlu0 %2382 }
 0x55e   : > { %4338 = vst [vmem:[#allocation11_spill] sm:$0xff] %v3841_v33 }
 0x561   : > { %2356 = vrot.lane.b32.xlu1 %v2349_v23, %s2718_s16  ;;  %2378 = vrot.lane.b32.xlu0 %v2372_v10, %s2718_s16  ;;  %v3845_v49 = vpop.permute.xlu0 %2406 }
 0x562   : > { %4339 = vst [vmem:[#allocation19_spill] sm:$0xff] %v3845_v49 }
 0x565   : > { %2136 = vrot.lane.b32.xlu1 %v2130_v51, %s2718_s16  ;;  %2162 = vrot.lane.b32.xlu0 %v2155_v29, %s2718_s16 }
 0x569   : > { %2380 = vrot.lane.b32.xlu1 %v2373_v7, %s2718_s16  ;;  %2402 = vrot.lane.b32.xlu0 %v2396_v24, %s2718_s16 }
 0x56d   : > { %2160 = vrot.lane.b32.xlu1 %v2154_v3, %s2718_s16  ;;  %2428 = vrot.lane.b32.xlu0 %v2421_v62, %s2718_s16 }
 0x571   : > { %2404 = vrot.lane.b32.xlu1 %v2397_v4, %s2718_s16  ;;  %1570 = vperm.xlu0 %2684, %v2607_v44  }
 0x575   : > { %2426 = vrot.lane.b32.xlu1 %v2420_v11, %s2718_s16  ;;  %2689 = vset.pattern.permute.xlu0 %v4286_v58 }
 0x576   : > { %1682 = vperm.xlu0 %2689, %v2607_v44  }
 0x579   : > { %2430 = vrot.lane.b32.xlu1 %v2422_v25, %s2718_s16 }
 0x57a   : > { %2692 = vset.pattern.permute.xlu0 %v4284_v35 }
 0x57b   : > { %1828 = vperm.xlu0 %2692, %v2608_v46  }
 0x57d   : > { %1608 = vperm.xlu1 %2687, %v2607_v44  }
 0x57f   : > { %2695 = vset.pattern.permute.xlu0 %v4298_v55 }
 0x581   : > { %2688 = vset.pattern.permute.xlu1 %v4284_v35 }
 0x582   : > { %1645 = vperm.xlu1 %2688, %v2607_v44  }
 0x586   : > { %2690 = vset.pattern.permute.xlu1 %v4285_v57 }
 0x587   : > { %1724 = vperm.xlu1 %2690, %v2608_v46  }
 0x58b   : > { %2691 = vset.pattern.permute.xlu1 %v4298_v55 }
 0x58c   : > { %1777 = vperm.xlu1 %2691, %v2608_v46  }
 0x590   : > { %2693 = vset.pattern.permute.xlu1 %v4286_v58 }
 0x591   : > { %1879 = vperm.xlu1 %2693, %v2608_v46   ;;  %v1945_v46 = vmul.f32 %v3589_v8, %v3634_v2 }
 0x593   : > { %v1955_v20 = vadd.f32 %v1952_v61, %v1945_v46  ;;  %v1972_v61 = vmul.f32 %v3549_v6, %v3735_v40 }
 0x595   : > { %2694 = vset.pattern.permute.xlu1 %v4285_v57  ;;  %v1965_v59 = vadd.f32 %v1962_v13, %v1955_v20  ;;  %v1960_v20 = vmul.f32 %v3525_v1, %v3675_v0 }
 0x597   : > { %v1975_v46 = vadd.f32 %v1972_v61, %v1965_v59  ;;  %v1963_v49 = vadd.f32 %v1960_v20, %v1953_v5  ;;  %v1944_v59 = vmul.f32 %v3589_v8, %v3618_v14  ;;  %v2209_v61 = vmul.f32 %v3593_v18, %v3621_v52 }
 0x598   : > { %v1970_v8 = vmul.f32 %v3549_v6, %v3722_v31 }
 0x599   : > { %v2219_v22 = vadd.f32 %v2216_v38, %v2209_v61  ;;  %v2218_v61 = vmul.f32 %v3595_v26, %v3647_v41 }
 0x59a   : > { %v1973_v28 = vadd.f32 %v1970_v8, %v1963_v49 }
 0x59f   : > { %v1990_v50 = vpop.permute.xlu0 %1989  ;;  %v3847_v55 = vpop.permute.xlu1 %1991 }
 0x5a0   : > { %v1995_v20 = vsel %vm450_vm0, %v1990_v50, %v3847_v55  ;;  %v2226_v50 = vmul.f32 %v3597_v45, %v3675_v0 }
 0x5a1   : > { %v2000_v16 = vadd.f32 %v1995_v20, %v1973_v28 }
 0x5a3   : > { %v3849_v23 = vpop.permute.xlu0 %1993  ;;  %v2014_v10 = vpop.permute.xlu1 %2013 }
 0x5a4   : > { %v2002_v13 = vadd.f32 %v3849_v23, %v1975_v46  ;;  %v2210_v46 = vmul.f32 %v3593_v18, %v3618_v14 }
 0x5a7   : > { %v3851_v51 = vpop.permute.xlu0 %2015  ;;  %v3853_v29 = vpop.permute.xlu1 %2017 }
 0x5a8   : > { %v2026_v58 = vadd.f32 %v3853_v29, %v2002_v13  ;;  %v2217_v13 = vmul.f32 %v3595_v26, %v3650_v34  ;;  %v1954_v34 = vadd.f32 %v1951_v17, %v1944_v59  ;;  %v1961_v26 = vmul.f32 %v3525_v1, %v3678_v56 }
 0x5aa   : > { %v2220_v12 = vadd.f32 %v2217_v13, %v2210_v46 }
 0x5ab   : > { %v3855_v7 = vpop.permute.xlu0 %2255  ;;  %v3857_v24 = vpop.permute.xlu1 %2257 }
 0x5ac   : > { %v2261_v1 = vsel %vm450_vm0, %v3855_v7, %v3857_v24 }
 0x5af   : > { %v3859_v3 = vpop.permute.xlu0 %2039  ;;  %v2038_v62 = vpop.permute.xlu1 %2037 }
 0x5b3   : > { %v3861_v44 = vpop.permute.xlu0 %2279  ;;  %v3863_v4 = vpop.permute.xlu1 %2041 }
 0x5b4   : > { %v2050_v5 = vadd.f32 %v3863_v4, %v2026_v58  ;;  %v2019_v58 = vsel %vm450_vm0, %v2014_v10, %v3851_v51  ;;  %v2043_v10 = vsel %vm450_vm0, %v2038_v62, %v3859_v3  ;;  %v1964_v62 = vadd.f32 %v1961_v26, %v1954_v34 }
 0x5b5   : > { %v2024_v46 = vadd.f32 %v2019_v58, %v2000_v16  ;;  %v2237_v16 = vmul.f32 %v3599_v30, %v3709_v48  ;;  %v2228_v34 = vmul.f32 %v3597_v45, %v3694_v32 }
 0x5b7   : > { %v3865_v11 = vpop.permute.xlu0 %2063  ;;  %v3867_v25 = vpop.permute.xlu1 %2281 }
 0x5bb   : > { %v3873_v42 = vpop.permute.xlu0 %2303  ;;  %v2062_v60 = vpop.permute.xlu1 %2061 }
 0x5bc   : > { %v2067_v8 = vsel %vm450_vm0, %v2062_v60, %v3865_v11 }
 0x5bf   : > { %v3875_v39 = vpop.permute.xlu0 %2090  ;;  %v3877_v37 = vpop.permute.xlu1 %2065 }
 0x5c0   : > { %v2074_v52 = vadd.f32 %v3877_v37, %v2050_v5  ;;  %v2095_v14 = vsel %vm619_vm1, %v3875_v39, %v3603_v9  ;;  %v2211_v5 = vmul.f32 %v3593_v18, %v3634_v2  ;;  %v2227_v9 = vmul.f32 %v3597_v45, %v3678_v56 }
 0x5c1   : > { %v2229_v18 = vadd.f32 %v2226_v50, %v2219_v22 }
 0x5c2   : > { %v2101_v59 = vadd.f32 %v2095_v14, %v2074_v52  ;;  %v2230_v13 = vadd.f32 %v2227_v9, %v2220_v12  ;;  %v2236_v14 = vmul.f32 %v3599_v30, %v3722_v31  ;;  %v2048_v52 = vadd.f32 %v2043_v10, %v2024_v46 }
 0x5c3   : > { %v3881_v19 = vpop.permute.xlu0 %2327  ;;  %v3883_v27 = vpop.permute.xlu1 %2305  ;;  %v2221_v28 = vadd.f32 %v2218_v61, %v2211_v5  ;;  %v1971_v61 = vmul.f32 %v3549_v6, %v3709_v48  ;;  %v2285_v10 = vsel %vm450_vm0, %v3861_v44, %v3867_v25 }
 0x5c4   : > { %v2239_v50 = vadd.f32 %v2236_v14, %v2229_v18  ;;  %v2072_v60 = vadd.f32 %v2067_v8, %v2048_v52  ;;  %v2240_v5 = vadd.f32 %v2237_v16, %v2230_v13  ;;  %v2020_v13 = vsel %vm450_vm0, %v3851_v51, %v3853_v29 }
 0x5c5   : > { %v2231_v46 = vadd.f32 %v2228_v34, %v2221_v28  ;;  %v2044_v51 = vsel %vm450_vm0, %v3859_v3, %v3863_v4 }
 0x5c6   : > { %v2266_v9 = vadd.f32 %v3855_v7, %v2239_v50  ;;  %v2267_v18 = vadd.f32 %v2261_v1, %v2240_v5  ;;  %v2309_v7 = vsel %vm450_vm0, %v3873_v42, %v3883_v27  ;;  %v2286_v50 = vsel %vm450_vm0, %v3867_v25, %v3824_v21 }
 0x5c7   : > { %v3891_v53 = vpop.permute.xlu0 %2114  ;;  %v3893_v57 = vpop.permute.xlu1 %2088 }
 0x5c8   : > { %v2119_v49 = vsel %vm619_vm1, %v3891_v53, %v3833_v47  ;;  %v2290_v6 = vadd.f32 %v3861_v44, %v2266_v9  ;;  %v2094_v21 = vsel %vm619_vm1, %v3893_v57, %v3875_v39  ;;  %v4342_v39 = vld [vmem:[#allocation9_spill] sm:$0xff] }
 0x5c9   : > { %v2125_v20 = vadd.f32 %v2119_v49, %v2101_v59  ;;  %v2099_v59 = vadd.f32 %v3893_v57, %v2072_v60 }
 0x5cb   : > { %v3899_v63 = vpop.permute.xlu0 %2354  ;;  %v3901_v35 = vpop.permute.xlu1 %2329 }
 0x5cc   : > { %v2333_v44 = vsel %vm450_vm0, %v3881_v19, %v3901_v35 }
 0x5cf   : > { %v3921_v54 = vpop.permute.xlu0 %2138  ;;  %v3923_v33 = vpop.permute.xlu1 %2112 }
 0x5d0   : > { %v2143_v47 = vsel %vm619_vm1, %v3921_v54, %v3838_v15  ;;  %v2123_v26 = vadd.f32 %v3923_v33, %v2099_v59 }
 0x5d1   : > { %v2149_v22 = vadd.f32 %v2143_v47, %v2125_v20  ;;  %v1974_v47 = vadd.f32 %v1971_v61, %v1964_v62  ;;  %v2314_v20 = vadd.f32 %v3873_v42, %v2290_v6  ;;  %v2262_v62 = vsel %vm450_vm0, %v3857_v24, %v3601_v36  ;;  %v4341_v61 = vld [vmem:[#allocation12_spill] sm:$0xff] }
 0x5d2   : > { %v2068_v36 = vsel %vm450_vm0, %v3865_v11, %v3877_v37  ;;  %v2334_v9 = vsel %vm450_vm0, %v3901_v35, %v4341_v61 }
 0x5d3   : > { %v3943_v38 = vpop.permute.xlu0 %2378  ;;  %v3945_v17 = vpop.permute.xlu1 %2356  ;;  %v2338_v16 = vadd.f32 %v3881_v19, %v2314_v20 }
 0x5d4   : > { %v2360_v42 = vsel %vm619_vm1, %v3899_v63, %v3945_v17 }
 0x5d5   : > { %v2365_v60 = vadd.f32 %v3899_v63, %v2338_v16  ;;  %v4347_v16 = vmov 3  }
 0x5d7   : > { %v3958_v58 = vpop.permute.xlu0 %2162  ;;  %v2137_v15 = vpop.permute.xlu1 %2136 }
 0x5d8   : > { %v2167_v12 = vsel %vm619_vm1, %v3958_v58, %v3843_v43  ;;  %v1996_v43 = vsel %vm450_vm0, %v3847_v55, %v3849_v23  ;;  %v2238_v55 = vmul.f32 %v3599_v30, %v3735_v40  ;;  %v2291_v23 = vadd.f32 %v2285_v10, %v2267_v18 }
 0x5d9   : > { %v2173_v49 = vadd.f32 %v2167_v12, %v2149_v22  ;;  %v2001_v8 = vadd.f32 %v1996_v43, %v1974_v47  ;;  %v2147_v14 = vadd.f32 %v2137_v15, %v2123_v26  ;;  %v4340_v12 = vld [vmem:[#allocation7_spill] sm:$0xff] }
 0x5da   : > { %v2241_v52 = vadd.f32 %v2238_v55, %v2231_v46  ;;  %v2315_v29 = vadd.f32 %v2309_v7, %v2291_v23  ;;  %v2310_v34 = vsel %vm450_vm0, %v3883_v27, %v4340_v12  ;;  %v2118_v27 = vsel %vm619_vm1, %v3923_v33, %v3891_v53  ;;  %v4343_v53 = vld [vmem:[#allocation11_spill] sm:$0xff] }
 0x5db   : > { %2181 = vrot.lane.b32.xlu1 %v2173_v49, %s2719_s23  ;;  %v2381_v45 = vpop.permute.xlu1 %2380  ;;  %v2025_v28 = vadd.f32 %v2020_v13, %v2001_v8  ;;  %v2403_v3 = vpop.permute.xlu0 %2402  ;;  %v2389_v49 = vadd.f32 %v3943_v38, %v2365_v60  ;;  %v2361_v46 = vsel %vm619_vm1, %v3945_v17, %v4342_v39 }
 0x5dc   : > { %v2339_v24 = vadd.f32 %v2333_v44, %v2315_v29  ;;  %v2268_v4 = vadd.f32 %v2262_v62, %v2241_v52  ;;  %v2384_v19 = vsel %vm619_vm1, %v3943_v38, %v2381_v45  ;;  %v2142_v38 = vsel %vm619_vm1, %v2137_v15, %v3921_v54  ;;  %v4344_v54 = vld [vmem:[#allocation19_spill] sm:$0xff] }
 0x5dd   : > { %v2049_v1 = vadd.f32 %v2044_v51, %v2025_v28  ;;  %v2413_v57 = vadd.f32 %v2403_v3, %v2389_v49  ;;  %v2385_v33 = vsel %vm619_vm1, %v2381_v45, %v4343_v53  ;;  %v2606_v45 = vld [vmem:[%s4161_s3 + $0x4] sm:$0xf]  ;;  %v4345_v51 = vmov 2   ;;  %v4355_v49 = vld [vmem:[#allocation23_spill] sm:$0xff] }
 0x5de   : > { %v2366_v37 = vadd.f32 %v2360_v42, %v2339_v24  ;;  %v2292_v25 = vadd.f32 %v2286_v50, %v2268_v4  ;;  %v4348_v42 = vld [vmem:[#allocation17_spill] sm:$0xff]  ;;  %v4349_v50 = vmov 0   ;;  %v4350_v24 = vld [vmem:[#allocation27_spill] sm:$0xff]  ;;  %v4351_v4 = vld [vmem:[#allocation30_spill] sm:$0xff] }
 0x5df   : > { %v2161_v30 = vpop.permute.xlu1 %2160  ;;  %v2073_v5 = vadd.f32 %v2068_v36, %v2049_v1  ;;  %v2429_v18 = vpop.permute.xlu0 %2428 }
 0x5e0   : > { %v2171_v22 = vadd.f32 %v2161_v30, %v2147_v14  ;;  %v2390_v10 = vadd.f32 %v2384_v19, %v2366_v37  ;;  %v2316_v59 = vadd.f32 %v2310_v34, %v2292_v25  ;;  %v2166_v55 = vsel %vm619_vm1, %v2161_v30, %v3958_v58  ;;  %v4346_v30 = vld [vmem:[#allocation24_spill] sm:$0xff]  ;;  %v4353_v34 = vld [vmem:[#allocation6_spill] sm:$0xff] }
 0x5e1   : > { %v2100_v43 = vadd.f32 %v2094_v21, %v2073_v5  ;;  %v4352_v19 = vld [vmem:[#allocation4_spill] sm:$0xff] }
 0x5e2   : > { %2177 = vrot.lane.b32.xlu1 %v2171_v22, %s2719_s23  ;;  %v2340_v7 = vadd.f32 %v2334_v9, %v2316_v59 }
 0x5e3   : > { %v2405_v11 = vpop.permute.xlu1 %2404  ;;  %v2124_v35 = vadd.f32 %v2118_v27, %v2100_v43  ;;  %v4356_v27 = vld [vmem:[#allocation14_spill] sm:$0xff] }
 0x5e4   : > { %v2408_v63 = vsel %vm619_vm1, %v2403_v3, %v2405_v11  ;;  %v2367_v8 = vadd.f32 %v2361_v46, %v2340_v7  ;;  %v2409_v15 = vsel %vm619_vm1, %v2405_v11, %v4344_v54  ;;  %v4354_v11 = vld [vmem:[#allocation16_spill] sm:$0xff] }
 0x5e5   : > { %v2414_v47 = vadd.f32 %v2408_v63, %v2390_v10  ;;  %v2148_v17 = vadd.f32 %v2142_v38, %v2124_v35 }
 0x5e6   : > { %v2391_v44 = vadd.f32 %v2385_v33, %v2367_v8  ;;  %v4359_v33 = vld [vmem:[#allocation20_spill] sm:$0xff] }
 0x5e7   : > { %v2427_v6 = vpop.permute.xlu1 %2426  ;;  %v2172_v14 = vadd.f32 %v2166_v55, %v2148_v17 }
 0x5e8   : > { %v2432_v26 = vsel %vm619_vm1, %v2427_v6, %v2429_v18  ;;  %v2437_v13 = vadd.f32 %v2427_v6, %v2413_v57  ;;  %v2415_v58 = vadd.f32 %v2409_v15, %v2391_v44  ;;  %v4357_v57 = vld [vmem:[#allocation13_spill] sm:$0xff] }
 0x5e9   : > { %v2438_v23 = vadd.f32 %v2432_v26, %v2414_v47  ;;  %v4358_v6 = vld [vmem:[#allocation21_spill] sm:$0xff] }
 0x5ea   : > { %2443 = vrot.lane.b32.xlu0 %v2437_v13, %s2720_s24 }
 0x5eb   : > { %2445 = vrot.lane.b32.xlu1 %v2438_v23, %s2720_s24  ;;  %v2431_v20 = vpop.permute.xlu1 %2430 }
 0x5ec   : > { %v2433_v52 = vsel %vm619_vm1, %v2429_v18, %v2431_v20  ;;  %v260_v18 = vld [vmem:[%s4162_s4] sm:$0xf] }
 0x5ed   : > { %v2439_v62 = vadd.f32 %v2433_v52, %v2415_v58  ;;  %v4361_v52 = vld [vmem:[#allocation32_spill] sm:$0xff] }
 0x5ee   : > { %2179 = vrot.lane.b32.xlu0 %v2172_v14, %s2719_s23  ;;  %v4360_v14 = vld [vmem:[#allocation33_spill] sm:$0xff] }
 0x5ef   : > { %1419 = vperm.xlu1 %2694, %v2606_v45  }
 0x5f0   : > { %v1571_v29 = vpop.permute.xlu0 %1570 }
 0x5f1   : > { %v1592_v28 = vmul.f32 %v4346_v30, %v1571_v29  ;;  %v1593_v22 = vmul.f32 %v4348_v42, %v1571_v29 }
 0x5f2   : > { %2447 = vrot.lane.b32.xlu0 %v2439_v62, %s2720_s24 }
 0x5f3   : > { %2696 = vset.pattern.permute.xlu1 %v4345_v51 }
 0x5f4   : > { %1492 = vperm.xlu1 %2696, %v2606_v45  }
 0x5f5   : > { %v1683_v37 = vpop.permute.xlu0 %1682 }
 0x5f6   : > { %1455 = vperm.xlu0 %2695, %v2606_v45   ;;  %v1703_v25 = vmul.f32 %v4354_v11, %v1683_v37  ;;  %v1704_v63 = vmul.f32 %v4355_v49, %v1683_v37 }
 0x5f8   : > { %2697 = vset.pattern.permute.xlu1 %v4347_v16 }
 0x5f9   : > { %1529 = vperm.xlu1 %2697, %v2606_v45  }
 0x5fa   : > { %1596 = vrot.lane.b32.xlu0 %v1592_v28, %s2717_s15  ;;  %v1829_v38 = vpop.permute.xlu0 %1828 }
 0x5fb   : > { %2698 = vset.pattern.permute.xlu0 %v4349_v50  ;;  %v1858_v47 = vmul.f32 %v4352_v19, %v1829_v38  ;;  %v1860_v7 = vmul.f32 %v4358_v6, %v1829_v38  ;;  %v1859_v35 = vmul.f32 %v4353_v34, %v1829_v38 }
 0x5fc   : > { %v1609_v36 = vpop.permute.xlu1 %1608 }
 0x5fd   : > { %v1629_v3 = vmul.f32 %v4350_v24, %v1609_v36  ;;  %1598 = vrot.lane.b32.xlu1 %v1593_v22, %s2717_s15  ;;  %v1630_v1 = vmul.f32 %v4351_v4, %v1609_v36 }
 0x5ff   : > { %1633 = vrot.lane.b32.xlu0 %v1629_v3, %s2717_s15 }
 0x601   : > { %1635 = vrot.lane.b32.xlu1 %v1630_v1, %s2717_s15  ;;  %v1646_v60 = vpop.permute.xlu1 %1645 }
 0x602   : > { %v1666_v12 = vmul.f32 %v4352_v19, %v1646_v60  ;;  %v1667_v21 = vmul.f32 %v4353_v34, %v1646_v60 }
 0x604   : > { %1670 = vrot.lane.b32.xlu0 %v1666_v12, %s2717_s15 }
 0x605   : > { %1672 = vrot.lane.b32.xlu1 %v1667_v21, %s2717_s15 }
 0x606   : > { %v1725_v5 = vpop.permute.xlu1 %1724 }
 0x607   : > { %v1756_v61 = vmul.f32 %v4346_v30, %v1725_v5  ;;  %v1757_v9 = vmul.f32 %v4348_v42, %v1725_v5  ;;  %v1758_v10 = vmul.f32 %v4356_v27, %v1725_v5  ;;  %v4362_v30 = vld [vmem:[#allocation31_spill] sm:$0xff]  ;;  %v4366_v27 = vld [vmem:[#allocation28_spill] sm:$0xff] }
 0x608   : > { %1707 = vrot.lane.b32.xlu0 %v1703_v25, %s2717_s15 }
 0x609   : > { %1709 = vrot.lane.b32.xlu1 %v1704_v63, %s2717_s15 }
 0x60b   : > { %v1778_v59 = vpop.permute.xlu1 %1777 }
 0x60c   : > { %1762 = vrot.lane.b32.xlu0 %v1756_v61, %s2718_s16  ;;  %v1807_v43 = vmul.f32 %v4350_v24, %v1778_v59  ;;  %v1809_v39 = vmul.f32 %v4357_v57, %v1778_v59  ;;  %v1808_v46 = vmul.f32 %v4351_v4, %v1778_v59  ;;  %v4367_v57 = vld [vmem:[#allocation26_spill] sm:$0xff] }
 0x60d   : > { %1764 = vrot.lane.b32.xlu1 %v1757_v9, %s2718_s16 }
 0x610   : > { %1766 = vrot.lane.b32.xlu0 %v1758_v10, %s2718_s16  ;;  %v1880_v26 = vpop.permute.xlu1 %1879 }
 0x611   : > { %1813 = vrot.lane.b32.xlu1 %v1807_v43, %s2718_s16  ;;  %v1910_v13 = vmul.f32 %v4355_v49, %v1880_v26  ;;  %v1909_v53 = vmul.f32 %v4354_v11, %v1880_v26  ;;  %v1911_v55 = vmul.f32 %v4359_v33, %v1880_v26  ;;  %v4364_v11 = vld [vmem:[#allocation29_spill] sm:$0xff] }
 0x612   : > { %v4365_v49 = vld [vmem:[#allocation25_spill] sm:$0xff] }
 0x614   : > { %1815 = vrot.lane.b32.xlu0 %v1808_v46, %s2718_s16 }
 0x615   : > { %1817 = vrot.lane.b32.xlu1 %v1809_v39, %s2718_s16 }
 0x618   : > { %1931 = vperm.xlu0 %2698, %v260_v18  }
 0x619   : > { %1864 = vrot.lane.b32.xlu1 %v1858_v47, %s2718_s16 }
 0x61c   : > { %1868 = vrot.lane.b32.xlu0 %v1860_v7, %s2718_s16 }
 0x61d   : > { %1866 = vrot.lane.b32.xlu1 %v1859_v35, %s2718_s16  ;;  %2699 = vset.pattern.permute.xlu0 %v4347_v16  ;;  %v4363_v16 = vld [vmem:[#allocation34_spill] sm:$0xff] }
 0x620   : > { %1917 = vrot.lane.b32.xlu0 %v1910_v13, %s2718_s16 }
 0x621   : > { %1915 = vrot.lane.b32.xlu1 %v1909_v53, %s2718_s16 }
 0x625   : > { %1919 = vrot.lane.b32.xlu1 %v1911_v55, %s2718_s16 }
 0x64d   : > { %v2182_v23 = vpop.permute.xlu1 %2181 }
 0x654   : > { %v2178_v8 = vpop.permute.xlu1 %2177 }
 0x65c   : > { %v2444_v17 = vpop.permute.xlu0 %2443 }
 0x65d   : > { %v2446_v54 = vpop.permute.xlu1 %2445 }
 0x65e   : > { %v2449_v62 = vsel %vm1324_vm3, %v2444_v17, %v2446_v54 }
 0x65f   : > { %v2453_v28 = vmul.f32 %v2449_v62, %v4362_v30 }
 0x660   : > { %v2180_v15 = vpop.permute.xlu0 %2179 }
 0x661   : > { %v2183_v20 = vsel %vm1046_vm2, %v2178_v8, %v2180_v15  ;;  %v2184_v44 = vsel %vm1046_vm2, %v2180_v15, %v2182_v23 }
 0x662   : > { %v2187_v45 = vmul.f32 %v2183_v20, %v4360_v14  ;;  %v2188_v58 = vmul.f32 %v2184_v44, %v4361_v52 }
 0x664   : > { %v2448_v51 = vpop.permute.xlu0 %2447  ;;  %2193 = vrot.lane.b32.xlu1 %v2188_v58, %s2717_s15  ;;  %2191 = vrot.lane.b32.xlu0 %v2187_v45, %s2717_s15 }
 0x665   : > { %v2450_v29 = vsel %vm1324_vm3, %v2446_v54, %v2448_v51 }
 0x666   : > { %v2454_v42 = vmul.f32 %v2450_v29, %v4363_v16 }
 0x668   : > { %2459 = vrot.lane.b32.xlu1 %v2454_v42, %s2717_s15  ;;  %2457 = vrot.lane.b32.xlu0 %v2453_v28, %s2717_s15 }
 0x66e   : > { %v1420_v22 = vpop.permute.xlu1 %1419 }
 0x66f   : > { %v1451_v63 = vmul.f32 %v4365_v49, %v1420_v22  ;;  %v1452_v39 = vmul.f32 %v4367_v57, %v1420_v22  ;;  %v1453_v38 = vmul.f32 %v3634_v2, %v1420_v22 }
 0x673   : > { %v1493_v50 = vpop.permute.xlu1 %1492 }
 0x674   : > { %v1522_v59 = vmul.f32 %v3675_v0, %v1493_v50  ;;  %v1523_v26 = vmul.f32 %v3678_v56, %v1493_v50  ;;  %v1524_v13 = vmul.f32 %v3694_v32, %v1493_v50 }
 0x675   : > { %v1456_v24 = vpop.permute.xlu0 %1455 }
 0x676   : > { %v1485_v25 = vmul.f32 %v4364_v11, %v1456_v24  ;;  %v1486_v10 = vmul.f32 %v4366_v27, %v1456_v24  ;;  %v1487_v43 = vmul.f32 %v3647_v41, %v1456_v24 }
 0x678   : > { %v1530_v36 = vpop.permute.xlu1 %1529  ;;  %v1488_v9 = vadd.f32 %v1485_v25, %v1451_v63  ;;  %v1489_v7 = vadd.f32 %v1486_v10, %v1452_v39  ;;  %v1490_v35 = vadd.f32 %v1487_v43, %v1453_v38 }
 0x679   : > { %v1597_v4 = vpop.permute.xlu0 %1596  ;;  %v1559_v18 = vmul.f32 %v3722_v31, %v1530_v36  ;;  %v1560_v0 = vmul.f32 %v3709_v48, %v1530_v36  ;;  %v1561_v55 = vmul.f32 %v3735_v40, %v1530_v36 }
 0x67a   : > { %v1525_v47 = vadd.f32 %v1522_v59, %v1488_v9  ;;  %v1526_v33 = vadd.f32 %v1523_v26, %v1489_v7  ;;  %v1527_v23 = vadd.f32 %v1524_v13, %v1490_v35 }
 0x67c   : > { %v1599_v3 = vpop.permute.xlu1 %1598  ;;  %v1562_v53 = vadd.f32 %v1559_v18, %v1525_v47  ;;  %v1563_v17 = vadd.f32 %v1560_v0, %v1526_v33  ;;  %v1564_v54 = vadd.f32 %v1561_v55, %v1527_v23 }
 0x67d   : > { %v1634_v60 = vpop.permute.xlu0 %1633  ;;  %v1600_v15 = vsel %vm450_vm0, %v1597_v4, %v1599_v3 }
 0x67e   : > { %v1604_v2 = vadd.f32 %v1597_v4, %v1562_v53  ;;  %v1605_v32 = vadd.f32 %v1600_v15, %v1563_v17  ;;  %v1606_v14 = vadd.f32 %v1599_v3, %v1564_v54 }
 0x680   : > { %v1636_v1 = vpop.permute.xlu1 %1635  ;;  %v1641_v20 = vadd.f32 %v1634_v60, %v1604_v2 }
 0x681   : > { %v1671_v12 = vpop.permute.xlu0 %1670  ;;  %v1637_v56 = vsel %vm450_vm0, %v1634_v60, %v1636_v1  ;;  %v1643_v51 = vadd.f32 %v1636_v1, %v1606_v14 }
 0x682   : > { %v1642_v45 = vadd.f32 %v1637_v56, %v1605_v32  ;;  %v1678_v58 = vadd.f32 %v1671_v12, %v1641_v20 }
 0x684   : > { %v1673_v19 = vpop.permute.xlu1 %1672 }
 0x685   : > { %v1708_v21 = vpop.permute.xlu0 %1707  ;;  %v1674_v48 = vsel %vm450_vm0, %v1671_v12, %v1673_v19  ;;  %v1680_v42 = vadd.f32 %v1673_v19, %v1643_v51 }
 0x686   : > { %v1679_v62 = vadd.f32 %v1674_v48, %v1642_v45  ;;  %v1715_v29 = vadd.f32 %v1708_v21, %v1678_v58 }
 0x688   : > { %v1710_v34 = vpop.permute.xlu1 %1709 }
 0x689   : > { %v1763_v5 = vpop.permute.xlu0 %1762  ;;  %v1711_v40 = vsel %vm450_vm0, %v1708_v21, %v1710_v34  ;;  %v1717_v4 = vadd.f32 %v1710_v34, %v1680_v42 }
 0x68a   : > { %v1716_v16 = vadd.f32 %v1711_v40, %v1679_v62  ;;  %v1773_v22 = vadd.f32 %v1763_v5, %v1715_v29 }
 0x68c   : > { %v1765_v37 = vpop.permute.xlu1 %1764 }
 0x68d   : > { %v1767_v46 = vpop.permute.xlu0 %1766  ;;  %v1768_v30 = vsel %vm619_vm1, %v1763_v5, %v1765_v37 }
 0x68e   : > { %v1774_v36 = vadd.f32 %v1768_v30, %v1716_v16  ;;  %v1769_v24 = vsel %vm619_vm1, %v1765_v37, %v1767_v46 }
 0x68f   : > { %v1775_v21 = vadd.f32 %v1769_v24, %v1717_v4 }
 0x690   : > { %v1814_v61 = vpop.permute.xlu1 %1813 }
 0x691   : > { %v1816_v41 = vpop.permute.xlu0 %1815  ;;  %v1824_v60 = vadd.f32 %v1814_v61, %v1773_v22 }
 0x692   : > { %v1819_v50 = vsel %vm619_vm1, %v1814_v61, %v1816_v41 }
 0x693   : > { %v1825_v11 = vadd.f32 %v1819_v50, %v1774_v36 }
 0x694   : > { %v1818_v6 = vpop.permute.xlu1 %1817 }
 0x695   : > { %v1820_v1 = vsel %vm619_vm1, %v1816_v41, %v1818_v6 }
 0x696   : > { %v1826_v9 = vadd.f32 %v1820_v1, %v1775_v21  ;;  %v2517_v1 = vld [vmem:[#allocation2 + $0x4] sm:$0xff] }
 0x697   : > { %v1932_v31 = vpop.permute.xlu0 %1931 }
 0x698   : > { %v1865_v8 = vpop.permute.xlu1 %1864 }
 0x699   : > { %v1875_v25 = vadd.f32 %v1865_v8, %v1824_v60 }
 0x69b   : > { %v1869_v52 = vpop.permute.xlu0 %1868 }
 0x69c   : > { %v1867_v44 = vpop.permute.xlu1 %1866 }
 0x69d   : > { %v1870_v12 = vsel %vm619_vm1, %v1865_v8, %v1867_v44  ;;  %v1871_v19 = vsel %vm619_vm1, %v1867_v44, %v1869_v52 }
 0x69e   : > { %v1876_v5 = vadd.f32 %v1870_v12, %v1825_v11  ;;  %v1877_v34 = vadd.f32 %v1871_v19, %v1826_v9 }
 0x69f   : > { %v1918_v3 = vpop.permute.xlu0 %1917 }
 0x6a0   : > { %v1916_v28 = vpop.permute.xlu1 %1915 }
 0x6a1   : > { %v1921_v49 = vsel %vm619_vm1, %v1916_v28, %v1918_v3  ;;  %v1926_v27 = vadd.f32 %v1916_v28, %v1875_v25 }
 0x6a2   : > { %v1927_v10 = vadd.f32 %v1921_v49, %v1876_v5 }
 0x6a3   : > { %v1934_v57 = vadd.f32 %v1932_v31, %v1926_v27 }
 0x6a4   : > { %v1920_v63 = vpop.permute.xlu1 %1919  ;;  %v1935_v46 = vadd.f32 %v1932_v31, %v1927_v10 }
 0x6a5   : > { %v1922_v37 = vsel %vm619_vm1, %v1918_v3, %v1920_v63 }
 0x6a6   : > { %v1928_v43 = vadd.f32 %v1922_v37, %v1877_v34 }
 0x6a8   : > { %v1936_v7 = vadd.f32 %v1932_v31, %v1928_v43 }
 0x6d6   : > { %v2192_v61 = vpop.permute.xlu0 %2191  ;;  %v2194_v59 = vpop.permute.xlu1 %2193 }
 0x6d7   : > { %v2195_v39 = vsel %vm450_vm0, %v2192_v61, %v2194_v59  ;;  %v2199_v38 = vadd.f32 %v2192_v61, %v1934_v57  ;;  %v2201_v53 = vadd.f32 %v2194_v59, %v1936_v7 }
 0x6d8   : > { %v2200_v18 = vadd.f32 %v2195_v39, %v1935_v46 }
 0x6da   : > { %v2458_v47 = vpop.permute.xlu0 %2457  ;;  %v2460_v6 = vpop.permute.xlu1 %2459 }
 0x6db   : > { %v2465_v35 = vadd.f32 %v2458_v47, %v2199_v38  ;;  %v2461_v26 = vsel %vm450_vm0, %v2458_v47, %v2460_v6  ;;  %v2467_v0 = vadd.f32 %v2460_v6, %v2201_v53 }
 0x6dc   : > { %v2466_v13 = vadd.f32 %v2461_v26, %v2200_v18 }
 0x6dd   : > { %2471 = vrot.lane.b32.xlu0 %v2465_v35, %s2721_s10 }
 0x6de   : > { %2473 = vrot.lane.b32.xlu1 %v2466_v13, %s2721_s10 }
 0x6e1   : > { %2475 = vrot.lane.b32.xlu0 %v2467_v0, %s2721_s10 }
 0x74f   : > { %v2472_v33 = vpop.permute.xlu0 %2471 }
 0x750   : > { %v2474_v41 = vpop.permute.xlu1 %2473 }
 0x751   : > { %v2477_v55 = vsel %vm1353_vm4, %v2472_v33, %v2474_v41 }
 0x752   : > { %v2481_v2 = vsel %vm1358_vm5, %v2477_v55, 0.0 }
 0x753   : > { %v2476_v23 = vpop.permute.xlu0 %2475 }
 0x754   : > { %v2478_v8 = vsel %vm1353_vm4, %v2474_v41, %v2476_v23 }
 0x755   : > { %v2482_v17 = vsel %vm1358_vm5, %v2478_v8, 0.0 }
 0x756   : > { %v2483_v31 = vadd.f32 %v2482_v17, %v2481_v2 }
 0x758   : > { %2484 = vadd.xlane.f32.xlu1 %v2483_v31 }
 0x7e5   : > { %v2485_v54 = vpop.xlane.xlu1 %2484 }
 0x7e6   : > { %v2486_v15 = vmul.f32 0.00390625, %v2485_v54 }
 0x7e8   : > { %v2487_v20 = vsub.f32 %v2465_v35, %v2486_v15  ;;  %v2488_v56 = vsub.f32 %v2466_v13, %v2486_v15  ;;  %v2489_v32 = vsub.f32 %v2467_v0, %v2486_v15 }
 0x7ea   : > { %v2490_v44 = vmul.f32 %v2487_v20, %v2487_v20  ;;  %v2491_v14 = vmul.f32 %v2488_v56, %v2488_v56  ;;  %v2492_v48 = vmul.f32 %v2489_v32, %v2489_v32 }
 0x7ec   : > { %2496 = vrot.lane.b32.xlu0 %v2490_v44, %s2721_s10 }
 0x7f0   : > { %2498 = vrot.lane.b32.xlu0 %v2491_v14, %s2721_s10 }
 0x7f4   : > { %2500 = vrot.lane.b32.xlu0 %v2492_v48, %s2721_s10 }
 0x85e   : > { %v2497_v45 = vpop.permute.xlu0 %2496 }
 0x862   : > { %v2499_v52 = vpop.permute.xlu0 %2498 }
 0x863   : > { %v2502_v58 = vsel %vm1353_vm4, %v2497_v45, %v2499_v52 }
 0x864   : > { %v2506_v51 = vsel %vm1358_vm5, %v2502_v58, 0.0 }
 0x866   : > { %v2501_v40 = vpop.permute.xlu0 %2500 }
 0x867   : > { %v2503_v62 = vsel %vm1353_vm4, %v2499_v52, %v2501_v40 }
 0x868   : > { %v2507_v29 = vsel %vm1358_vm5, %v2503_v62, 0.0 }
 0x869   : > { %v2508_v30 = vadd.f32 %v2507_v29, %v2506_v51 }
 0x86b   : > { %2509 = vadd.xlane.f32.xlu0 %v2508_v30 }
 0x8f8   : > { %v2510_v28 = vpop.xlane.xlu0 %2509 }
 0x8f9   : > { %v2511_v16 = vmul.f32 0.00390625, %v2510_v28 }
 0x8fb   : > { %v2512_v42 = vadd.f32 1e-05, %v2511_v16 }
 0x8fd   : > { %2702 = vrsqrt.f32 %v2512_v42 }
 0x907   : > { %v2703_v22 = vpop.eup %2702 }
 0x908   : > { %v2516_v50 = vmul.f32 %v2703_v22, %v2489_v32  ;;  %v2514_v36 = vmul.f32 %v2703_v22, %v2487_v20  ;;  %v2515_v24 = vmul.f32 %v2703_v22, %v2488_v56 }
 0x90a   : > { %2524 = vrot.lane.b32.xlu0 %v2516_v50, %s2721_s10  ;;  %v2521_v3 = vcombine.low %v2514_v36, %v2515_v24 }
 0x90c   : > { %2522 = vrot.lane.b32.xlu1 %v2521_v3, %s2721_s10 }
 0x97c   : > { %v2525_v4 = vpop.permute.xlu0 %2524 }
 0x97d   : > { %v2527_v12 = vrot.slane %v2525_v4, 4 }
 0x97e   : > { %v2523_v60 = vpop.permute.xlu1 %2522 }
 0x97f   : > { %v2526_v11 = vrot.slane %v2523_v60, 4 }
 0x981   : > { %v2528_v21 = vsel %vm1358_vm5, %v2526_v11, %v2527_v12 }
 0x982   : > { %v2529_v25 = vsel %vm1353_vm4, %v2523_v60, %v2528_v21 }
 0x983   : > { %v2531_v49 = vadd.f32 %v2529_v25, %v2517_v1 }
 0x985   : > { %2532 = vst [vmem:[%s251_s13] sm:$0xff] %v2531_v49 }
 0x986 PF: > { %s16_s21 = sadd.s32 1, %s2710_s21  }
 0x987   : > { %p13_p4 = scmp.ge.s32.totalorder %s16_s21, 4  }
 0x989   :  { %15 = sbr.rel (!%p13_p4) target bundleno = 1 (0x1), region = 91 }

</bundles_post_ra>
